<compile_context>
chip_gen: v6e
topology: v6e:2x2x1
jax: 0.10.0
libtpu: 0.0.40
codegen_flags: <defaults>
</compile_context>

<pallas_src>
import numpy as np
import jax
import jax.numpy as jnp
from jax.experimental import pallas as pl
from jax.experimental.pallas import tpu as pltpu


# ---- model geometry (fixed by the module: Linear(640, 6) forces L_in = 54) ----
_L_IN = 54
_K = 3
_P1, _C1, _Q1 = 52, 16, 26      # conv1 positions / channels, pool1 positions
_P2, _C2, _Q2 = 24, 32, 12      # conv2a positions / channels, pool2 positions
_P3, _C3 = 10, 64               # conv2b positions / channels
_H1 = 512                       # per-parity half after conv1 (16*26=416, pad to 4*128)
_H2 = 384                       # per-parity half after conv2a (32*12 = 3*128)
_L1 = 2 * _H1                   # 1024 conv1 output lanes ([even half | odd half])
_L2 = 2 * _H2                   # 768  conv2a output lanes
_L3 = _P3 * _C3                 # 640  conv2b output lanes == torch flatten(1) order
_LO = 128                       # classifier output lanes (6 used, zero padded)
_TB_MAX = 128                   # samples per grid step (multiple of 8)


def _adaptive_conv_kernel(x_ref, w1_ref, w2_ref, w3_ref, wf_ref, c_ref, o_ref):
    """One grid step = TB samples; one sample per sublane row, features on lanes."""
    f32 = jnp.float32
    x = x_ref[...]                                              # (TB, 64)

    # layer1: adaptive_conv1d(1->16, k=3, 'valid') + BatchNorm1d (folded).
    # y1 lane layout: [even positions | odd positions], each half c*26 + q.
    y1 = jnp.dot(x, w1_ref[...], preferred_element_type=f32)    # (TB, 1024)
    y1 = y1 * c_ref[0:1, :] + c_ref[1:2, :]
    # MaxPool1d(2): max of the two 128-aligned halves -> (TB, 512), lanes c*26+q.
    m1 = jnp.maximum(y1[:, :_H1], y1[:, _H1:])

    # layer2a: Conv1d(16->32, k=3, 'valid') + BatchNorm1d (folded),
    # even/odd split again (384-lane halves, lane = c*12 + s within a half).
    y2 = jnp.dot(m1, w2_ref[...], preferred_element_type=f32)   # (TB, 768)
    y2 = y2 * c_ref[2:3, :_L2] + c_ref[3:4, :_L2]
    m2 = jnp.maximum(y2[:, :_H2], y2[:, _H2:])                  # (TB, 384)

    # layer2b: Conv1d(32->64, k=3, 'valid') + bias + ReLU.
    # Output lanes are c*10 + r, i.e. exactly torch.flatten(1) order.
    y3 = jnp.dot(m2, w3_ref[...], preferred_element_type=f32)   # (TB, 640)
    y3 = jnp.maximum(y3 + c_ref[4:5, :_L3], 0.0)

    # classifier: Linear(640 -> 6), zero-padded to 128 lanes (dense store).
    out = jnp.dot(y3, wf_ref[...], preferred_element_type=f32)  # (TB, 128)
    o_ref[...] = out + c_ref[5:6, :_LO]


def _toeplitz_weights(params):
    """Expand the small conv weights into lane-major Toeplitz matrices and fold
    BatchNorm (inference) / biases into per-lane scale & shift constants."""
    f32 = jnp.float32
    eps = 1e-5

    # conv1: value w1[c,0,k] feeds input row j = 2q + e + k into output lane
    # e*512 + c*26 + q  (e = parity of the conv1 output position p = 2q + e).
    w1 = params["w1"].astype(f32)                                      # (16, 1, 3)
    eg, cg, kg, qg = np.meshgrid(np.arange(2), np.arange(_C1), np.arange(_K),
                                 np.arange(_Q1), indexing="ij")
    w1t = jnp.zeros((64, _L1), f32).at[
        (2 * qg + eg + kg).ravel(), (eg * _H1 + cg * _Q1 + qg).ravel()
    ].set(jnp.broadcast_to(w1[None, :, 0, :, None], (2, _C1, _K, _Q1)).ravel())

    # conv2a: reads pool1 lane c1*26 + (p+k) with p = 2s + e,
    # writes output lane e*384 + c2*12 + s.
    w2a = params["w2a"].astype(f32)                                    # (32, 16, 3)
    eg, c2g, c1g, kg, sg = np.meshgrid(np.arange(2), np.arange(_C2), np.arange(_C1),
                                       np.arange(_K), np.arange(_Q2), indexing="ij")
    w2t = jnp.zeros((_H1, _L2), f32).at[
        (c1g * _Q1 + 2 * sg + eg + kg).ravel(),
        (eg * _H2 + c2g * _Q2 + sg).ravel()
    ].set(jnp.broadcast_to(w2a[None, :, :, :, None],
                           (2, _C2, _C1, _K, _Q2)).ravel())

    # conv2b: reads pool2 lane c2*12 + (r+k), writes lane c3*10 + r.
    w2b = params["w2b"].astype(f32)                                    # (64, 32, 3)
    c3g, c2g, kg, rg = np.meshgrid(np.arange(_C3), np.arange(_C2), np.arange(_K),
                                   np.arange(_P3), indexing="ij")
    w3t = jnp.zeros((_H2, _L3), f32).at[
        (c2g * _Q2 + rg + kg).ravel(), (c3g * _P3 + rg).ravel()
    ].set(jnp.broadcast_to(w2b[:, :, :, None], (_C3, _C2, _K, _P3)).ravel())

    # classifier: torch flatten(1) of (N, 64, 10) indexes features as c*10 + r,
    # which is exactly the y3 lane layout -> transpose + zero-pad to 128 lanes.
    wf = jnp.zeros((_L3, _LO), f32).at[:, :6].set(params["fc_w"].astype(f32).T)

    # per-lane constants, one resident (8, 1024) array:
    #   rows 0/1: BN1 scale/shift   rows 2/3: BN2 scale/shift
    #   row 4: conv2b bias          row 5: classifier bias      rows 6/7: unused
    def fold_bn(conv_b, g, b, m, v):
        s = g / jnp.sqrt(v + eps)
        return s.astype(f32), ((conv_b - m) * s + b).astype(f32)

    s1, t1 = fold_bn(params["b1"], params["bn1_g"], params["bn1_b"],
                     params["bn1_m"], params["bn1_v"])
    s2, t2 = fold_bn(params["b2a"], params["bn2_g"], params["bn2_b"],
                     params["bn2_m"], params["bn2_v"])
    s1v, t1v = jnp.repeat(s1, _Q1), jnp.repeat(t1, _Q1)        # (416,)
    s2v, t2v = jnp.repeat(s2, _Q2), jnp.repeat(t2, _Q2)        # (384,)

    consts = jnp.zeros((8, _L1), f32)
    for e in (0, 1):
        consts = consts.at[0, e * _H1: e * _H1 + _C1 * _Q1].set(s1v)
        consts = consts.at[1, e * _H1: e * _H1 + _C1 * _Q1].set(t1v)
    consts = consts.at[2, :_L2].set(jnp.tile(s2v, 2))
    consts = consts.at[3, :_L2].set(jnp.tile(t2v, 2))
    consts = consts.at[4, :_L3].set(jnp.repeat(params["b2b"].astype(f32), _P3))
    consts = consts.at[5, :6].set(params["fc_b"].astype(f32))
    return w1t, w2t, w3t, wf, consts


@jax.jit
def adaptive_conv_forward(x_ncl, params):
    """x_ncl: (N, 1, 54) float32, PyTorch NCL layout.  Returns (N, 6)."""
    N = x_ncl.shape[0]

    # Samples per grid step: as large as the batch allows (amortizes the
    # ~0.35us/step pipeline overhead), capped at 128 so VMEM stays small and
    # G = ceil(N/TB) >= 2 for large batches (keeps both v7x TensorCores busy).
    TB = min(_TB_MAX, ((max(N, 1) + 7) // 8) * 8)
    G = -(-N // TB)
    NP = G * TB

    # Lane-dense input: one sample per row, sequence positions on lanes.
    x_in = jnp.zeros((NP, 64), jnp.float32).at[:N, :_L_IN].set(
        x_ncl[:, 0, :].astype(jnp.float32))

    weights = _toeplitz_weights(params)

    out = pl.pallas_call(
        _adaptive_conv_kernel,
        grid=(G,),
        in_specs=[pl.BlockSpec((TB, 64), lambda g: (g, 0))]
        + [pl.BlockSpec(w.shape, lambda g: (0, 0)) for w in weights],
        out_specs=pl.BlockSpec((TB, _LO), lambda g: (g, 0)),
        out_shape=jax.ShapeDtypeStruct((NP, _LO), jnp.float32),
        compiler_params=pltpu.CompilerParams(
            dimension_semantics=("parallel",),
            vmem_limit_bytes=48 * 1024 * 1024),
    )(x_in, *weights)
    return out[:N, :6]


def _reference_forward(x, p):
    """Pure-JAX reference mirroring the PyTorch module (NCL layout)."""
    eps = 1e-5

    def conv1d(x, w, b):
        y = jax.lax.conv_general_dilated(
            x, w, window_strides=(1,), padding="VALID",
            dimension_numbers=("NCH", "OIH", "NCH"),
            precision=jax.lax.Precision.HIGHEST)
        return y + b[None, :, None]

    def bn(x, g, b, m, v):
        s = g / jnp.sqrt(v + eps)
        return x * s[None, :, None] + (b - m * s)[None, :, None]

    def pool2(x):
        n, c, l = x.shape
        return x.reshape(n, c, l // 2, 2).max(axis=-1)

    h = pool2(bn(conv1d(x, p["w1"], p["b1"]),
                 p["bn1_g"], p["bn1_b"], p["bn1_m"], p["bn1_v"]))
    h = pool2(bn(conv1d(h, p["w2a"], p["b2a"]),
                 p["bn2_g"], p["bn2_b"], p["bn2_m"], p["bn2_v"]))
    h = jax.nn.relu(conv1d(h, p["w2b"], p["b2b"]))
    h = h.reshape(h.shape[0], -1)                       # (N, 640)
    return h @ p["fc_w"].T + p["fc_b"]


if __name__ == "__main__":
    key = jax.random.PRNGKey(0)
    ks = jax.random.split(key, 17)

    # L = 54 -> conv(52) -> pool(26) -> conv(24) -> pool(12) -> conv(10);
    # 64 * 10 = 640 features feed the Linear(640, 6).
    N, CIN, L = 2, 1, 54

    params = {
        "w1":   jax.random.normal(ks[0], (16, 1, 3), jnp.float32) / jnp.sqrt(3.0),
        "b1":   0.1 * jax.random.normal(ks[1], (16,), jnp.float32),
        "bn1_g": 1.0 + 0.1 * jax.random.normal(ks[2], (16,), jnp.float32),
        "bn1_b": 0.1 * jax.random.normal(ks[3], (16,), jnp.float32),
        "bn1_m": 0.1 * jax.random.normal(ks[4], (16,), jnp.float32),
        "bn1_v": 1.0 + 0.1 * jax.random.uniform(ks[5], (16,), jnp.float32),
        "w2a":  jax.random.normal(ks[6], (32, 16, 3), jnp.float32) / jnp.sqrt(48.0),
        "b2a":  0.1 * jax.random.normal(ks[7], (32,), jnp.float32),
        "bn2_g": 1.0 + 0.1 * jax.random.normal(ks[8], (32,), jnp.float32),
        "bn2_b": 0.1 * jax.random.normal(ks[9], (32,), jnp.float32),
        "bn2_m": 0.1 * jax.random.normal(ks[10], (32,), jnp.float32),
        "bn2_v": 1.0 + 0.1 * jax.random.uniform(ks[11], (32,), jnp.float32),
        "w2b":  jax.random.normal(ks[12], (64, 32, 3), jnp.float32) / jnp.sqrt(96.0),
        "b2b":  0.1 * jax.random.normal(ks[13], (64,), jnp.float32),
        "fc_w": jax.random.normal(ks[14], (6, 640), jnp.float32) / jnp.sqrt(640.0),
        "fc_b": 0.1 * jax.random.normal(ks[15], (6,), jnp.float32),
    }
    x = jax.random.normal(ks[16], (N, CIN, L), jnp.float32)

    out = adaptive_conv_forward(x, params)
    out = jax.block_until_ready(out)
    assert out.shape == (N, 6), out.shape

    ref = _reference_forward(x, params)
    err = float(jnp.max(jnp.abs(out - ref)))
    if err > 1e-3:
        raise AssertionError(f"Pallas kernel mismatch vs reference: max abs err {err}")

    print("KERNEL_OK")
</pallas_src>

<mosaic_0001>
module attributes {stable_mosaic.version = 11 : i64} {
  func.func @_adaptive_conv_kernel(%arg0: i32, %arg1: memref<8x64xf32, #tpu.memory_space<vmem>>, %arg2: memref<64x1024xf32, #tpu.memory_space<vmem>>, %arg3: memref<512x768xf32, #tpu.memory_space<vmem>>, %arg4: memref<384x640xf32, #tpu.memory_space<vmem>>, %arg5: memref<640x128xf32, #tpu.memory_space<vmem>>, %arg6: memref<8x1024xf32, #tpu.memory_space<vmem>>, %arg7: memref<8x128xf32, #tpu.memory_space<vmem>>) attributes {dimension_semantics = [#tpu.dimension_semantics<parallel>], iteration_bounds = array<i64: 1>, scalar_prefetch = 0 : i64, scratch_operands = 0 : i64, tpu.core_type = #tpu.core_type<tc>, window_params = [{transform_indices = @transform_0, window_bounds = array<i64: 8, 64>}, {pipeline_mode = #tpu.pipeline_mode<synchronous>, transform_indices = @transform_1, window_bounds = array<i64: 64, 1024>}, {pipeline_mode = #tpu.pipeline_mode<synchronous>, transform_indices = @transform_2, window_bounds = array<i64: 512, 768>}, {pipeline_mode = #tpu.pipeline_mode<synchronous>, transform_indices = @transform_3, window_bounds = array<i64: 384, 640>}, {pipeline_mode = #tpu.pipeline_mode<synchronous>, transform_indices = @transform_4, window_bounds = array<i64: 640, 128>}, {pipeline_mode = #tpu.pipeline_mode<synchronous>, transform_indices = @transform_5, window_bounds = array<i64: 8, 1024>}, {transform_indices = @transform_6, window_bounds = array<i64: 8, 128>}]} {
    %c0 = arith.constant 0 : index
    %c0_0 = arith.constant 0 : index
    %0 = vector.load %arg1[%c0, %c0_0] : memref<8x64xf32, #tpu.memory_space<vmem>>, vector<8x64xf32>
    %c0_1 = arith.constant 0 : index
    %c0_2 = arith.constant 0 : index
    %1 = vector.load %arg2[%c0_1, %c0_2] : memref<64x1024xf32, #tpu.memory_space<vmem>>, vector<64x1024xf32>
    %cst = arith.constant dense<0.000000e+00> : vector<8x1024xf32>
    %2 = tpu.matmul %0, %1, %cst {dimension_numbers = #tpu.dot_dimension_numbers<[1], [0], [0], [1], [0, 0, 1, 1], [], []>} : vector<8x64xf32>, vector<64x1024xf32>, vector<8x1024xf32> -> vector<8x1024xf32>
    %c0_3 = arith.constant 0 : index
    %c0_4 = arith.constant 0 : index
    %3 = vector.load %arg6[%c0_3, %c0_4] : memref<8x1024xf32, #tpu.memory_space<vmem>>, vector<1x1024xf32>
    %4 = vector.broadcast %3 : vector<1x1024xf32> to vector<8x1024xf32>
    %5 = arith.mulf %2, %4 : vector<8x1024xf32>
    %c1 = arith.constant 1 : index
    %c0_5 = arith.constant 0 : index
    %6 = vector.load %arg6[%c1, %c0_5] : memref<8x1024xf32, #tpu.memory_space<vmem>>, vector<1x1024xf32>
    %7 = vector.broadcast %6 : vector<1x1024xf32> to vector<8x1024xf32>
    %8 = arith.addf %5, %7 : vector<8x1024xf32>
    %9 = vector.extract_strided_slice %8 {offsets = [0, 0], sizes = [8, 512], strides = [1, 1]} : vector<8x1024xf32> to vector<8x512xf32>
    %10 = vector.extract_strided_slice %8 {offsets = [0, 512], sizes = [8, 512], strides = [1, 1]} : vector<8x1024xf32> to vector<8x512xf32>
    %11 = arith.maximumf %9, %10 : vector<8x512xf32>
    %c0_6 = arith.constant 0 : index
    %c0_7 = arith.constant 0 : index
    %12 = vector.load %arg3[%c0_6, %c0_7] : memref<512x768xf32, #tpu.memory_space<vmem>>, vector<512x768xf32>
    %cst_8 = arith.constant dense<0.000000e+00> : vector<8x768xf32>
    %13 = tpu.matmul %11, %12, %cst_8 {dimension_numbers = #tpu.dot_dimension_numbers<[1], [0], [0], [1], [0, 0, 1, 1], [], []>} : vector<8x512xf32>, vector<512x768xf32>, vector<8x768xf32> -> vector<8x768xf32>
    %c2 = arith.constant 2 : index
    %c0_9 = arith.constant 0 : index
    %14 = vector.load %arg6[%c2, %c0_9] : memref<8x1024xf32, #tpu.memory_space<vmem>>, vector<1x768xf32>
    %15 = vector.broadcast %14 : vector<1x768xf32> to vector<8x768xf32>
    %16 = arith.mulf %13, %15 : vector<8x768xf32>
    %c3 = arith.constant 3 : index
    %c0_10 = arith.constant 0 : index
    %17 = vector.load %arg6[%c3, %c0_10] : memref<8x1024xf32, #tpu.memory_space<vmem>>, vector<1x768xf32>
    %18 = vector.broadcast %17 : vector<1x768xf32> to vector<8x768xf32>
    %19 = arith.addf %16, %18 : vector<8x768xf32>
    %20 = vector.extract_strided_slice %19 {offsets = [0, 0], sizes = [8, 384], strides = [1, 1]} : vector<8x768xf32> to vector<8x384xf32>
    %21 = vector.extract_strided_slice %19 {offsets = [0, 384], sizes = [8, 384], strides = [1, 1]} : vector<8x768xf32> to vector<8x384xf32>
    %22 = arith.maximumf %20, %21 : vector<8x384xf32>
    %c0_11 = arith.constant 0 : index
    %c0_12 = arith.constant 0 : index
    %23 = vector.load %arg4[%c0_11, %c0_12] : memref<384x640xf32, #tpu.memory_space<vmem>>, vector<384x640xf32>
    %cst_13 = arith.constant dense<0.000000e+00> : vector<8x640xf32>
    %24 = tpu.matmul %22, %23, %cst_13 {dimension_numbers = #tpu.dot_dimension_numbers<[1], [0], [0], [1], [0, 0, 1, 1], [], []>} : vector<8x384xf32>, vector<384x640xf32>, vector<8x640xf32> -> vector<8x640xf32>
    %c4 = arith.constant 4 : index
    %c0_14 = arith.constant 0 : index
    %25 = vector.load %arg6[%c4, %c0_14] : memref<8x1024xf32, #tpu.memory_space<vmem>>, vector<1x640xf32>
    %26 = vector.broadcast %25 : vector<1x640xf32> to vector<8x640xf32>
    %27 = arith.addf %24, %26 : vector<8x640xf32>
    %cst_15 = arith.constant 0.000000e+00 : f32
    %28 = vector.broadcast %cst_15 : f32 to vector<8x640xf32>
    %29 = arith.maximumf %27, %28 : vector<8x640xf32>
    %c0_16 = arith.constant 0 : index
    %c0_17 = arith.constant 0 : index
    %30 = vector.load %arg5[%c0_16, %c0_17] : memref<640x128xf32, #tpu.memory_space<vmem>>, vector<640x128xf32>
    %cst_18 = arith.constant dense<0.000000e+00> : vector<8x128xf32>
    %31 = tpu.matmul %29, %30, %cst_18 {dimension_numbers = #tpu.dot_dimension_numbers<[1], [0], [0], [1], [0, 0, 1, 1], [], []>} : vector<8x640xf32>, vector<640x128xf32>, vector<8x128xf32> -> vector<8x128xf32>
    %c5 = arith.constant 5 : index
    %c0_19 = arith.constant 0 : index
    %32 = vector.load %arg6[%c5, %c0_19] : memref<8x1024xf32, #tpu.memory_space<vmem>>, vector<1x128xf32>
    %33 = vector.broadcast %32 : vector<1x128xf32> to vector<8x128xf32>
    %34 = arith.addf %31, %33 : vector<8x128xf32>
    %c0_20 = arith.constant 0 : index
    %c0_21 = arith.constant 0 : index
    %35 = vector.load %arg7[%c0_20, %c0_21] : memref<8x128xf32, #tpu.memory_space<vmem>>, vector<8x128xf32>
    tpu.vector_store %arg7[%c0_20, %c0_21], %34 {strides = array<i32>} : memref<8x128xf32, #tpu.memory_space<vmem>>, vector<8x128xf32>,
    return
  }
  func.func @transform_0(%arg0: i32) -> (i32, i32) {
    %c0_i32 = arith.constant 0 : i32
    %c0_i32_0 = arith.constant 0 : i32
    return %arg0, %c0_i32 : i32, i32
  }
  func.func @transform_1(%arg0: i32) -> (i32, i32) {
    %c0_i32 = arith.constant 0 : i32
    %c0_i32_0 = arith.constant 0 : i32
    %c0_i32_1 = arith.constant 0 : i32
    return %c0_i32, %c0_i32_0 : i32, i32
  }
  func.func @transform_2(%arg0: i32) -> (i32, i32) {
    %c0_i32 = arith.constant 0 : i32
    %c0_i32_0 = arith.constant 0 : i32
    %c0_i32_1 = arith.constant 0 : i32
    return %c0_i32, %c0_i32_0 : i32, i32
  }
  func.func @transform_3(%arg0: i32) -> (i32, i32) {
    %c0_i32 = arith.constant 0 : i32
    %c0_i32_0 = arith.constant 0 : i32
    %c0_i32_1 = arith.constant 0 : i32
    return %c0_i32, %c0_i32_0 : i32, i32
  }
  func.func @transform_4(%arg0: i32) -> (i32, i32) {
    %c0_i32 = arith.constant 0 : i32
    %c0_i32_0 = arith.constant 0 : i32
    %c0_i32_1 = arith.constant 0 : i32
    return %c0_i32, %c0_i32_0 : i32, i32
  }
  func.func @transform_5(%arg0: i32) -> (i32, i32) {
    %c0_i32 = arith.constant 0 : i32
    %c0_i32_0 = arith.constant 0 : i32
    %c0_i32_1 = arith.constant 0 : i32
    return %c0_i32, %c0_i32_0 : i32, i32
  }
  func.func @transform_6(%arg0: i32) -> (i32, i32) {
    %c0_i32 = arith.constant 0 : i32
    %c0_i32_0 = arith.constant 0 : i32
    return %arg0, %c0_i32 : i32, i32
  }
}

</mosaic_0001>

<bundles_post_ra>
// kernel: tile.9
= control target key start
LH: loop header
LB: loop body
LE: loop exit
PB: predicated region body
PF: predicated region fallthrough
CT: control target
= control target key end

     0   :  { %vm9_vm0 = vcmask 31744   ;;  %vm13_vm1 = vcmask 64512   ;;  %s298_s14 = smov 124   ;;  %s299_s15 = smov 116   ;;  %vm3_vm2 = vcmask 97280   ;;  %vm16_vm3 = vcmask 1048544   ;;  %s448_s0 = inlined_call_operand.vmem [shape: f32[32,12], index: 0, kind: input, shape index: {}]   ;;  %s449_s1 = inlined_call_operand.vmem [shape: f32[384], index: 1, kind: output, shape index: {}]  }
   0x1   :  { %v234_v0 = vld [vmem:[%s448_s0 + $0x15] sm:$0x1]   ;;  %v238_v3 = vld [vmem:[%s448_s0 + $0x1f] sm:$0x1]   ;;  %v236_v4 = vld [vmem:[%s448_s0 + $0xa] sm:$0x1]  }
   0x2   :  { %v235_v1 = vld [vmem:[%s448_s0 + $0x15] sm:$0x1]   ;;  %34 = vrot.lane.b32.xlu1 %v238_v3, %s299_s15  ;;  %v237_v5 = vld [vmem:[%s448_s0 + $0xa] sm:$0x1]   ;;  %v239_v7 = vld [vmem:[%s448_s0 + $0x14] sm:$0x1]  }
   0x3   :  { %v10_v2 = vsel %vm9_vm0, %v235_v1, %v234_v0  ;;  %v24_v6 = vsel %vm13_vm1, %v237_v5, %v236_v4  ;;  %s300_s20 = smov 120   ;;  %s301_s21 = smov 112   ;;  %v240_v8 = vld [vmem:[%s448_s0 + $0x9] sm:$0x1]   ;;  %v241_v9 = vld [vmem:[%s448_s0 + $0x1e] sm:$0x1]  }
   0x4   :  { %11 = vrot.lane.b32.xlu0 %v10_v2, %s298_s14  ;;  %s302_s26 = smov 108   ;;  %s303_s27 = smov 104   ;;  %v242_v10 = vld [vmem:[%s448_s0 + $0x13] sm:$0x1]   ;;  %v243_v11 = vld [vmem:[%s448_s0 + $0x8] sm:$0x1]  }
   0x5   :  { %s304_s3 = smov 100   ;;  %s305_s4 = smov 96   ;;  %v244_v12 = vld [vmem:[%s448_s0 + $0x1d] sm:$0x1]   ;;  %v245_v13 = vld [vmem:[%s448_s0 + $0x12] sm:$0x1]  }
   0x6   :  { %41 = vrot.lane.b32.xlu1 %v239_v7, %s301_s21  ;;  %v2_v14 = vld [vmem:[%s448_s0] sm:$0x1]   ;;  %s306_s11 = smov 92   ;;  %s307_s12 = smov 88   ;;  %v246_v15 = vld [vmem:[%s448_s0 + $0x7] sm:$0x1]  }
   0x7   :  { %4 = vst.msk [vmem:[#allocation0] sm:$0x1] %vm3_vm2, %v2_v14   ;;  %v247_v16 = vld [vmem:[%s448_s0 + $0x1c] sm:$0x1]   ;;  %s308_s17 = smov 84   ;;  %s309_s18 = smov 80  }
   0x8   :  { %25 = vrot.lane.b32.xlu0 %v24_v6, %s300_s20  ;;  %v248_v17 = vld [vmem:[%s448_s0 + $0x11] sm:$0x1]   ;;  %v249_v18 = vld [vmem:[%s448_s0 + $0x6] sm:$0x1]   ;;  %s310_s23 = smov 76   ;;  %s311_s24 = smov 72  }
   0x9   :  { %v250_v19 = vld [vmem:[%s448_s0 + $0x1b] sm:$0x1]   ;;  %v251_v20 = vld [vmem:[%s448_s0 + $0x10] sm:$0x1]   ;;  %s312_s29 = smov 68   ;;  %s313_s30 = smov 64  }
   0xa   :  { %54 = vrot.lane.b32.xlu1 %v241_v9, %s303_s27  ;;  %v252_v21 = vld [vmem:[%s448_s0 + $0x5] sm:$0x1]   ;;  %v253_v22 = vld [vmem:[%s448_s0 + $0x1a] sm:$0x1]   ;;  %s314_s6 = smov 60   ;;  %s315_s7 = smov 56  }
   0xb   :  { %v254_v23 = vld [vmem:[%s448_s0 + $0xf] sm:$0x1]   ;;  %v255_v24 = vld [vmem:[%s448_s0 + $0x4] sm:$0x1]   ;;  %s317_s13 = smov 48   ;;  %s319_s19 = smov 40  }
   0xc   :  { %48 = vrot.lane.b32.xlu0 %v240_v8, %s302_s26  ;;  %v256_v25 = vld [vmem:[%s448_s0 + $0x19] sm:$0x1]   ;;  %v257_v26 = vld [vmem:[%s448_s0 + $0xe] sm:$0x1]   ;;  %v258_v27 = vld [vmem:[%s448_s0 + $0x3] sm:$0x1]  }
   0xd   :  { %v259_v28 = vld [vmem:[%s448_s0 + $0x18] sm:$0x1]   ;;  %s321_s25 = smov 32   ;;  %v260_v29 = vld [vmem:[%s448_s0 + $0xd] sm:$0x1]   ;;  %s323_s2 = smov 24  }
   0xe   :  { %68 = vrot.lane.b32.xlu1 %v243_v11, %s305_s4  ;;  %v261_v30 = vld [vmem:[%s448_s0 + $0x2] sm:$0x1]   ;;  %v262_v31 = vld [vmem:[%s448_s0 + $0x17] sm:$0x1]   ;;  %v263_v32 = vld [vmem:[%s448_s0 + $0xc] sm:$0x1]  }
   0xf   :  { %s325_s8 = smov 16   ;;  %v264_v33 = vld [vmem:[%s448_s0 + $0x1] sm:$0x1]   ;;  %v265_v34 = vld [vmem:[%s448_s0 + $0x16] sm:$0x1]   ;;  %s327_s14 = smov 8  }
  0x10   :  { %61 = vrot.lane.b32.xlu0 %v242_v10, %s304_s3  ;;  %v266_v35 = vld [vmem:[%s448_s0 + $0xb] sm:$0x1]   ;;  %s328_s0 = smov 4   ;;  %vm36_vm4 = vcmask 1048480   ;;  %vm30_vm5 = vcmask 1048512   ;;  %vm43_vm6 = vcmask 1015680  }
  0x11   :  { %vm50_vm7 = vcmask 982880   ;;  %vm56_vm8 = vcmask 950080   ;;  %vm63_vm9 = vcmask 917280   ;;  %vm70_vm10 = vcmask 884480  }
  0x12   :  { %81 = vrot.lane.b32.xlu1 %v245_v13, %s307_s12  ;;  %s316_s12 = smov 52   ;;  %vm76_vm11 = vcmask 851680   ;;  %vm83_vm12 = vcmask 818880   ;;  %vm90_vm13 = vcmask 786080   ;;  %vm96_vm14 = vcmask 753280  }
  0x13   :  { %vm103_vm15 = vcmask 720480   ;;  %vm123_vm2 = vcmask 622080  }
  0x14   :  { %74 = vrot.lane.b32.xlu0 %v244_v12, %s306_s11 }
  0x16   :  { %94 = vrot.lane.b32.xlu1 %v247_v16, %s309_s18  ;;  %s318_s18 = smov 44  }
  0x18   :  { %88 = vrot.lane.b32.xlu0 %v246_v15, %s308_s17 }
  0x1a   :  { %108 = vrot.lane.b32.xlu1 %v249_v18, %s311_s24  ;;  %s320_s24 = smov 36  }
  0x1c   :  { %101 = vrot.lane.b32.xlu0 %v248_v17, %s310_s23 }
  0x1e   :  { %121 = vrot.lane.b32.xlu1 %v251_v20, %s313_s30  ;;  %s322_s30 = smov 28  }
  0x20   :  { %114 = vrot.lane.b32.xlu0 %v250_v19, %s312_s29 }
  0x22   :  { %134 = vrot.lane.b32.xlu1 %v253_v22, %s315_s7  ;;  %s324_s7 = smov 20  }
  0x24   :  { %128 = vrot.lane.b32.xlu0 %v252_v21, %s314_s6 }
  0x26   :  { %148 = vrot.lane.b32.xlu1 %v255_v24, %s317_s13  ;;  %s326_s13 = smov 12  }
  0x28   :  { %141 = vrot.lane.b32.xlu0 %v254_v23, %s316_s12 }
  0x2a   :  { %161 = vrot.lane.b32.xlu1 %v257_v26, %s319_s19 }
  0x2c   :  { %154 = vrot.lane.b32.xlu0 %v256_v25, %s318_s18 }
  0x2e   :  { %174 = vrot.lane.b32.xlu1 %v259_v28, %s321_s25 }
  0x30   :  { %168 = vrot.lane.b32.xlu0 %v258_v27, %s320_s24 }
  0x32   :  { %188 = vrot.lane.b32.xlu1 %v261_v30, %s323_s2 }
  0x34   :  { %181 = vrot.lane.b32.xlu0 %v260_v29, %s322_s30 }
  0x36   :  { %201 = vrot.lane.b32.xlu1 %v263_v32, %s325_s8 }
  0x38   :  { %194 = vrot.lane.b32.xlu0 %v262_v31, %s324_s7 }
  0x3a   :  { %214 = vrot.lane.b32.xlu1 %v265_v34, %s327_s14 }
  0x3c   :  { %208 = vrot.lane.b32.xlu0 %v264_v33, %s326_s13 }
  0x40   :  { %221 = vrot.lane.b32.xlu0 %v266_v35, %s328_s0 }
  0x74   :  { %v35_v37 = vpop.permute.xlu1 %34  }
  0x76   :  { %v12_v36 = vpop.permute.xlu0 %11  }
  0x77   :  { %15 = vst.msk [vmem:[#allocation0 + $0x2] sm:$0x1] %vm13_vm1, %v12_v36   ;;  %vm116_vm1 = vcmask 654880  }
  0x78   :  { %18 = vst.msk [vmem:[#allocation0 + $0x1] sm:$0x1] %vm16_vm3, %v12_v36   ;;  %v42_v39 = vpop.permute.xlu1 %41   ;;  %vm130_vm3 = vcmask 589280  }
  0x79   :  { %38 = vst.msk [vmem:[#allocation0 + $0x2] sm:$0x1] %vm36_vm4, %v35_v37   ;;  %vm136_vm4 = vcmask 556480  }
  0x7a   :  { %v26_v38 = vpop.permute.xlu0 %25  }
  0x7b   :  { %29 = vst.msk [vmem:[#allocation0 + $0x1] sm:$0x1] %vm9_vm0, %v26_v38   ;;  %vm110_vm0 = vcmask 687680  }
  0x7c   :  { %31 = vst.msk [vmem:[#allocation0] sm:$0x1] %vm30_vm5, %v26_v38   ;;  %v55_v41 = vpop.permute.xlu1 %54   ;;  %vm143_vm5 = vcmask 523680  }
  0x7d   :  { %45 = vst.msk [vmem:[#allocation0 + $0x1] sm:$0x1] %vm43_vm6, %v42_v39   ;;  %vm150_vm6 = vcmask 490880  }
  0x7e   :  { %v49_v40 = vpop.permute.xlu0 %48   ;;  %58 = vst.msk [vmem:[#allocation0 + $0x2] sm:$0x1] %vm56_vm8, %v55_v41   ;;  %vm163_vm8 = vcmask 425280  }
  0x7f   :  { %51 = vst.msk [vmem:[#allocation0] sm:$0x1] %vm50_vm7, %v49_v40   ;;  %vm156_vm7 = vcmask 458080  }
  0x80   :  { %v69_v43 = vpop.permute.xlu1 %68  }
  0x81   :  { %71 = vst.msk [vmem:[#allocation0] sm:$0x1] %vm70_vm10, %v69_v43   ;;  %vm176_vm10 = vcmask 359680  }
  0x82   :  { %v62_v42 = vpop.permute.xlu0 %61  }
  0x83   :  { %65 = vst.msk [vmem:[#allocation0 + $0x1] sm:$0x1] %vm63_vm9, %v62_v42   ;;  %vm170_vm9 = vcmask 392480  }
  0x84   :  { %v82_v45 = vpop.permute.xlu1 %81  }
  0x85   :  { %85 = vst.msk [vmem:[#allocation0 + $0x1] sm:$0x1] %vm83_vm12, %v82_v45   ;;  %vm190_vm12 = vcmask 294080  }
  0x86   :  { %v75_v44 = vpop.permute.xlu0 %74  }
  0x87   :  { %78 = vst.msk [vmem:[#allocation0 + $0x2] sm:$0x1] %vm76_vm11, %v75_v44   ;;  %vm183_vm11 = vcmask 326880  }
  0x88   :  { %v95_v47 = vpop.permute.xlu1 %94  }
  0x89   :  { %98 = vst.msk [vmem:[#allocation0 + $0x2] sm:$0x1] %vm96_vm14, %v95_v47   ;;  %vm203_vm14 = vcmask 228480  }
  0x8a   :  { %v89_v46 = vpop.permute.xlu0 %88  }
  0x8b   :  { %91 = vst.msk [vmem:[#allocation0] sm:$0x1] %vm90_vm13, %v89_v46   ;;  %vm196_vm13 = vcmask 261280  }
  0x8c   :  { %v109_v49 = vpop.permute.xlu1 %108  }
  0x8d   :  { %111 = vst.msk [vmem:[#allocation0] sm:$0x1] %vm110_vm0, %v109_v49   ;;  %vm216_vm0 = vcmask 162880  }
  0x8e   :  { %v102_v48 = vpop.permute.xlu0 %101  }
  0x8f   :  { %105 = vst.msk [vmem:[#allocation0 + $0x1] sm:$0x1] %vm103_vm15, %v102_v48   ;;  %vm210_vm15 = vcmask 195680  }
  0x90   :  { %v122_v51 = vpop.permute.xlu1 %121  }
  0x91   :  { %125 = vst.msk [vmem:[#allocation0 + $0x1] sm:$0x1] %vm123_vm2, %v122_v51  }
  0x92   :  { %v115_v50 = vpop.permute.xlu0 %114  }
  0x93   :  { %118 = vst.msk [vmem:[#allocation0 + $0x2] sm:$0x1] %vm116_vm1, %v115_v50   ;;  %vm223_vm1 = vcmask 130080  }
  0x94   :  { %v135_v53 = vpop.permute.xlu1 %134  }
  0x95   :  { %138 = vst.msk [vmem:[#allocation0 + $0x2] sm:$0x1] %vm136_vm4, %v135_v53  }
  0x96   :  { %v129_v52 = vpop.permute.xlu0 %128  }
  0x97   :  { %131 = vst.msk [vmem:[#allocation0] sm:$0x1] %vm130_vm3, %v129_v52  }
  0x98   :  { %v149_v55 = vpop.permute.xlu1 %148  }
  0x99   :  { %151 = vst.msk [vmem:[#allocation0] sm:$0x1] %vm150_vm6, %v149_v55  }
  0x9a   :  { %v142_v54 = vpop.permute.xlu0 %141  }
  0x9b   :  { %145 = vst.msk [vmem:[#allocation0 + $0x1] sm:$0x1] %vm143_vm5, %v142_v54  }
  0x9c   :  { %v162_v57 = vpop.permute.xlu1 %161  }
  0x9d   :  { %165 = vst.msk [vmem:[#allocation0 + $0x1] sm:$0x1] %vm163_vm8, %v162_v57  }
  0x9e   :  { %v155_v56 = vpop.permute.xlu0 %154  }
  0x9f   :  { %158 = vst.msk [vmem:[#allocation0 + $0x2] sm:$0x1] %vm156_vm7, %v155_v56  }
  0xa0   :  { %v175_v59 = vpop.permute.xlu1 %174  }
  0xa1   :  { %178 = vst.msk [vmem:[#allocation0 + $0x2] sm:$0x1] %vm176_vm10, %v175_v59  }
  0xa2   :  { %v169_v58 = vpop.permute.xlu0 %168  }
  0xa3   :  { %171 = vst.msk [vmem:[#allocation0] sm:$0x1] %vm170_vm9, %v169_v58  }
  0xa4   :  { %v189_v61 = vpop.permute.xlu1 %188  }
  0xa5   :  { %191 = vst.msk [vmem:[#allocation0] sm:$0x1] %vm190_vm12, %v189_v61  }
  0xa6   :  { %v182_v60 = vpop.permute.xlu0 %181  }
  0xa7   :  { %185 = vst.msk [vmem:[#allocation0 + $0x1] sm:$0x1] %vm183_vm11, %v182_v60  }
  0xa8   :  { %v202_v63 = vpop.permute.xlu1 %201  }
  0xa9   :  { %205 = vst.msk [vmem:[#allocation0 + $0x1] sm:$0x1] %vm203_vm14, %v202_v63  }
  0xaa   :  { %v195_v62 = vpop.permute.xlu0 %194  }
  0xab   :  { %198 = vst.msk [vmem:[#allocation0 + $0x2] sm:$0x1] %vm196_vm13, %v195_v62  }
  0xac   :  { %v215_v1 = vpop.permute.xlu1 %214  }
  0xad   :  { %218 = vst.msk [vmem:[#allocation0 + $0x2] sm:$0x1] %vm216_vm0, %v215_v1  }
  0xae   :  { %v209_v0 = vpop.permute.xlu0 %208  }
  0xaf   :  { %211 = vst.msk [vmem:[#allocation0] sm:$0x1] %vm210_vm15, %v209_v0  }
  0xb2   :  { %v222_v2 = vpop.permute.xlu0 %221  }
  0xb3   :  { %225 = vst.msk [vmem:[#allocation0 + $0x1] sm:$0x1] %vm223_vm1, %v222_v2  }
  0xba   :  { %v230_v3 = vld [vmem:[#allocation0] sm:$0xf] }
  0xbb   :  { %233 = vst [vmem:[%s449_s1] sm:$0xf] %v230_v3 }

// kernel: adaptive_conv_forward.1
= control target key start
LH: loop header
LB: loop body
LE: loop exit
PB: predicated region body
PF: predicated region fallthrough
CT: control target
= control target key end

     0   :  { %v2598_v3 = vmov 0.0   ;;  %vm88_vm0 = vcmask 523264   ;;  %vm2599_vm1 = vmmov 0   ;;  %s5143_s1 = inlined_call_operand.vmem [shape: f32[64,1024], index: 1, kind: input, shape index: {}]   ;;  %s5144_s0 = inlined_call_operand.vmem [shape: f32[8,64], index: 0, kind: input, shape index: {}]   ;;  %s5145_s2 = inlined_call_operand.vmem [shape: f32[512,768], index: 2, kind: input, shape index: {}]   ;;  %s5146_s5 = inlined_call_operand.vmem [shape: f32[8,1024], index: 5, kind: input, shape index: {}]   ;;  %s5147_s3 = inlined_call_operand.vmem [shape: f32[384,640], index: 3, kind: input, shape index: {}]   ;;  %s5148_s4 = inlined_call_operand.vmem [shape: f32[640,128], index: 4, kind: input, shape index: {}]   ;;  %s5149_s6 = inlined_call_operand.vmem [shape: f32[8,128], index: 6, kind: output, shape index: {}]  }
   0x1   :  { %v81_v0 = vld [vmem:[%s5143_s1 + $0x1c8] sm:$0xff]  ;;  %v80_v2 = vld [vmem:[%s5143_s1 + $0x1c0] sm:$0xff]  ;;  %156 = vmatprep.mubr.f32.mxu1 %v2598_v3  ;;  %298 = vmatprep.mubr.f32.mxu0 %v2598_v3  ;;  %v83_v34 = vld [vmem:[%s5143_s1 + $0x1d8] sm:$0xff] }
   0x2   :  { %v85_v1 = vld [vmem:[%s5143_s1 + $0x1e8] sm:$0xff]  ;;  %108 = vmatprep.subr.mxu1 %v81_v0  ;;  %v84_v4 = vld [vmem:[%s5143_s1 + $0x1e0] sm:$0xff]  ;;  %v82_v35 = vld [vmem:[%s5143_s1 + $0x1d0] sm:$0xff] }
   0x3   :  { %250 = vmatprep.subr.mxu0 %v85_v1  ;;  %v73_v5 = vld [vmem:[%s5143_s1 + $0x188] sm:$0xff]  ;;  %109 = vmatpush1.msra.mxu1 %v80_v2  ;;  %v72_v7 = vld [vmem:[%s5143_s1 + $0x180] sm:$0xff]  ;;  %v75_v36 = vld [vmem:[%s5143_s1 + $0x198] sm:$0xff] }
   0x4   :  { %v77_v6 = vld [vmem:[%s5143_s1 + $0x1a8] sm:$0xff]  ;;  %251 = vmatpush1.msra.mxu0 %v84_v4  ;;  %v76_v8 = vld [vmem:[%s5143_s1 + $0x1a0] sm:$0xff]  ;;  %110 = vmatprep.subr.mxu1 %v73_v5  ;;  %v74_v37 = vld [vmem:[%s5143_s1 + $0x190] sm:$0xff] }
   0x5   :  { %v65_v9 = vld [vmem:[%s5143_s1 + $0x148] sm:$0xff]  ;;  %252 = vmatprep.subr.mxu0 %v77_v6  ;;  %v64_v11 = vld [vmem:[%s5143_s1 + $0x140] sm:$0xff]  ;;  %111 = vmatpush1.msra.mxu1 %v72_v7  ;;  %v67_v38 = vld [vmem:[%s5143_s1 + $0x158] sm:$0xff] }
   0x6   :  { %v69_v10 = vld [vmem:[%s5143_s1 + $0x168] sm:$0xff]  ;;  %v68_v12 = vld [vmem:[%s5143_s1 + $0x160] sm:$0xff]  ;;  %253 = vmatpush1.msra.mxu0 %v76_v8  ;;  %112 = vmatprep.subr.mxu1 %v65_v9  ;;  %v66_v39 = vld [vmem:[%s5143_s1 + $0x150] sm:$0xff] }
   0x7   :  { %v57_v13 = vld [vmem:[%s5143_s1 + $0x108] sm:$0xff]  ;;  %254 = vmatprep.subr.mxu0 %v69_v10  ;;  %v56_v15 = vld [vmem:[%s5143_s1 + $0x100] sm:$0xff]  ;;  %113 = vmatpush1.msra.mxu1 %v64_v11  ;;  %v59_v40 = vld [vmem:[%s5143_s1 + $0x118] sm:$0xff] }
   0x8   :  { %v61_v14 = vld [vmem:[%s5143_s1 + $0x128] sm:$0xff]  ;;  %v60_v16 = vld [vmem:[%s5143_s1 + $0x120] sm:$0xff]  ;;  %255 = vmatpush1.msra.mxu0 %v68_v12  ;;  %114 = vmatprep.subr.mxu1 %v57_v13  ;;  %v58_v41 = vld [vmem:[%s5143_s1 + $0x110] sm:$0xff] }
   0x9   :  { %v49_v17 = vld [vmem:[%s5143_s1 + $0xc8] sm:$0xff]  ;;  %256 = vmatprep.subr.mxu0 %v61_v14  ;;  %v48_v19 = vld [vmem:[%s5143_s1 + $0xc0] sm:$0xff]  ;;  %115 = vmatpush1.msra.mxu1 %v56_v15  ;;  %v51_v42 = vld [vmem:[%s5143_s1 + $0xd8] sm:$0xff] }
   0xa   :  { %v53_v18 = vld [vmem:[%s5143_s1 + $0xe8] sm:$0xff]  ;;  %v52_v20 = vld [vmem:[%s5143_s1 + $0xe0] sm:$0xff]  ;;  %257 = vmatpush1.msra.mxu0 %v60_v16  ;;  %116 = vmatprep.subr.mxu1 %v49_v17  ;;  %v576_v43 = vld [vmem:[%s5145_s2 + $0x2d8] sm:$0xff] }
   0xb   :  { %v41_v21 = vld [vmem:[%s5143_s1 + $0x88] sm:$0xff]  ;;  %258 = vmatprep.subr.mxu0 %v53_v18  ;;  %v40_v23 = vld [vmem:[%s5143_s1 + $0x80] sm:$0xff]  ;;  %117 = vmatpush1.msra.mxu1 %v48_v19  ;;  %v575_v44 = vld [vmem:[%s5145_s2 + $0x2d0] sm:$0xff] }
   0xc   :  { %v45_v22 = vld [vmem:[%s5143_s1 + $0xa8] sm:$0xff]  ;;  %v44_v24 = vld [vmem:[%s5143_s1 + $0xa0] sm:$0xff]  ;;  %259 = vmatpush1.msra.mxu0 %v52_v20  ;;  %118 = vmatprep.subr.mxu1 %v41_v21  ;;  %v50_v47 = vld [vmem:[%s5143_s1 + $0xd0] sm:$0xff] }
   0xd   :  { %v33_v25 = vld [vmem:[%s5143_s1 + $0x48] sm:$0xff]  ;;  %260 = vmatprep.subr.mxu0 %v45_v22  ;;  %v32_v27 = vld [vmem:[%s5143_s1 + $0x40] sm:$0xff]  ;;  %119 = vmatpush1.msra.mxu1 %v40_v23  ;;  %v564_v48 = vld [vmem:[%s5145_s2 + $0x278] sm:$0xff] }
   0xe   :  { %v37_v26 = vld [vmem:[%s5143_s1 + $0x68] sm:$0xff]  ;;  %v36_v28 = vld [vmem:[%s5143_s1 + $0x60] sm:$0xff]  ;;  %261 = vmatpush1.msra.mxu0 %v44_v24  ;;  %120 = vmatprep.subr.mxu1 %v33_v25  ;;  %v43_v49 = vld [vmem:[%s5143_s1 + $0x98] sm:$0xff] }
   0xf   :  { %v25_v29 = vld [vmem:[%s5143_s1 + $0x8] sm:$0xff]  ;;  %262 = vmatprep.subr.mxu0 %v37_v26  ;;  %v24_v31 = vld [vmem:[%s5143_s1] sm:$0xff]  ;;  %121 = vmatpush1.msra.mxu1 %v32_v27  ;;  %v563_v50 = vld [vmem:[%s5145_s2 + $0x270] sm:$0xff] }
  0x10   :  { %v29_v30 = vld [vmem:[%s5143_s1 + $0x28] sm:$0xff]  ;;  %v28_v32 = vld [vmem:[%s5143_s1 + $0x20] sm:$0xff]  ;;  %263 = vmatpush1.msra.mxu0 %v36_v28  ;;  %122 = vmatprep.subr.mxu1 %v25_v29  ;;  %v42_v51 = vld [vmem:[%s5143_s1 + $0x90] sm:$0xff] }
  0x11   :  { %v2736_v33 = vld [vmem:[%s5144_s0] sm:$0xff]  ;;  %264 = vmatprep.subr.mxu0 %v29_v30  ;;  %123 = vmatpush1.msra.mxu1 %v24_v31  ;;  %v570_v45 = vld [vmem:[%s5145_s2 + $0x2a8] sm:$0xff]  ;;  %v35_v53 = vld [vmem:[%s5143_s1 + $0x58] sm:$0xff] }
  0x12   :  { %265 = vmatpush1.msra.mxu0 %v28_v32  ;;  %2375 = vmatmul.mubr.msk.f32.vlgmr.msra.gmra.mxu1 %vm88_vm0, %v2736_v33  ;;  %v569_v46 = vld [vmem:[%s5145_s2 + $0x2a0] sm:$0xff]  ;;  %v558_v52 = vld [vmem:[%s5145_s2 + $0x248] sm:$0xff]  ;;  %v34_v55 = vld [vmem:[%s5143_s1 + $0x50] sm:$0xff] }
  0x13   :  { %179 = vmatprep.subr.mxu1 %v83_v34  ;;  %2377 = vmatmul.mubr.msk.f32.vlgmr.msra.gmra.mxu0 %vm88_vm0, %v2736_v33  ;;  %v557_v54 = vld [vmem:[%s5145_s2 + $0x240] sm:$0xff]  ;;  %v552_v56 = vld [vmem:[%s5145_s2 + $0x218] sm:$0xff]  ;;  %v551_v58 = vld [vmem:[%s5145_s2 + $0x210] sm:$0xff] }
  0x14   :  { %180 = vmatpush1.msra.mxu1 %v82_v35  ;;  %227 = vmatprep.mubr.f32.mxu1 %v2598_v3  ;;  %v27_v57 = vld [vmem:[%s5143_s1 + $0x18] sm:$0xff]  ;;  %v26_v59 = vld [vmem:[%s5143_s1 + $0x10] sm:$0xff]  ;;  %v546_v60 = vld [vmem:[%s5145_s2 + $0x1e8] sm:$0xff] }
  0x15   :  { %181 = vmatprep.subr.mxu1 %v75_v36  ;;  %869 = vmatprep.subr.mxu0 %v576_v43  ;;  %v87_v61 = vld [vmem:[%s5143_s1 + $0x1f8] sm:$0xff]  ;;  %v86_v62 = vld [vmem:[%s5143_s1 + $0x1f0] sm:$0xff]  ;;  %v545_v0 = vld [vmem:[%s5145_s2 + $0x1e0] sm:$0xff] }
  0x16   :  { %182 = vmatpush1.msra.mxu1 %v74_v37  ;;  %870 = vmatpush1.msra.mxu0 %v575_v44  ;;  %v79_v63 = vld [vmem:[%s5143_s1 + $0x1b8] sm:$0xff]  ;;  %v78_v1 = vld [vmem:[%s5143_s1 + $0x1b0] sm:$0xff]  ;;  %v534_v7 = vld [vmem:[%s5145_s2 + $0x188] sm:$0xff] }
  0x17   :  { %183 = vmatprep.subr.mxu1 %v67_v38  ;;  %871 = vmatprep.subr.mxu0 %v570_v45  ;;  %v540_v2 = vld [vmem:[%s5145_s2 + $0x1b8] sm:$0xff]  ;;  %v539_v5 = vld [vmem:[%s5145_s2 + $0x1b0] sm:$0xff]  ;;  %v533_v9 = vld [vmem:[%s5145_s2 + $0x180] sm:$0xff] }
  0x18   :  { %184 = vmatpush1.msra.mxu1 %v66_v39  ;;  %872 = vmatpush1.msra.mxu0 %v569_v46  ;;  %v71_v4 = vld [vmem:[%s5143_s1 + $0x178] sm:$0xff]  ;;  %v70_v6 = vld [vmem:[%s5143_s1 + $0x170] sm:$0xff]  ;;  %v522_v15 = vld [vmem:[%s5145_s2 + $0x128] sm:$0xff] }
  0x19   :  { %185 = vmatprep.subr.mxu1 %v59_v40  ;;  %873 = vmatprep.subr.mxu0 %v564_v48  ;;  %v63_v8 = vld [vmem:[%s5143_s1 + $0x138] sm:$0xff]  ;;  %v62_v10 = vld [vmem:[%s5143_s1 + $0x130] sm:$0xff]  ;;  %v521_v17 = vld [vmem:[%s5145_s2 + $0x120] sm:$0xff] }
  0x1a   :  { %186 = vmatpush1.msra.mxu1 %v58_v41  ;;  %874 = vmatpush1.msra.mxu0 %v563_v50  ;;  %v528_v11 = vld [vmem:[%s5145_s2 + $0x158] sm:$0xff]  ;;  %v527_v13 = vld [vmem:[%s5145_s2 + $0x150] sm:$0xff]  ;;  %v510_v23 = vld [vmem:[%s5145_s2 + $0xc8] sm:$0xff] }
  0x1b   :  { %187 = vmatprep.subr.mxu1 %v51_v42  ;;  %875 = vmatprep.subr.mxu0 %v558_v52  ;;  %v55_v12 = vld [vmem:[%s5143_s1 + $0xf8] sm:$0xff]  ;;  %v54_v14 = vld [vmem:[%s5143_s1 + $0xf0] sm:$0xff]  ;;  %v509_v25 = vld [vmem:[%s5145_s2 + $0xc0] sm:$0xff] }
  0x1c   :  { %188 = vmatpush1.msra.mxu1 %v50_v47  ;;  %876 = vmatpush1.msra.mxu0 %v557_v54  ;;  %v47_v16 = vld [vmem:[%s5143_s1 + $0xb8] sm:$0xff]  ;;  %v46_v18 = vld [vmem:[%s5143_s1 + $0xb0] sm:$0xff]  ;;  %v498_v29 = vld [vmem:[%s5145_s2 + $0x68] sm:$0xff] }
  0x1d   :  { %189 = vmatprep.subr.mxu1 %v43_v49  ;;  %877 = vmatprep.subr.mxu0 %v552_v56  ;;  %v516_v19 = vld [vmem:[%s5145_s2 + $0xf8] sm:$0xff]  ;;  %v515_v21 = vld [vmem:[%s5145_s2 + $0xf0] sm:$0xff]  ;;  %v497_v31 = vld [vmem:[%s5145_s2 + $0x60] sm:$0xff] }
  0x1e   :  { %190 = vmatpush1.msra.mxu1 %v42_v51  ;;  %878 = vmatpush1.msra.mxu0 %v551_v58  ;;  %v39_v20 = vld [vmem:[%s5143_s1 + $0x78] sm:$0xff]  ;;  %v38_v22 = vld [vmem:[%s5143_s1 + $0x70] sm:$0xff]  ;;  %v762_v35 = vld [vmem:[%s5145_s2 + $0x8a8] sm:$0xff] }
  0x1f   :  { %191 = vmatprep.subr.mxu1 %v35_v53  ;;  %879 = vmatprep.subr.mxu0 %v546_v60  ;;  %v31_v24 = vld [vmem:[%s5143_s1 + $0x38] sm:$0xff]  ;;  %v30_v26 = vld [vmem:[%s5143_s1 + $0x30] sm:$0xff]  ;;  %v761_v37 = vld [vmem:[%s5145_s2 + $0x8a0] sm:$0xff] }
  0x20   :  { %192 = vmatpush1.msra.mxu1 %v34_v55  ;;  %880 = vmatpush1.msra.mxu0 %v545_v0  ;;  %v504_v27 = vld [vmem:[%s5145_s2 + $0x98] sm:$0xff]  ;;  %v503_v28 = vld [vmem:[%s5145_s2 + $0x90] sm:$0xff]  ;;  %v485_v39 = vld [vmem:[%s5145_s2] sm:$0xff] }
  0x21   :  { %193 = vmatprep.subr.mxu1 %v27_v57  ;;  %881 = vmatprep.subr.mxu0 %v540_v2  ;;  %v768_v30 = vld [vmem:[%s5145_s2 + $0x8d8] sm:$0xff]  ;;  %v767_v32 = vld [vmem:[%s5145_s2 + $0x8d0] sm:$0xff]  ;;  %v750_v42 = vld [vmem:[%s5145_s2 + $0x848] sm:$0xff] }
  0x22   :  { %194 = vmatpush1.msra.mxu1 %v26_v59  ;;  %882 = vmatpush1.msra.mxu0 %v539_v5  ;;  %v492_v34 = vld [vmem:[%s5145_s2 + $0x38] sm:$0xff]  ;;  %v491_v36 = vld [vmem:[%s5145_s2 + $0x30] sm:$0xff]  ;;  %v749_v44 = vld [vmem:[%s5145_s2 + $0x840] sm:$0xff] }
  0x23   :  { %2376 = vmatmul.mubr.msk.f32.vlgmr.msra.gmra.mxu1 %vm88_vm0, %v2736_v33  ;;  %321 = vmatprep.subr.mxu1 %v87_v61  ;;  %v756_v38 = vld [vmem:[%s5145_s2 + $0x878] sm:$0xff]  ;;  %v755_v40 = vld [vmem:[%s5145_s2 + $0x870] sm:$0xff]  ;;  %v666_v45 = vld [vmem:[%s5145_s2 + $0x5a8] sm:$0xff] }
  0x24   :  { %322 = vmatpush1.msra.mxu1 %v86_v62  ;;  %369 = vmatprep.mubr.f32.mxu1 %v2598_v3  ;;  %v672_v41 = vld [vmem:[%s5145_s2 + $0x5d8] sm:$0xff]  ;;  %v671_v43 = vld [vmem:[%s5145_s2 + $0x5d0] sm:$0xff]  ;;  %v665_v47 = vld [vmem:[%s5145_s2 + $0x5a0] sm:$0xff] }
  0x25   :  { %323 = vmatprep.subr.mxu1 %v79_v63  ;;  %883 = vmatprep.subr.mxu0 %v534_v7  ;;  %v744_v46 = vld [vmem:[%s5145_s2 + $0x818] sm:$0xff]  ;;  %v743_v48 = vld [vmem:[%s5145_s2 + $0x810] sm:$0xff]  ;;  %v738_v50 = vld [vmem:[%s5145_s2 + $0x7e8] sm:$0xff] }
  0x26   :  { %324 = vmatpush1.msra.mxu1 %v78_v1  ;;  %884 = vmatpush1.msra.mxu0 %v533_v9  ;;  %v660_v49 = vld [vmem:[%s5145_s2 + $0x578] sm:$0xff]  ;;  %v659_v51 = vld [vmem:[%s5145_s2 + $0x570] sm:$0xff]  ;;  %v737_v52 = vld [vmem:[%s5145_s2 + $0x7e0] sm:$0xff] }
  0x27   :  { %325 = vmatprep.subr.mxu1 %v71_v4  ;;  %885 = vmatprep.subr.mxu0 %v528_v11  ;;  %v654_v53 = vld [vmem:[%s5145_s2 + $0x548] sm:$0xff]  ;;  %v732_v54 = vld [vmem:[%s5145_s2 + $0x7b8] sm:$0xff]  ;;  %v653_v55 = vld [vmem:[%s5145_s2 + $0x540] sm:$0xff] }
  0x28   :  { %326 = vmatpush1.msra.mxu1 %v70_v6  ;;  %886 = vmatpush1.msra.mxu0 %v527_v13  ;;  %v731_v56 = vld [vmem:[%s5145_s2 + $0x7b0] sm:$0xff]  ;;  %v648_v57 = vld [vmem:[%s5145_s2 + $0x518] sm:$0xff]  ;;  %v726_v58 = vld [vmem:[%s5145_s2 + $0x788] sm:$0xff] }
  0x29   :  { %327 = vmatprep.subr.mxu1 %v63_v8  ;;  %887 = vmatprep.subr.mxu0 %v522_v15  ;;  %v647_v59 = vld [vmem:[%s5145_s2 + $0x510] sm:$0xff]  ;;  %v725_v60 = vld [vmem:[%s5145_s2 + $0x780] sm:$0xff]  ;;  %v642_v61 = vld [vmem:[%s5145_s2 + $0x4e8] sm:$0xff] }
  0x2a   :  { %328 = vmatpush1.msra.mxu1 %v62_v10  ;;  %888 = vmatpush1.msra.mxu0 %v521_v17  ;;  %v720_v62 = vld [vmem:[%s5145_s2 + $0x758] sm:$0xff]  ;;  %v641_v63 = vld [vmem:[%s5145_s2 + $0x4e0] sm:$0xff]  ;;  %v719_v0 = vld [vmem:[%s5145_s2 + $0x750] sm:$0xff] }
  0x2b   :  { %329 = vmatprep.subr.mxu1 %v55_v12  ;;  %889 = vmatprep.subr.mxu0 %v516_v19  ;;  %v636_v1 = vld [vmem:[%s5145_s2 + $0x4b8] sm:$0xff]  ;;  %v714_v2 = vld [vmem:[%s5145_s2 + $0x728] sm:$0xff]  ;;  %v635_v4 = vld [vmem:[%s5145_s2 + $0x4b0] sm:$0xff] }
  0x2c   :  { %330 = vmatpush1.msra.mxu1 %v54_v14  ;;  %890 = vmatpush1.msra.mxu0 %v515_v21  ;;  %v713_v5 = vld [vmem:[%s5145_s2 + $0x720] sm:$0xff]  ;;  %v630_v6 = vld [vmem:[%s5145_s2 + $0x488] sm:$0xff]  ;;  %v708_v7 = vld [vmem:[%s5145_s2 + $0x6f8] sm:$0xff] }
  0x2d   :  { %331 = vmatprep.subr.mxu1 %v47_v16  ;;  %891 = vmatprep.subr.mxu0 %v510_v23  ;;  %v629_v8 = vld [vmem:[%s5145_s2 + $0x480] sm:$0xff]  ;;  %v707_v9 = vld [vmem:[%s5145_s2 + $0x6f0] sm:$0xff]  ;;  %v624_v10 = vld [vmem:[%s5145_s2 + $0x458] sm:$0xff] }
  0x2e   :  { %332 = vmatpush1.msra.mxu1 %v46_v18  ;;  %892 = vmatpush1.msra.mxu0 %v509_v25  ;;  %v702_v11 = vld [vmem:[%s5145_s2 + $0x6c8] sm:$0xff]  ;;  %v623_v12 = vld [vmem:[%s5145_s2 + $0x450] sm:$0xff]  ;;  %v617_v14 = vld [vmem:[%s5145_s2 + $0x420] sm:$0xff] }
  0x2f   :  { %333 = vmatprep.subr.mxu1 %v39_v20  ;;  %893 = vmatprep.subr.mxu0 %v504_v27  ;;  %v618_v13 = vld [vmem:[%s5145_s2 + $0x428] sm:$0xff]  ;;  %v612_v15 = vld [vmem:[%s5145_s2 + $0x3f8] sm:$0xff]  ;;  %v611_v16 = vld [vmem:[%s5145_s2 + $0x3f0] sm:$0xff] }
  0x30   :  { %334 = vmatpush1.msra.mxu1 %v38_v22  ;;  %894 = vmatpush1.msra.mxu0 %v503_v28  ;;  %v606_v17 = vld [vmem:[%s5145_s2 + $0x3c8] sm:$0xff]  ;;  %v605_v18 = vld [vmem:[%s5145_s2 + $0x3c0] sm:$0xff]  ;;  %v600_v20 = vld [vmem:[%s5145_s2 + $0x398] sm:$0xff] }
  0x31   :  { %335 = vmatprep.subr.mxu1 %v31_v24  ;;  %895 = vmatprep.subr.mxu0 %v498_v29  ;;  %v701_v19 = vld [vmem:[%s5145_s2 + $0x6c0] sm:$0xff]  ;;  %v696_v21 = vld [vmem:[%s5145_s2 + $0x698] sm:$0xff]  ;;  %v599_v22 = vld [vmem:[%s5145_s2 + $0x390] sm:$0xff] }
  0x32   :  { %336 = vmatpush1.msra.mxu1 %v30_v26  ;;  %896 = vmatpush1.msra.mxu0 %v497_v31  ;;  %v695_v23 = vld [vmem:[%s5145_s2 + $0x690] sm:$0xff]  ;;  %v594_v24 = vld [vmem:[%s5145_s2 + $0x368] sm:$0xff]  ;;  %v593_v26 = vld [vmem:[%s5145_s2 + $0x360] sm:$0xff] }
  0x33   :  { %2378 = vmatmul.mubr.msk.f32.vlgmr.msra.gmra.mxu1 %vm88_vm0, %v2736_v33  ;;  %940 = vmatprep.subr.mxu1 %v768_v30  ;;  %v486_v33 = vld [vmem:[%s5145_s2 + $0x8] sm:$0xff]  ;;  %v689_v27 = vld [vmem:[%s5145_s2 + $0x660] sm:$0xff]  ;;  %v588_v28 = vld [vmem:[%s5145_s2 + $0x338] sm:$0xff] }
  0x34   :  { %941 = vmatpush1.msra.mxu1 %v767_v32  ;;  %897 = vmatprep.subr.mxu0 %v492_v34  ;;  %v690_v25 = vld [vmem:[%s5145_s2 + $0x668] sm:$0xff]  ;;  %v684_v29 = vld [vmem:[%s5145_s2 + $0x638] sm:$0xff]  ;;  %v587_v30 = vld [vmem:[%s5145_s2 + $0x330] sm:$0xff] }
  0x35   :  { %942 = vmatprep.subr.mxu1 %v762_v35  ;;  %898 = vmatpush1.msra.mxu0 %v491_v36  ;;  %v683_v31 = vld [vmem:[%s5145_s2 + $0x630] sm:$0xff]  ;;  %v582_v32 = vld [vmem:[%s5145_s2 + $0x308] sm:$0xff]  ;;  %v581_v35 = vld [vmem:[%s5145_s2 + $0x300] sm:$0xff] }
  0x36   :  { %943 = vmatpush1.msra.mxu1 %v761_v37  ;;  %899 = vmatprep.subr.mxu0 %v486_v33  ;;  %v678_v34 = vld [vmem:[%s5145_s2 + $0x608] sm:$0xff]  ;;  %v677_v36 = vld [vmem:[%s5145_s2 + $0x600] sm:$0xff]  ;;  %v864_v37 = vld [vmem:[%s5145_s2 + $0xbd8] sm:$0xff] }
  0x37   :  { %944 = vmatprep.subr.mxu1 %v756_v38  ;;  %900 = vmatpush1.msra.mxu0 %v485_v39  ;;  %v578_v33 = vld [vmem:[%s5145_s2 + $0x2e8] sm:$0xff]  ;;  %v863_v38 = vld [vmem:[%s5145_s2 + $0xbd0] sm:$0xff] }
  0x38   :  { %945 = vmatpush1.msra.mxu1 %v755_v40  ;;  %901 = vmatprep.subr.mxu0 %v672_v41  ;;  %v858_v39 = vld [vmem:[%s5145_s2 + $0xba8] sm:$0xff]  ;;  %v857_v40 = vld [vmem:[%s5145_s2 + $0xba0] sm:$0xff]  ;;  %v852_v41 = vld [vmem:[%s5145_s2 + $0xb78] sm:$0xff] }
  0x39   :  { %946 = vmatprep.subr.mxu1 %v750_v42  ;;  %902 = vmatpush2.msra.mxu0 %v671_v43  ;;  %v851_v42 = vld [vmem:[%s5145_s2 + $0xb70] sm:$0xff]  ;;  %v846_v43 = vld [vmem:[%s5145_s2 + $0xb48] sm:$0xff] }
  0x3a   :  { %947 = vmatpush1.msra.mxu1 %v749_v44  ;;  %903 = vmatprep.subr.mxu0 %v666_v45  ;;  %v845_v44 = vld [vmem:[%s5145_s2 + $0xb40] sm:$0xff]  ;;  %v840_v45 = vld [vmem:[%s5145_s2 + $0xb18] sm:$0xff] }
  0x3b   :  { %948 = vmatprep.subr.mxu1 %v744_v46  ;;  %904 = vmatpush2.msra.mxu0 %v665_v47  ;;  %v839_v46 = vld [vmem:[%s5145_s2 + $0xb10] sm:$0xff]  ;;  %v834_v47 = vld [vmem:[%s5145_s2 + $0xae8] sm:$0xff] }
  0x3c   :  { %949 = vmatpush1.msra.mxu1 %v743_v48  ;;  %905 = vmatprep.subr.mxu0 %v660_v49  ;;  %v833_v48 = vld [vmem:[%s5145_s2 + $0xae0] sm:$0xff]  ;;  %v828_v49 = vld [vmem:[%s5145_s2 + $0xab8] sm:$0xff] }
  0x3d   :  { %950 = vmatprep.subr.mxu1 %v738_v50  ;;  %906 = vmatpush2.msra.mxu0 %v659_v51  ;;  %v827_v50 = vld [vmem:[%s5145_s2 + $0xab0] sm:$0xff]  ;;  %v822_v51 = vld [vmem:[%s5145_s2 + $0xa88] sm:$0xff] }
  0x3e   :  { %951 = vmatpush1.msra.mxu1 %v737_v52  ;;  %907 = vmatprep.subr.mxu0 %v654_v53  ;;  %v821_v52 = vld [vmem:[%s5145_s2 + $0xa80] sm:$0xff]  ;;  %v816_v53 = vld [vmem:[%s5145_s2 + $0xa58] sm:$0xff] }
  0x3f   :  { %952 = vmatprep.subr.mxu1 %v732_v54  ;;  %908 = vmatpush2.msra.mxu0 %v653_v55  ;;  %v815_v54 = vld [vmem:[%s5145_s2 + $0xa50] sm:$0xff]  ;;  %v810_v55 = vld [vmem:[%s5145_s2 + $0xa28] sm:$0xff] }
  0x40   :  { %953 = vmatpush1.msra.mxu1 %v731_v56  ;;  %909 = vmatprep.subr.mxu0 %v648_v57  ;;  %v809_v56 = vld [vmem:[%s5145_s2 + $0xa20] sm:$0xff]  ;;  %v804_v57 = vld [vmem:[%s5145_s2 + $0x9f8] sm:$0xff] }
  0x41   :  { %954 = vmatprep.subr.mxu1 %v726_v58  ;;  %910 = vmatpush2.msra.mxu0 %v647_v59  ;;  %v803_v58 = vld [vmem:[%s5145_s2 + $0x9f0] sm:$0xff]  ;;  %v798_v59 = vld [vmem:[%s5145_s2 + $0x9c8] sm:$0xff] }
  0x42   :  { %955 = vmatpush1.msra.mxu1 %v725_v60  ;;  %911 = vmatprep.subr.mxu0 %v642_v61  ;;  %v797_v60 = vld [vmem:[%s5145_s2 + $0x9c0] sm:$0xff]  ;;  %v792_v61 = vld [vmem:[%s5145_s2 + $0x998] sm:$0xff] }
  0x43   :  { %956 = vmatprep.subr.mxu1 %v720_v62  ;;  %912 = vmatpush2.msra.mxu0 %v641_v63  ;;  %v791_v62 = vld [vmem:[%s5145_s2 + $0x990] sm:$0xff]  ;;  %v786_v63 = vld [vmem:[%s5145_s2 + $0x968] sm:$0xff] }
  0x44   :  { %957 = vmatpush1.msra.mxu1 %v719_v0  ;;  %913 = vmatprep.subr.mxu0 %v636_v1  ;;  %v785_v0 = vld [vmem:[%s5145_s2 + $0x960] sm:$0xff]  ;;  %v780_v1 = vld [vmem:[%s5145_s2 + $0x938] sm:$0xff] }
  0x45   :  { %958 = vmatprep.subr.mxu1 %v714_v2  ;;  %914 = vmatpush2.msra.mxu0 %v635_v4  ;;  %v779_v2 = vld [vmem:[%s5145_s2 + $0x930] sm:$0xff]  ;;  %v774_v4 = vld [vmem:[%s5145_s2 + $0x908] sm:$0xff] }
  0x46   :  { %959 = vmatpush1.msra.mxu1 %v713_v5  ;;  %915 = vmatprep.subr.mxu0 %v630_v6  ;;  %v773_v5 = vld [vmem:[%s5145_s2 + $0x900] sm:$0xff]  ;;  %v770_v6 = vld [vmem:[%s5145_s2 + $0x8e8] sm:$0xff] }
  0x47   :  { %960 = vmatprep.subr.mxu1 %v708_v7  ;;  %916 = vmatpush2.msra.mxu0 %v629_v8  ;;  %v380_v7 = vlaneseq }
  0x48   :  { %961 = vmatpush1.msra.mxu1 %v707_v9  ;;  %917 = vmatprep.subr.mxu0 %v624_v10  ;;  %v376_v9 = vld [vmem:[%s5146_s5] ss:$8 sm:$0xf] }
  0x49   :  { %962 = vmatprep.subr.mxu1 %v702_v11  ;;  %918 = vmatpush2.msra.mxu0 %v623_v12  ;;  %v3234_v8 = vshrl.u32 %v380_v7, 7  ;;  %v377_v10 = vld [vmem:[%s5146_s5] ss:$8 sm:$0xf0] }
  0x4a   :  { %919 = vmatprep.subr.mxu0 %v618_v13  ;;  %963 = vmatpush1.msra.mxu1 %v701_v19  ;;  %v3242_v11 = vor.u32 %v377_v10, %v376_v9  ;;  %v511_v9 = vld [vmem:[%s5145_s2 + $0xd0] sm:$0xff] }
  0x4b   :  { %920 = vmatpush2.msra.mxu0 %v617_v14  ;;  %964 = vmatprep.subr.mxu1 %v696_v21  ;;  %v3245_v12 = vsub.s32 0, %v3234_v8  ;;  %v3248_v13 = vsub.s32 4, %v3234_v8  ;;  %v2379_v14 = vld [vmem:[%s5146_s5 + $0x1] ss:$8 sm:$0xf] }
  0x4c   :  { %921 = vmatprep.subr.mxu0 %v612_v15  ;;  %965 = vmatpush1.msra.mxu1 %v695_v23  ;;  %v2380_v15 = vld [vmem:[%s5146_s5 + $0x1] ss:$8 sm:$0xf0] }
  0x4d   :  { %922 = vmatpush2.msra.mxu0 %v611_v16  ;;  %966 = vmatprep.subr.mxu1 %v690_v25  ;;  %v3257_v16 = vsub.s32 1, %v3234_v8  ;;  %v3264_v19 = vor.u32 %v2380_v15, %v2379_v14 }
  0x4e   :  { %923 = vmatprep.subr.mxu0 %v606_v17  ;;  %967 = vmatpush1.msra.mxu1 %v689_v27  ;;  %v3260_v17 = vsub.s32 5, %v3234_v8 }
  0x4f   :  { %924 = vmatpush2.msra.mxu0 %v605_v18  ;;  %968 = vmatprep.subr.mxu1 %v684_v29  ;;  %v383_v18 = vrot.slane %v3242_v11, %v3245_v12  ;;  %v387_v21 = vrot.slane %v3242_v11, %v3257_v16  ;;  %v436_v25 = vrot.slane %v3264_v19, %v3245_v12 }
  0x50   :  { %925 = vmatprep.subr.mxu0 %v600_v20  ;;  %969 = vmatpush1.msra.mxu1 %v683_v31  ;;  %v399_v20 = vrot.slane %v3242_v11, %v3248_v13  ;;  %v403_v23 = vrot.slane %v3242_v11, %v3260_v17  ;;  %v452_v27 = vrot.slane %v3264_v19, %v3248_v13 }
  0x51   :  { %926 = vmatpush2.msra.mxu0 %v599_v22  ;;  %970 = vmatprep.subr.mxu1 %v678_v34  ;;  %v456_v31 = vrot.slane %v3264_v19, %v3260_v17 }
  0x52   :  { %927 = vmatprep.subr.mxu0 %v594_v24  ;;  %971 = vmatpush1.msra.mxu1 %v677_v36 }
  0x53   :  { %928 = vmatpush2.msra.mxu0 %v593_v26  ;;  %972 = vmatprep.subr.mxu1 %v864_v37 }
  0x54   :  { %929 = vmatprep.subr.mxu0 %v588_v28  ;;  %973 = vmatpush2.msra.mxu1 %v863_v38  ;;  %v440_v28 = vrot.slane %v3264_v19, %v3257_v16 }
  0x55   :  { %930 = vmatpush2.msra.mxu0 %v587_v30  ;;  %974 = vmatprep.subr.mxu1 %v858_v39 }
  0x56   :  { %931 = vmatprep.subr.mxu0 %v582_v32  ;;  %975 = vmatpush2.msra.mxu1 %v857_v40 }
  0x57   :  { %932 = vmatpush2.msra.mxu0 %v581_v35  ;;  %976 = vmatprep.subr.mxu1 %v852_v41  ;;  %v577_v41 = vld [vmem:[%s5145_s2 + $0x2e0] sm:$0xff] }
  0x58   :  { %1011 = vmatprep.subr.mxu0 %v578_v33  ;;  %977 = vmatpush2.msra.mxu1 %v851_v42  ;;  %v572_v42 = vld [vmem:[%s5145_s2 + $0x2b8] sm:$0xff] }
  0x59   :  { %978 = vmatprep.subr.mxu1 %v846_v43  ;;  %v571_v43 = vld [vmem:[%s5145_s2 + $0x2b0] sm:$0xff] }
  0x5a   :  { %979 = vmatpush2.msra.mxu1 %v845_v44  ;;  %v566_v44 = vld [vmem:[%s5145_s2 + $0x288] sm:$0xff] }
  0x5b   :  { %980 = vmatprep.subr.mxu1 %v840_v45  ;;  %v565_v45 = vld [vmem:[%s5145_s2 + $0x280] sm:$0xff] }
  0x5c   :  { %981 = vmatpush2.msra.mxu1 %v839_v46  ;;  %v560_v46 = vld [vmem:[%s5145_s2 + $0x258] sm:$0xff] }
  0x5d   :  { %982 = vmatprep.subr.mxu1 %v834_v47  ;;  %v559_v47 = vld [vmem:[%s5145_s2 + $0x250] sm:$0xff] }
  0x5e   :  { %983 = vmatpush2.msra.mxu1 %v833_v48  ;;  %v554_v48 = vld [vmem:[%s5145_s2 + $0x228] sm:$0xff] }
  0x5f   :  { %984 = vmatprep.subr.mxu1 %v828_v49  ;;  %v553_v49 = vld [vmem:[%s5145_s2 + $0x220] sm:$0xff] }
  0x60   :  { %985 = vmatpush2.msra.mxu1 %v827_v50  ;;  %v548_v50 = vld [vmem:[%s5145_s2 + $0x1f8] sm:$0xff] }
  0x61   :  { %986 = vmatprep.subr.mxu1 %v822_v51  ;;  %v547_v51 = vld [vmem:[%s5145_s2 + $0x1f0] sm:$0xff] }
  0x62   :  { %987 = vmatpush2.msra.mxu1 %v821_v52  ;;  %v542_v52 = vld [vmem:[%s5145_s2 + $0x1c8] sm:$0xff] }
  0x63   :  { %988 = vmatprep.subr.mxu1 %v816_v53  ;;  %v541_v53 = vld [vmem:[%s5145_s2 + $0x1c0] sm:$0xff] }
  0x64   :  { %989 = vmatpush2.msra.mxu1 %v815_v54  ;;  %v536_v54 = vld [vmem:[%s5145_s2 + $0x198] sm:$0xff] }
  0x65   :  { %990 = vmatprep.subr.mxu1 %v810_v55  ;;  %v535_v55 = vld [vmem:[%s5145_s2 + $0x190] sm:$0xff] }
  0x66   :  { %991 = vmatpush2.msra.mxu1 %v809_v56  ;;  %v530_v56 = vld [vmem:[%s5145_s2 + $0x168] sm:$0xff] }
  0x67   :  { %992 = vmatprep.subr.mxu1 %v804_v57  ;;  %v3336_v57 = vsub.s32 3, %v3234_v8 }
  0x68   :  { %993 = vmatpush2.msra.mxu1 %v803_v58  ;;  %v529_v58 = vld [vmem:[%s5145_s2 + $0x160] sm:$0xff] }
  0x69   :  { %994 = vmatprep.subr.mxu1 %v798_v59  ;;  %v406_v59 = vsub.s32 6, %v3234_v8 }
  0x6a   :  { %995 = vmatpush2.msra.mxu1 %v797_v60 }
  0x6b   :  { %996 = vmatprep.subr.mxu1 %v792_v61  ;;  %v3343_v61 = vsub.s32 2, %v3234_v8  ;;  %v460_v15 = vrot.slane %v3264_v19, %v406_v59 }
  0x6c   :  { %997 = vmatpush2.msra.mxu1 %v791_v62  ;;  %v524_v62 = vld [vmem:[%s5145_s2 + $0x138] sm:$0xff] }
  0x6d   :  { %998 = vmatprep.subr.mxu1 %v786_v63  ;;  %v523_v63 = vld [vmem:[%s5145_s2 + $0x130] sm:$0xff] }
  0x6e   :  { %999 = vmatpush2.msra.mxu1 %v785_v0  ;;  %v410_v0 = vsub.s32 7, %v3234_v8  ;;  %v512_v8 = vld [vmem:[%s5145_s2 + $0xd8] sm:$0xff] }
  0x6f   :  { %1000 = vmatprep.subr.mxu1 %v780_v1  ;;  %v518_v1 = vld [vmem:[%s5145_s2 + $0x108] sm:$0xff] }
  0x70   :  { %1001 = vmatpush2.msra.mxu1 %v779_v2  ;;  %v395_v2 = vrot.slane %v3242_v11, %v3336_v57  ;;  %v411_v10 = vrot.slane %v3242_v11, %v410_v0 }
  0x71   :  { %1002 = vmatprep.subr.mxu1 %v774_v4  ;;  %v517_v4 = vld [vmem:[%s5145_s2 + $0x100] sm:$0xff] }
  0x72   :  { %1003 = vmatpush2.msra.mxu1 %v773_v5  ;;  %v407_v5 = vrot.slane %v3242_v11, %v406_v59  ;;  %v649_v59 = vld [vmem:[%s5145_s2 + $0x520] sm:$0xff] }
  0x73   :  { %1082 = vmatprep.subr.mxu1 %v770_v6  ;;  %v391_v6 = vrot.slane %v3242_v11, %v3343_v61  ;;  %v505_v11 = vld [vmem:[%s5145_s2 + $0xa0] sm:$0xff] }
  0xd2   :  { %v158_v22 = vpop.f32.mrf.mxu1 }
  0xd3   :  { %v420_v24 = vmul.f32 %v383_v18, %v158_v22  ;;  %v300_v26 = vpop.f32.mrf.mxu0  ;;  %v506_v18 = vld [vmem:[%s5145_s2 + $0xa8] sm:$0xff] }
  0xd4   :  { %v424_v29 = vmul.f32 %v399_v20, %v300_v26  ;;  %v160_v30 = vpop.f32.mrf.mxu1 }
  0xd5   :  { %v421_v32 = vmul.f32 %v387_v21, %v160_v30  ;;  %v302_v34 = vpop.f32.mrf.mxu0  ;;  %v473_v36 = vadd.f32 %v436_v25, %v420_v24  ;;  %v448_v21 = vrot.slane %v3264_v19, %v3336_v57  ;;  %v444_v25 = vrot.slane %v3264_v19, %v3343_v61 }
  0xd6   :  { %v425_v35 = vmul.f32 %v403_v23, %v302_v34  ;;  %v477_v37 = vadd.f32 %v452_v27, %v424_v29  ;;  %v464_v23 = vrot.slane %v3264_v19, %v410_v0  ;;  %v500_v27 = vld [vmem:[%s5145_s2 + $0x78] sm:$0xff]  ;;  %v499_v29 = vld [vmem:[%s5145_s2 + $0x70] sm:$0xff]  ;;  %v493_v34 = vld [vmem:[%s5145_s2 + $0x40] sm:$0xff] }
  0xd7   :  { %v474_v33 = vadd.f32 %v440_v28, %v421_v32  ;;  %v643_v0 = vld [vmem:[%s5145_s2 + $0x4f0] sm:$0xff] }
  0xd8   :  { %v478_v38 = vadd.f32 %v456_v31, %v425_v35  ;;  %v3282_v40 = vmax.f32 %v473_v36, %v477_v37  ;;  %v494_v31 = vld [vmem:[%s5145_s2 + $0x48] sm:$0xff]  ;;  %v488_v36 = vld [vmem:[%s5145_s2 + $0x18] sm:$0xff]  ;;  %v487_v37 = vld [vmem:[%s5145_s2 + $0x10] sm:$0xff] }
  0xda   :  { %v3280_v39 = vmax.f32 %v474_v33, %v478_v38 }
  0xdc   :  { %933 = vmatprep.mubr.f32.mxu0 %v3280_v39 }
  0xdd   :  { %934 = vmatmul.mubr.f32.vlgmr.msra.gmra.mxu0 %v3282_v40 }
  0xde   :  { %1012 = vmatpush1.msra.mxu0 %v577_v41  ;;  %1075 = vmatprep.mubr.f32.mxu0 %v3280_v39  ;;  %v674_v41 = vld [vmem:[%s5145_s2 + $0x5e8] sm:$0xff] }
  0xdf   :  { %1013 = vmatprep.subr.mxu0 %v572_v42  ;;  %v769_v42 = vld [vmem:[%s5145_s2 + $0x8e0] sm:$0xff] }
  0xe0   :  { %1014 = vmatpush1.msra.mxu0 %v571_v43  ;;  %v673_v43 = vld [vmem:[%s5145_s2 + $0x5e0] sm:$0xff] }
  0xe1   :  { %1015 = vmatprep.subr.mxu0 %v566_v44  ;;  %v764_v44 = vld [vmem:[%s5145_s2 + $0x8b8] sm:$0xff] }
  0xe2   :  { %1016 = vmatpush1.msra.mxu0 %v565_v45  ;;  %v668_v45 = vld [vmem:[%s5145_s2 + $0x5b8] sm:$0xff] }
  0xe3   :  { %1017 = vmatprep.subr.mxu0 %v560_v46  ;;  %v229_v60 = vpop.f32.mrf.mxu1  ;;  %v667_v46 = vld [vmem:[%s5145_s2 + $0x5b0] sm:$0xff] }
  0xe4   :  { %1018 = vmatpush1.msra.mxu0 %v559_v47  ;;  %v422_v24 = vmul.f32 %v391_v6, %v229_v60  ;;  %v763_v47 = vld [vmem:[%s5145_s2 + $0x8b0] sm:$0xff]  ;;  %v745_v60 = vld [vmem:[%s5145_s2 + $0x820] sm:$0xff] }
  0xe5   :  { %1019 = vmatprep.subr.mxu0 %v554_v48  ;;  %v231_v7 = vpop.f32.mrf.mxu1  ;;  %v662_v48 = vld [vmem:[%s5145_s2 + $0x588] sm:$0xff]  ;;  %v733_v6 = vld [vmem:[%s5145_s2 + $0x7c0] sm:$0xff] }
  0xe6   :  { %1020 = vmatpush1.msra.mxu0 %v553_v49  ;;  %v423_v20 = vmul.f32 %v395_v2, %v231_v7  ;;  %v475_v35 = vadd.f32 %v444_v25, %v422_v24  ;;  %v758_v49 = vld [vmem:[%s5145_s2 + $0x888] sm:$0xff]  ;;  %v632_v7 = vld [vmem:[%s5145_s2 + $0x498] sm:$0xff] }
  0xe7   :  { %1021 = vmatprep.subr.mxu0 %v548_v50  ;;  %v661_v50 = vld [vmem:[%s5145_s2 + $0x580] sm:$0xff]  ;;  %v638_v2 = vld [vmem:[%s5145_s2 + $0x4c8] sm:$0xff] }
  0xe8   :  { %1022 = vmatpush1.msra.mxu0 %v547_v51  ;;  %v476_v32 = vadd.f32 %v448_v21, %v423_v20  ;;  %v757_v51 = vld [vmem:[%s5145_s2 + $0x880] sm:$0xff]  ;;  %v620_v21 = vld [vmem:[%s5145_s2 + $0x438] sm:$0xff]  ;;  %v614_v24 = vld [vmem:[%s5145_s2 + $0x408] sm:$0xff] }
  0xe9   :  { %1023 = vmatprep.subr.mxu0 %v542_v52  ;;  %v656_v52 = vld [vmem:[%s5145_s2 + $0x558] sm:$0xff]  ;;  %v721_v20 = vld [vmem:[%s5145_s2 + $0x760] sm:$0xff]  ;;  %v710_v25 = vld [vmem:[%s5145_s2 + $0x708] sm:$0xff] }
  0xea   :  { %1024 = vmatpush1.msra.mxu0 %v541_v53  ;;  %v752_v53 = vld [vmem:[%s5145_s2 + $0x858] sm:$0xff] }
  0xeb   :  { %1025 = vmatprep.subr.mxu0 %v536_v54  ;;  %v655_v54 = vld [vmem:[%s5145_s2 + $0x550] sm:$0xff] }
  0xec   :  { %1026 = vmatpush1.msra.mxu0 %v535_v55  ;;  %v751_v55 = vld [vmem:[%s5145_s2 + $0x850] sm:$0xff] }
  0xed   :  { %1027 = vmatprep.subr.mxu0 %v530_v56  ;;  %v650_v56 = vld [vmem:[%s5145_s2 + $0x528] sm:$0xff] }
  0xee   :  { %1028 = vmatpush1.msra.mxu0 %v529_v58  ;;  %v746_v58 = vld [vmem:[%s5145_s2 + $0x828] sm:$0xff] }
  0xef   :  { %1029 = vmatprep.subr.mxu0 %v524_v62  ;;  %v644_v62 = vld [vmem:[%s5145_s2 + $0x4f8] sm:$0xff] }
  0xf0   :  { %1030 = vmatpush1.msra.mxu0 %v523_v63  ;;  %v740_v63 = vld [vmem:[%s5145_s2 + $0x7f8] sm:$0xff] }
  0xf1   :  { %1031 = vmatprep.subr.mxu0 %v518_v1  ;;  %v739_v1 = vld [vmem:[%s5145_s2 + $0x7f0] sm:$0xff] }
  0xf2   :  { %1032 = vmatpush1.msra.mxu0 %v517_v4  ;;  %v734_v4 = vld [vmem:[%s5145_s2 + $0x7c8] sm:$0xff] }
  0xf3   :  { %v371_v14 = vpop.f32.mrf.mxu1  ;;  %1033 = vmatprep.subr.mxu0 %v512_v8  ;;  %v728_v8 = vld [vmem:[%s5145_s2 + $0x798] sm:$0xff] }
  0xf4   :  { %v426_v22 = vmul.f32 %v407_v5, %v371_v14  ;;  %1034 = vmatpush1.msra.mxu0 %v511_v9  ;;  %v637_v5 = vld [vmem:[%s5145_s2 + $0x4c0] sm:$0xff]  ;;  %v631_v9 = vld [vmem:[%s5145_s2 + $0x490] sm:$0xff]  ;;  %v626_v14 = vld [vmem:[%s5145_s2 + $0x468] sm:$0xff] }
  0xf5   :  { %v373_v26 = vpop.f32.mrf.mxu1  ;;  %1035 = vmatprep.subr.mxu0 %v506_v18  ;;  %v625_v18 = vld [vmem:[%s5145_s2 + $0x460] sm:$0xff] }
  0xf6   :  { %v427_v28 = vmul.f32 %v411_v10, %v373_v26  ;;  %v479_v30 = vadd.f32 %v460_v15, %v426_v22  ;;  %1036 = vmatpush1.msra.mxu0 %v505_v11  ;;  %v727_v10 = vld [vmem:[%s5145_s2 + $0x790] sm:$0xff]  ;;  %v722_v15 = vld [vmem:[%s5145_s2 + $0x768] sm:$0xff]  ;;  %v716_v22 = vld [vmem:[%s5145_s2 + $0x738] sm:$0xff] }
  0xf7   :  { %1037 = vmatprep.subr.mxu0 %v500_v27  ;;  %v715_v11 = vld [vmem:[%s5145_s2 + $0x730] sm:$0xff]  ;;  %v613_v26 = vld [vmem:[%s5145_s2 + $0x400] sm:$0xff] }
  0xf8   :  { %v480_v19 = vadd.f32 %v464_v23, %v427_v28  ;;  %1038 = vmatpush1.msra.mxu0 %v499_v29  ;;  %v3402_v38 = vmax.f32 %v475_v35, %v479_v30  ;;  %v619_v23 = vld [vmem:[%s5145_s2 + $0x430] sm:$0xff]  ;;  %v709_v27 = vld [vmem:[%s5145_s2 + $0x700] sm:$0xff]  ;;  %v608_v28 = vld [vmem:[%s5145_s2 + $0x3d8] sm:$0xff] }
  0xf9   :  { %1039 = vmatprep.subr.mxu0 %v494_v31  ;;  %v704_v29 = vld [vmem:[%s5145_s2 + $0x6d8] sm:$0xff]  ;;  %v607_v30 = vld [vmem:[%s5145_s2 + $0x3d0] sm:$0xff]  ;;  %v697_v35 = vld [vmem:[%s5145_s2 + $0x6a0] sm:$0xff] }
  0xfa   :  { %v3400_v33 = vmax.f32 %v476_v32, %v480_v19  ;;  %1040 = vmatpush1.msra.mxu0 %v493_v34  ;;  %v703_v31 = vld [vmem:[%s5145_s2 + $0x6d0] sm:$0xff]  ;;  %v602_v32 = vld [vmem:[%s5145_s2 + $0x3a8] sm:$0xff]  ;;  %v601_v34 = vld [vmem:[%s5145_s2 + $0x3a0] sm:$0xff] }
  0xfb   :  { %1041 = vmatprep.subr.mxu0 %v488_v36  ;;  %v698_v19 = vld [vmem:[%s5145_s2 + $0x6a8] sm:$0xff]  ;;  %v596_v36 = vld [vmem:[%s5145_s2 + $0x378] sm:$0xff] }
  0xfc   :  { %1004 = vmatprep.mubr.f32.mxu1 %v3400_v33  ;;  %1042 = vmatpush1.msra.mxu0 %v487_v37  ;;  %v692_v37 = vld [vmem:[%s5145_s2 + $0x678] sm:$0xff] }
  0xfd   :  { %1005 = vmatmul.mubr.f32.vlgmr.msra.gmra.mxu1 %v3402_v38  ;;  %1043 = vmatprep.subr.mxu0 %v674_v41  ;;  %v595_v41 = vld [vmem:[%s5145_s2 + $0x370] sm:$0xff] }
  0xfe   :  { %1083 = vmatpush1.msra.mxu1 %v769_v42  ;;  %1044 = vmatpush2.msra.mxu0 %v673_v43  ;;  %v691_v42 = vld [vmem:[%s5145_s2 + $0x670] sm:$0xff]  ;;  %v590_v43 = vld [vmem:[%s5145_s2 + $0x348] sm:$0xff] }
  0xff   :  { %1084 = vmatprep.subr.mxu1 %v764_v44  ;;  %1045 = vmatprep.subr.mxu0 %v668_v45  ;;  %v686_v44 = vld [vmem:[%s5145_s2 + $0x648] sm:$0xff]  ;;  %v589_v45 = vld [vmem:[%s5145_s2 + $0x340] sm:$0xff] }
 0x100   :  { %1146 = vmatprep.mubr.f32.mxu1 %v3400_v33  ;;  %1046 = vmatpush2.msra.mxu0 %v667_v46  ;;  %v685_v46 = vld [vmem:[%s5145_s2 + $0x640] sm:$0xff] }
 0x101   :  { %1085 = vmatpush1.msra.mxu1 %v763_v47  ;;  %1047 = vmatprep.subr.mxu0 %v662_v48  ;;  %v584_v47 = vld [vmem:[%s5145_s2 + $0x318] sm:$0xff] }
 0x102   :  { %1086 = vmatprep.subr.mxu1 %v758_v49  ;;  %1048 = vmatpush2.msra.mxu0 %v661_v50  ;;  %v680_v48 = vld [vmem:[%s5145_s2 + $0x618] sm:$0xff]  ;;  %v583_v49 = vld [vmem:[%s5145_s2 + $0x310] sm:$0xff] }
 0x103   :  { %1087 = vmatpush1.msra.mxu1 %v757_v51  ;;  %1049 = vmatprep.subr.mxu0 %v656_v52  ;;  %v679_v50 = vld [vmem:[%s5145_s2 + $0x610] sm:$0xff]  ;;  %v866_v51 = vld [vmem:[%s5145_s2 + $0xbe8] sm:$0xff]  ;;  %v580_v52 = vld [vmem:[%s5145_s2 + $0x2f8] sm:$0xff] }
 0x104   :  { %1088 = vmatprep.subr.mxu1 %v752_v53  ;;  %1050 = vmatpush2.msra.mxu0 %v655_v54  ;;  %v865_v53 = vld [vmem:[%s5145_s2 + $0xbe0] sm:$0xff]  ;;  %v579_v54 = vld [vmem:[%s5145_s2 + $0x2f0] sm:$0xff] }
 0x105   :  { %1089 = vmatpush1.msra.mxu1 %v751_v55  ;;  %1051 = vmatprep.subr.mxu0 %v650_v56  ;;  %v860_v55 = vld [vmem:[%s5145_s2 + $0xbb8] sm:$0xff]  ;;  %v574_v56 = vld [vmem:[%s5145_s2 + $0x2c8] sm:$0xff] }
 0x106   :  { %1090 = vmatprep.subr.mxu1 %v746_v58  ;;  %1052 = vmatpush2.msra.mxu0 %v649_v59  ;;  %v859_v58 = vld [vmem:[%s5145_s2 + $0xbb0] sm:$0xff]  ;;  %v573_v59 = vld [vmem:[%s5145_s2 + $0x2c0] sm:$0xff] }
 0x107   :  { %1091 = vmatpush1.msra.mxu1 %v745_v60  ;;  %1053 = vmatprep.subr.mxu0 %v644_v62  ;;  %v854_v60 = vld [vmem:[%s5145_s2 + $0xb88] sm:$0xff]  ;;  %v568_v62 = vld [vmem:[%s5145_s2 + $0x298] sm:$0xff] }
 0x108   :  { %1092 = vmatprep.subr.mxu1 %v740_v63  ;;  %1054 = vmatpush2.msra.mxu0 %v643_v0  ;;  %v853_v63 = vld [vmem:[%s5145_s2 + $0xb80] sm:$0xff]  ;;  %v567_v0 = vld [vmem:[%s5145_s2 + $0x290] sm:$0xff] }
 0x109   :  { %1093 = vmatpush1.msra.mxu1 %v739_v1  ;;  %1055 = vmatprep.subr.mxu0 %v638_v2  ;;  %v562_v1 = vld [vmem:[%s5145_s2 + $0x268] sm:$0xff]  ;;  %v847_v2 = vld [vmem:[%s5145_s2 + $0xb50] sm:$0xff] }
 0x10a   :  { %1094 = vmatprep.subr.mxu1 %v734_v4  ;;  %1056 = vmatpush2.msra.mxu0 %v637_v5  ;;  %v561_v4 = vld [vmem:[%s5145_s2 + $0x260] sm:$0xff]  ;;  %v842_v5 = vld [vmem:[%s5145_s2 + $0xb28] sm:$0xff] }
 0x10b   :  { %1095 = vmatpush1.msra.mxu1 %v733_v6  ;;  %1057 = vmatprep.subr.mxu0 %v632_v7  ;;  %v556_v6 = vld [vmem:[%s5145_s2 + $0x238] sm:$0xff]  ;;  %v841_v7 = vld [vmem:[%s5145_s2 + $0xb20] sm:$0xff] }
 0x10c   :  { %1096 = vmatprep.subr.mxu1 %v728_v8  ;;  %1058 = vmatpush2.msra.mxu0 %v631_v9  ;;  %v555_v8 = vld [vmem:[%s5145_s2 + $0x230] sm:$0xff]  ;;  %v836_v9 = vld [vmem:[%s5145_s2 + $0xaf8] sm:$0xff] }
 0x10d   :  { %1097 = vmatpush1.msra.mxu1 %v727_v10  ;;  %1059 = vmatprep.subr.mxu0 %v626_v14  ;;  %v550_v10 = vld [vmem:[%s5145_s2 + $0x208] sm:$0xff]  ;;  %v835_v14 = vld [vmem:[%s5145_s2 + $0xaf0] sm:$0xff] }
 0x10e   :  { %1098 = vmatprep.subr.mxu1 %v722_v15  ;;  %1060 = vmatpush2.msra.mxu0 %v625_v18  ;;  %v549_v15 = vld [vmem:[%s5145_s2 + $0x200] sm:$0xff]  ;;  %v830_v18 = vld [vmem:[%s5145_s2 + $0xac8] sm:$0xff] }
 0x10f   :  { %1099 = vmatpush1.msra.mxu1 %v721_v20  ;;  %1061 = vmatprep.subr.mxu0 %v620_v21  ;;  %v544_v20 = vld [vmem:[%s5145_s2 + $0x1d8] sm:$0xff]  ;;  %v829_v21 = vld [vmem:[%s5145_s2 + $0xac0] sm:$0xff] }
 0x110   :  { %1100 = vmatprep.subr.mxu1 %v716_v22  ;;  %1062 = vmatpush2.msra.mxu0 %v619_v23  ;;  %v543_v22 = vld [vmem:[%s5145_s2 + $0x1d0] sm:$0xff]  ;;  %v824_v23 = vld [vmem:[%s5145_s2 + $0xa98] sm:$0xff] }
 0x111   :  { %1101 = vmatpush1.msra.mxu1 %v715_v11  ;;  %1063 = vmatprep.subr.mxu0 %v614_v24  ;;  %v538_v11 = vld [vmem:[%s5145_s2 + $0x1a8] sm:$0xff]  ;;  %v823_v24 = vld [vmem:[%s5145_s2 + $0xa90] sm:$0xff] }
 0x112   :  { %1102 = vmatprep.subr.mxu1 %v710_v25  ;;  %1064 = vmatpush2.msra.mxu0 %v613_v26  ;;  %v537_v25 = vld [vmem:[%s5145_s2 + $0x1a0] sm:$0xff]  ;;  %v818_v26 = vld [vmem:[%s5145_s2 + $0xa68] sm:$0xff] }
 0x113   :  { %1103 = vmatpush1.msra.mxu1 %v709_v27  ;;  %1065 = vmatprep.subr.mxu0 %v608_v28  ;;  %v532_v27 = vld [vmem:[%s5145_s2 + $0x178] sm:$0xff]  ;;  %v817_v28 = vld [vmem:[%s5145_s2 + $0xa60] sm:$0xff] }
 0x114   :  { %1104 = vmatprep.subr.mxu1 %v704_v29  ;;  %1066 = vmatpush2.msra.mxu0 %v607_v30  ;;  %v531_v29 = vld [vmem:[%s5145_s2 + $0x170] sm:$0xff]  ;;  %v812_v30 = vld [vmem:[%s5145_s2 + $0xa38] sm:$0xff] }
 0x115   :  { %1105 = vmatpush1.msra.mxu1 %v703_v31  ;;  %1067 = vmatprep.subr.mxu0 %v602_v32  ;;  %v526_v31 = vld [vmem:[%s5145_s2 + $0x148] sm:$0xff]  ;;  %v811_v32 = vld [vmem:[%s5145_s2 + $0xa30] sm:$0xff] }
 0x116   :  { %1106 = vmatprep.subr.mxu1 %v698_v19  ;;  %1068 = vmatpush2.msra.mxu0 %v601_v34  ;;  %v525_v19 = vld [vmem:[%s5145_s2 + $0x140] sm:$0xff]  ;;  %v806_v34 = vld [vmem:[%s5145_s2 + $0xa08] sm:$0xff] }
 0x117   :  { %1107 = vmatpush1.msra.mxu1 %v697_v35  ;;  %1069 = vmatprep.subr.mxu0 %v596_v36  ;;  %v520_v35 = vld [vmem:[%s5145_s2 + $0x118] sm:$0xff]  ;;  %v805_v36 = vld [vmem:[%s5145_s2 + $0xa00] sm:$0xff] }
 0x118   :  { %1108 = vmatprep.subr.mxu1 %v692_v37  ;;  %1070 = vmatpush2.msra.mxu0 %v595_v41  ;;  %v519_v37 = vld [vmem:[%s5145_s2 + $0x110] sm:$0xff]  ;;  %v800_v41 = vld [vmem:[%s5145_s2 + $0x9d8] sm:$0xff] }
 0x119   :  { %1109 = vmatpush1.msra.mxu1 %v691_v42  ;;  %1071 = vmatprep.subr.mxu0 %v590_v43  ;;  %v514_v42 = vld [vmem:[%s5145_s2 + $0xe8] sm:$0xff]  ;;  %v799_v43 = vld [vmem:[%s5145_s2 + $0x9d0] sm:$0xff] }
 0x11a   :  { %1110 = vmatprep.subr.mxu1 %v686_v44  ;;  %1072 = vmatpush2.msra.mxu0 %v589_v45  ;;  %v513_v44 = vld [vmem:[%s5145_s2 + $0xe0] sm:$0xff]  ;;  %v794_v45 = vld [vmem:[%s5145_s2 + $0x9a8] sm:$0xff] }
 0x11b   :  { %1111 = vmatpush1.msra.mxu1 %v685_v46  ;;  %1073 = vmatprep.subr.mxu0 %v584_v47  ;;  %v508_v46 = vld [vmem:[%s5145_s2 + $0xb8] sm:$0xff]  ;;  %v793_v47 = vld [vmem:[%s5145_s2 + $0x9a0] sm:$0xff] }
 0x11c   :  { %1112 = vmatprep.subr.mxu1 %v680_v48  ;;  %1074 = vmatpush2.msra.mxu0 %v583_v49  ;;  %v507_v48 = vld [vmem:[%s5145_s2 + $0xb0] sm:$0xff]  ;;  %v788_v49 = vld [vmem:[%s5145_s2 + $0x978] sm:$0xff] }
 0x11d   :  { %1113 = vmatpush1.msra.mxu1 %v679_v50  ;;  %1076 = vmatmul.mubr.f32.vlgmr.msra.gmra.mxu0 %v3282_v40  ;;  %v502_v50 = vld [vmem:[%s5145_s2 + $0x88] sm:$0xff] }
 0x11e   :  { %1114 = vmatprep.subr.mxu1 %v866_v51  ;;  %1153 = vmatprep.subr.mxu0 %v580_v52  ;;  %v787_v51 = vld [vmem:[%s5145_s2 + $0x970] sm:$0xff]  ;;  %v501_v52 = vld [vmem:[%s5145_s2 + $0x80] sm:$0xff] }
 0x11f   :  { %1115 = vmatpush2.msra.mxu1 %v865_v53  ;;  %1154 = vmatpush1.msra.mxu0 %v579_v54  ;;  %v782_v53 = vld [vmem:[%s5145_s2 + $0x948] sm:$0xff]  ;;  %v496_v54 = vld [vmem:[%s5145_s2 + $0x58] sm:$0xff] }
 0x120   :  { %1217 = vmatprep.mubr.f32.mxu0 %v3280_v39  ;;  %1116 = vmatprep.subr.mxu1 %v860_v55  ;;  %v848_v39 = vld [vmem:[%s5145_s2 + $0xb58] sm:$0xff]  ;;  %v781_v55 = vld [vmem:[%s5145_s2 + $0x940] sm:$0xff] }
 0x121   :  { %1155 = vmatprep.subr.mxu0 %v574_v56  ;;  %1117 = vmatpush2.msra.mxu1 %v859_v58  ;;  %v495_v56 = vld [vmem:[%s5145_s2 + $0x50] sm:$0xff]  ;;  %v776_v58 = vld [vmem:[%s5145_s2 + $0x918] sm:$0xff] }
 0x122   :  { %1156 = vmatpush1.msra.mxu0 %v573_v59  ;;  %1118 = vmatprep.subr.mxu1 %v854_v60  ;;  %v490_v59 = vld [vmem:[%s5145_s2 + $0x28] sm:$0xff]  ;;  %v775_v60 = vld [vmem:[%s5145_s2 + $0x910] sm:$0xff] }
 0x123   :  { %1157 = vmatprep.subr.mxu0 %v568_v62  ;;  %1119 = vmatpush2.msra.mxu1 %v853_v63  ;;  %v489_v62 = vld [vmem:[%s5145_s2 + $0x20] sm:$0xff]  ;;  %v676_v63 = vld [vmem:[%s5145_s2 + $0x5f8] sm:$0xff] }
 0x124   :  { %1158 = vmatpush1.msra.mxu0 %v567_v0  ;;  %1120 = vmatprep.subr.mxu1 %v848_v39  ;;  %v772_v0 = vld [vmem:[%s5145_s2 + $0x8f8] sm:$0xff]  ;;  %v675_v39 = vld [vmem:[%s5145_s2 + $0x5f0] sm:$0xff] }
 0x125   :  { %1159 = vmatprep.subr.mxu0 %v562_v1  ;;  %1121 = vmatpush2.msra.mxu1 %v847_v2  ;;  %v771_v1 = vld [vmem:[%s5145_s2 + $0x8f0] sm:$0xff]  ;;  %v670_v2 = vld [vmem:[%s5145_s2 + $0x5c8] sm:$0xff] }
 0x126   :  { %1160 = vmatpush1.msra.mxu0 %v561_v4  ;;  %1122 = vmatprep.subr.mxu1 %v842_v5  ;;  %v766_v4 = vld [vmem:[%s5145_s2 + $0x8c8] sm:$0xff]  ;;  %v669_v5 = vld [vmem:[%s5145_s2 + $0x5c0] sm:$0xff] }
 0x127   :  { %1161 = vmatprep.subr.mxu0 %v556_v6  ;;  %1123 = vmatpush2.msra.mxu1 %v841_v7  ;;  %v765_v6 = vld [vmem:[%s5145_s2 + $0x8c0] sm:$0xff]  ;;  %v664_v7 = vld [vmem:[%s5145_s2 + $0x598] sm:$0xff] }
 0x128   :  { %1162 = vmatpush1.msra.mxu0 %v555_v8  ;;  %1124 = vmatprep.subr.mxu1 %v836_v9  ;;  %v760_v8 = vld [vmem:[%s5145_s2 + $0x898] sm:$0xff]  ;;  %v663_v9 = vld [vmem:[%s5145_s2 + $0x590] sm:$0xff] }
 0x129   :  { %1163 = vmatprep.subr.mxu0 %v550_v10  ;;  %1125 = vmatpush2.msra.mxu1 %v835_v14  ;;  %v759_v10 = vld [vmem:[%s5145_s2 + $0x890] sm:$0xff]  ;;  %v754_v14 = vld [vmem:[%s5145_s2 + $0x868] sm:$0xff] }
 0x12a   :  { %1164 = vmatpush1.msra.mxu0 %v549_v15  ;;  %1126 = vmatprep.subr.mxu1 %v830_v18  ;;  %v657_v15 = vld [vmem:[%s5145_s2 + $0x560] sm:$0xff] }
 0x12b   :  { %1165 = vmatprep.subr.mxu0 %v544_v20  ;;  %1127 = vmatpush2.msra.mxu1 %v829_v21  ;;  %v753_v18 = vld [vmem:[%s5145_s2 + $0x860] sm:$0xff]  ;;  %v652_v20 = vld [vmem:[%s5145_s2 + $0x538] sm:$0xff] }
 0x12c   :  { %1166 = vmatpush1.msra.mxu0 %v543_v22  ;;  %1128 = vmatprep.subr.mxu1 %v824_v23  ;;  %v748_v21 = vld [vmem:[%s5145_s2 + $0x838] sm:$0xff]  ;;  %v651_v22 = vld [vmem:[%s5145_s2 + $0x530] sm:$0xff] }
 0x12d   :  { %1167 = vmatprep.subr.mxu0 %v538_v11  ;;  %1129 = vmatpush2.msra.mxu1 %v823_v24  ;;  %v747_v23 = vld [vmem:[%s5145_s2 + $0x830] sm:$0xff]  ;;  %v646_v11 = vld [vmem:[%s5145_s2 + $0x508] sm:$0xff] }
 0x12e   :  { %1168 = vmatpush1.msra.mxu0 %v537_v25  ;;  %1130 = vmatprep.subr.mxu1 %v818_v26  ;;  %v742_v24 = vld [vmem:[%s5145_s2 + $0x808] sm:$0xff]  ;;  %v645_v25 = vld [vmem:[%s5145_s2 + $0x500] sm:$0xff] }
 0x12f   :  { %1169 = vmatprep.subr.mxu0 %v532_v27  ;;  %1131 = vmatpush2.msra.mxu1 %v817_v28  ;;  %v741_v26 = vld [vmem:[%s5145_s2 + $0x800] sm:$0xff]  ;;  %v640_v27 = vld [vmem:[%s5145_s2 + $0x4d8] sm:$0xff] }
 0x130   :  { %1170 = vmatpush1.msra.mxu0 %v531_v29  ;;  %1132 = vmatprep.subr.mxu1 %v812_v30  ;;  %v736_v28 = vld [vmem:[%s5145_s2 + $0x7d8] sm:$0xff]  ;;  %v639_v29 = vld [vmem:[%s5145_s2 + $0x4d0] sm:$0xff] }
 0x131   :  { %1171 = vmatprep.subr.mxu0 %v526_v31  ;;  %1133 = vmatpush2.msra.mxu1 %v811_v32  ;;  %v735_v30 = vld [vmem:[%s5145_s2 + $0x7d0] sm:$0xff]  ;;  %v634_v31 = vld [vmem:[%s5145_s2 + $0x4a8] sm:$0xff] }
 0x132   :  { %1172 = vmatpush1.msra.mxu0 %v525_v19  ;;  %1134 = vmatprep.subr.mxu1 %v806_v34  ;;  %v730_v32 = vld [vmem:[%s5145_s2 + $0x7a8] sm:$0xff]  ;;  %v633_v19 = vld [vmem:[%s5145_s2 + $0x4a0] sm:$0xff] }
 0x133   :  { %1173 = vmatprep.subr.mxu0 %v520_v35  ;;  %1135 = vmatpush2.msra.mxu1 %v805_v36  ;;  %v729_v34 = vld [vmem:[%s5145_s2 + $0x7a0] sm:$0xff]  ;;  %v628_v35 = vld [vmem:[%s5145_s2 + $0x478] sm:$0xff] }
 0x134   :  { %1174 = vmatpush1.msra.mxu0 %v519_v37  ;;  %1136 = vmatprep.subr.mxu1 %v800_v41  ;;  %v724_v36 = vld [vmem:[%s5145_s2 + $0x778] sm:$0xff]  ;;  %v627_v37 = vld [vmem:[%s5145_s2 + $0x470] sm:$0xff] }
 0x135   :  { %1175 = vmatprep.subr.mxu0 %v514_v42  ;;  %1137 = vmatpush2.msra.mxu1 %v799_v43  ;;  %v723_v41 = vld [vmem:[%s5145_s2 + $0x770] sm:$0xff]  ;;  %v622_v42 = vld [vmem:[%s5145_s2 + $0x448] sm:$0xff] }
 0x136   :  { %1176 = vmatpush1.msra.mxu0 %v513_v44  ;;  %1138 = vmatprep.subr.mxu1 %v794_v45  ;;  %v718_v43 = vld [vmem:[%s5145_s2 + $0x748] sm:$0xff]  ;;  %v621_v44 = vld [vmem:[%s5145_s2 + $0x440] sm:$0xff] }
 0x137   :  { %1177 = vmatprep.subr.mxu0 %v508_v46  ;;  %1139 = vmatpush2.msra.mxu1 %v793_v47  ;;  %v717_v45 = vld [vmem:[%s5145_s2 + $0x740] sm:$0xff]  ;;  %v616_v46 = vld [vmem:[%s5145_s2 + $0x418] sm:$0xff] }
 0x138   :  { %1178 = vmatpush1.msra.mxu0 %v507_v48  ;;  %1140 = vmatprep.subr.mxu1 %v788_v49  ;;  %v712_v47 = vld [vmem:[%s5145_s2 + $0x718] sm:$0xff]  ;;  %v615_v48 = vld [vmem:[%s5145_s2 + $0x410] sm:$0xff] }
 0x139   :  { %1179 = vmatprep.subr.mxu0 %v502_v50  ;;  %1141 = vmatpush2.msra.mxu1 %v787_v51  ;;  %v711_v49 = vld [vmem:[%s5145_s2 + $0x710] sm:$0xff]  ;;  %v610_v50 = vld [vmem:[%s5145_s2 + $0x3e8] sm:$0xff] }
 0x13a   :  { %1180 = vmatpush1.msra.mxu0 %v501_v52  ;;  %1142 = vmatprep.subr.mxu1 %v782_v53  ;;  %v706_v51 = vld [vmem:[%s5145_s2 + $0x6e8] sm:$0xff]  ;;  %v609_v52 = vld [vmem:[%s5145_s2 + $0x3e0] sm:$0xff] }
 0x13b   :  { %1181 = vmatprep.subr.mxu0 %v496_v54  ;;  %1143 = vmatpush2.msra.mxu1 %v781_v55  ;;  %v705_v53 = vld [vmem:[%s5145_s2 + $0x6e0] sm:$0xff]  ;;  %v604_v54 = vld [vmem:[%s5145_s2 + $0x3b8] sm:$0xff] }
 0x13c   :  { %1182 = vmatpush1.msra.mxu0 %v495_v56  ;;  %1144 = vmatprep.subr.mxu1 %v776_v58  ;;  %v700_v55 = vld [vmem:[%s5145_s2 + $0x6b8] sm:$0xff]  ;;  %v603_v56 = vld [vmem:[%s5145_s2 + $0x3b0] sm:$0xff] }
 0x13d   :  { %1183 = vmatprep.subr.mxu0 %v490_v59  ;;  %1145 = vmatpush2.msra.mxu1 %v775_v60  ;;  %v699_v58 = vld [vmem:[%s5145_s2 + $0x6b0] sm:$0xff]  ;;  %v598_v59 = vld [vmem:[%s5145_s2 + $0x388] sm:$0xff] }
 0x13e   :  { %1184 = vmatpush1.msra.mxu0 %v489_v62  ;;  %1147 = vmatmul.mubr.f32.vlgmr.msra.gmra.mxu1 %v3402_v38  ;;  %v694_v60 = vld [vmem:[%s5145_s2 + $0x688] sm:$0xff]  ;;  %v597_v62 = vld [vmem:[%s5145_s2 + $0x380] sm:$0xff] }
 0x13f   :  { %1185 = vmatprep.subr.mxu0 %v676_v63  ;;  %1224 = vmatprep.subr.mxu1 %v772_v0  ;;  %v693_v63 = vld [vmem:[%s5145_s2 + $0x680] sm:$0xff]  ;;  %v592_v0 = vld [vmem:[%s5145_s2 + $0x358] sm:$0xff] }
 0x140   :  { %1186 = vmatpush2.msra.mxu0 %v675_v39  ;;  %1225 = vmatpush1.msra.mxu1 %v771_v1  ;;  %v688_v39 = vld [vmem:[%s5145_s2 + $0x658] sm:$0xff]  ;;  %v591_v1 = vld [vmem:[%s5145_s2 + $0x350] sm:$0xff] }
 0x141   :  { %1288 = vmatprep.mubr.f32.mxu1 %v3400_v33  ;;  %1187 = vmatprep.subr.mxu0 %v670_v2  ;;  %v658_v33 = vld [vmem:[%s5145_s2 + $0x568] sm:$0xff]  ;;  %v687_v2 = vld [vmem:[%s5145_s2 + $0x650] sm:$0xff] }
 0x142   :  { %1226 = vmatprep.subr.mxu1 %v766_v4  ;;  %1188 = vmatpush2.msra.mxu0 %v669_v5  ;;  %v586_v4 = vld [vmem:[%s5145_s2 + $0x328] sm:$0xff] }
 0x143   :  { %1227 = vmatpush1.msra.mxu1 %v765_v6  ;;  %1189 = vmatprep.subr.mxu0 %v664_v7  ;;  %v682_v5 = vld [vmem:[%s5145_s2 + $0x628] sm:$0xff]  ;;  %v585_v6 = vld [vmem:[%s5145_s2 + $0x320] sm:$0xff] }
 0x144   :  { %1228 = vmatprep.subr.mxu1 %v760_v8  ;;  %1190 = vmatpush2.msra.mxu0 %v663_v9  ;;  %v681_v7 = vld [vmem:[%s5145_s2 + $0x620] sm:$0xff]  ;;  %v868_v8 = vld [vmem:[%s5145_s2 + $0xbf8] sm:$0xff]  ;;  %v867_v9 = vld [vmem:[%s5145_s2 + $0xbf0] sm:$0xff] }
 0x145   :  { %1229 = vmatpush1.msra.mxu1 %v759_v10  ;;  %1191 = vmatprep.subr.mxu0 %v658_v33  ;;  %v862_v10 = vld [vmem:[%s5145_s2 + $0xbc8] sm:$0xff]  ;;  %v861_v33 = vld [vmem:[%s5145_s2 + $0xbc0] sm:$0xff] }
 0x146   :  { %1230 = vmatprep.subr.mxu1 %v754_v14  ;;  %1192 = vmatpush2.msra.mxu0 %v657_v15  ;;  %v856_v14 = vld [vmem:[%s5145_s2 + $0xb98] sm:$0xff]  ;;  %v855_v15 = vld [vmem:[%s5145_s2 + $0xb90] sm:$0xff] }
 0x147   :  { %1231 = vmatpush1.msra.mxu1 %v753_v18  ;;  %1193 = vmatprep.subr.mxu0 %v652_v20  ;;  %v849_v18 = vld [vmem:[%s5145_s2 + $0xb60] sm:$0xff]  ;;  %v844_v20 = vld [vmem:[%s5145_s2 + $0xb38] sm:$0xff] }
 0x148   :  { %1232 = vmatprep.subr.mxu1 %v748_v21  ;;  %1194 = vmatpush2.msra.mxu0 %v651_v22  ;;  %v843_v21 = vld [vmem:[%s5145_s2 + $0xb30] sm:$0xff]  ;;  %v838_v22 = vld [vmem:[%s5145_s2 + $0xb08] sm:$0xff] }
 0x149   :  { %1233 = vmatpush1.msra.mxu1 %v747_v23  ;;  %1195 = vmatprep.subr.mxu0 %v646_v11  ;;  %v837_v23 = vld [vmem:[%s5145_s2 + $0xb00] sm:$0xff]  ;;  %v832_v11 = vld [vmem:[%s5145_s2 + $0xad8] sm:$0xff] }
 0x14a   :  { %1234 = vmatprep.subr.mxu1 %v742_v24  ;;  %1196 = vmatpush2.msra.mxu0 %v645_v25  ;;  %v831_v24 = vld [vmem:[%s5145_s2 + $0xad0] sm:$0xff]  ;;  %v826_v25 = vld [vmem:[%s5145_s2 + $0xaa8] sm:$0xff] }
 0x14b   :  { %1235 = vmatpush1.msra.mxu1 %v741_v26  ;;  %1197 = vmatprep.subr.mxu0 %v640_v27  ;;  %v825_v26 = vld [vmem:[%s5145_s2 + $0xaa0] sm:$0xff]  ;;  %v820_v27 = vld [vmem:[%s5145_s2 + $0xa78] sm:$0xff] }
 0x14c   :  { %1236 = vmatprep.subr.mxu1 %v736_v28  ;;  %1198 = vmatpush2.msra.mxu0 %v639_v29  ;;  %v819_v28 = vld [vmem:[%s5145_s2 + $0xa70] sm:$0xff]  ;;  %v814_v29 = vld [vmem:[%s5145_s2 + $0xa48] sm:$0xff] }
 0x14d   :  { %1237 = vmatpush1.msra.mxu1 %v735_v30  ;;  %1199 = vmatprep.subr.mxu0 %v634_v31  ;;  %v813_v30 = vld [vmem:[%s5145_s2 + $0xa40] sm:$0xff]  ;;  %v808_v31 = vld [vmem:[%s5145_s2 + $0xa18] sm:$0xff] }
 0x14e   :  { %1238 = vmatprep.subr.mxu1 %v730_v32  ;;  %1200 = vmatpush2.msra.mxu0 %v633_v19  ;;  %v807_v32 = vld [vmem:[%s5145_s2 + $0xa10] sm:$0xff]  ;;  %v802_v19 = vld [vmem:[%s5145_s2 + $0x9e8] sm:$0xff] }
 0x14f   :  { %1239 = vmatpush1.msra.mxu1 %v729_v34  ;;  %1201 = vmatprep.subr.mxu0 %v628_v35  ;;  %v801_v34 = vld [vmem:[%s5145_s2 + $0x9e0] sm:$0xff]  ;;  %v796_v35 = vld [vmem:[%s5145_s2 + $0x9b8] sm:$0xff] }
 0x150   :  { %1240 = vmatprep.subr.mxu1 %v724_v36  ;;  %1202 = vmatpush2.msra.mxu0 %v627_v37  ;;  %v795_v36 = vld [vmem:[%s5145_s2 + $0x9b0] sm:$0xff]  ;;  %v790_v37 = vld [vmem:[%s5145_s2 + $0x988] sm:$0xff] }
 0x151   :  { %1241 = vmatpush1.msra.mxu1 %v723_v41  ;;  %1203 = vmatprep.subr.mxu0 %v622_v42  ;;  %v789_v41 = vld [vmem:[%s5145_s2 + $0x980] sm:$0xff]  ;;  %v784_v42 = vld [vmem:[%s5145_s2 + $0x958] sm:$0xff] }
 0x152   :  { %1242 = vmatprep.subr.mxu1 %v718_v43  ;;  %1204 = vmatpush2.msra.mxu0 %v621_v44  ;;  %v783_v43 = vld [vmem:[%s5145_s2 + $0x950] sm:$0xff]  ;;  %v778_v44 = vld [vmem:[%s5145_s2 + $0x928] sm:$0xff] }
 0x153   :  { %1243 = vmatpush1.msra.mxu1 %v717_v45  ;;  %1205 = vmatprep.subr.mxu0 %v616_v46  ;;  %v777_v45 = vld [vmem:[%s5145_s2 + $0x920] sm:$0xff] }
 0x154   :  { %1244 = vmatprep.subr.mxu1 %v712_v47  ;;  %1206 = vmatpush2.msra.mxu0 %v615_v48  ;;  %v1456_v46 = vld [vmem:[%s5147_s3 + $0x260] sm:$0xff]  ;;  %v1455_v47 = vld [vmem:[%s5147_s3 + $0x258] sm:$0xff] }
 0x155   :  { %1245 = vmatpush1.msra.mxu1 %v711_v49  ;;  %1207 = vmatprep.subr.mxu0 %v610_v50  ;;  %v1451_v48 = vld [vmem:[%s5147_s3 + $0x238] sm:$0xff]  ;;  %v1450_v49 = vld [vmem:[%s5147_s3 + $0x230] sm:$0xff]  ;;  %v1445_v50 = vld [vmem:[%s5147_s3 + $0x208] sm:$0xff] }
 0x156   :  { %1246 = vmatprep.subr.mxu1 %v706_v51  ;;  %1208 = vmatpush2.msra.mxu0 %v609_v52  ;;  %v1441_v51 = vld [vmem:[%s5147_s3 + $0x1e8] sm:$0xff]  ;;  %v1440_v52 = vld [vmem:[%s5147_s3 + $0x1e0] sm:$0xff] }
 0x157   :  { %1247 = vmatpush1.msra.mxu1 %v705_v53  ;;  %1209 = vmatprep.subr.mxu0 %v604_v54  ;;  %v1436_v53 = vld [vmem:[%s5147_s3 + $0x1c0] sm:$0xff]  ;;  %v1435_v54 = vld [vmem:[%s5147_s3 + $0x1b8] sm:$0xff] }
 0x158   :  { %1248 = vmatprep.subr.mxu1 %v700_v55  ;;  %1210 = vmatpush2.msra.mxu0 %v603_v56  ;;  %v1431_v55 = vld [vmem:[%s5147_s3 + $0x198] sm:$0xff]  ;;  %v1430_v56 = vld [vmem:[%s5147_s3 + $0x190] sm:$0xff] }
 0x159   :  { %1249 = vmatpush1.msra.mxu1 %v699_v58  ;;  %1211 = vmatprep.subr.mxu0 %v598_v59  ;;  %v1426_v58 = vld [vmem:[%s5147_s3 + $0x170] sm:$0xff]  ;;  %v1425_v59 = vld [vmem:[%s5147_s3 + $0x168] sm:$0xff] }
 0x15a   :  { %1250 = vmatprep.subr.mxu1 %v694_v60  ;;  %1212 = vmatpush2.msra.mxu0 %v597_v62  ;;  %v1421_v60 = vld [vmem:[%s5147_s3 + $0x148] sm:$0xff]  ;;  %v1420_v62 = vld [vmem:[%s5147_s3 + $0x140] sm:$0xff] }
 0x15b   :  { %1251 = vmatpush1.msra.mxu1 %v693_v63  ;;  %1213 = vmatprep.subr.mxu0 %v592_v0  ;;  %v1416_v63 = vld [vmem:[%s5147_s3 + $0x120] sm:$0xff]  ;;  %v1415_v0 = vld [vmem:[%s5147_s3 + $0x118] sm:$0xff] }
 0x15c   :  { %1252 = vmatprep.subr.mxu1 %v688_v39  ;;  %1214 = vmatpush2.msra.mxu0 %v591_v1  ;;  %v1411_v39 = vld [vmem:[%s5147_s3 + $0xf8] sm:$0xff]  ;;  %v1410_v1 = vld [vmem:[%s5147_s3 + $0xf0] sm:$0xff] }
 0x15d   :  { %1253 = vmatpush1.msra.mxu1 %v687_v2  ;;  %1215 = vmatprep.subr.mxu0 %v586_v4  ;;  %v1406_v2 = vld [vmem:[%s5147_s3 + $0xd0] sm:$0xff]  ;;  %v1405_v4 = vld [vmem:[%s5147_s3 + $0xc8] sm:$0xff] }
 0x15e   :  { %1254 = vmatprep.subr.mxu1 %v682_v5  ;;  %1216 = vmatpush2.msra.mxu0 %v585_v6  ;;  %v1401_v5 = vld [vmem:[%s5147_s3 + $0xa8] sm:$0xff]  ;;  %v1400_v6 = vld [vmem:[%s5147_s3 + $0xa0] sm:$0xff] }
 0x15f   :  { %1255 = vmatpush1.msra.mxu1 %v681_v7  ;;  %1218 = vmatmul.mubr.f32.vlgmr.msra.gmra.mxu0 %v3282_v40  ;;  %v850_v40 = vld [vmem:[%s5145_s2 + $0xb68] sm:$0xff]  ;;  %v1396_v7 = vld [vmem:[%s5147_s3 + $0x80] sm:$0xff] }
 0x160   :  { %1256 = vmatprep.subr.mxu1 %v868_v8  ;;  %1650 = vmatprep.subr.mxu0 %v1456_v46  ;;  %v1395_v8 = vld [vmem:[%s5147_s3 + $0x78] sm:$0xff]  ;;  %v1581_v46 = vld [vmem:[%s5147_s3 + $0x648] sm:$0xff] }
 0x161   :  { %1257 = vmatpush2.msra.mxu1 %v867_v9  ;;  %1651 = vmatpush1.msra.mxu0 %v1455_v47  ;;  %v1391_v9 = vld [vmem:[%s5147_s3 + $0x58] sm:$0xff]  ;;  %v1510_v47 = vld [vmem:[%s5147_s3 + $0x410] sm:$0xff] }
 0x162   :  { %1258 = vmatprep.subr.mxu1 %v862_v10  ;;  %1652 = vmatprep.subr.mxu0 %v1451_v48  ;;  %v1390_v10 = vld [vmem:[%s5147_s3 + $0x50] sm:$0xff]  ;;  %v1580_v48 = vld [vmem:[%s5147_s3 + $0x640] sm:$0xff] }
 0x163   :  { %1259 = vmatpush2.msra.mxu1 %v861_v33  ;;  %1653 = vmatpush1.msra.mxu0 %v1450_v49  ;;  %v1386_v33 = vld [vmem:[%s5147_s3 + $0x30] sm:$0xff] }
 0x164   :  { %1260 = vmatprep.subr.mxu1 %v856_v14  ;;  %v1385_v14 = vld [vmem:[%s5147_s3 + $0x28] sm:$0xff]  ;;  %v1506_v49 = vld [vmem:[%s5147_s3 + $0x3f0] sm:$0xff] }
 0x165   :  { %1261 = vmatpush2.msra.mxu1 %v855_v15  ;;  %v1381_v15 = vld [vmem:[%s5147_s3 + $0x8] sm:$0xff] }
 0x166   :  { %1262 = vmatprep.subr.mxu1 %v850_v40  ;;  %v1616_v40 = vld [vmem:[%s5147_s3 + $0x760] sm:$0xff] }
 0x167   :  { %1263 = vmatpush2.msra.mxu1 %v849_v18  ;;  %v1380_v18 = vld [vmem:[%s5147_s3] sm:$0xff] }
 0x168   :  { %1264 = vmatprep.subr.mxu1 %v844_v20  ;;  %v1615_v20 = vld [vmem:[%s5147_s3 + $0x758] sm:$0xff] }
 0x169   :  { %1265 = vmatpush2.msra.mxu1 %v843_v21  ;;  %v1536_v21 = vld [vmem:[%s5147_s3 + $0x4e0] sm:$0xff] }
 0x16a   :  { %1266 = vmatprep.subr.mxu1 %v838_v22  ;;  %v1611_v22 = vld [vmem:[%s5147_s3 + $0x738] sm:$0xff] }
 0x16b   :  { %1267 = vmatpush2.msra.mxu1 %v837_v23  ;;  %v1610_v23 = vld [vmem:[%s5147_s3 + $0x730] sm:$0xff] }
 0x16c   :  { %1268 = vmatprep.subr.mxu1 %v832_v11  ;;  %v1535_v11 = vld [vmem:[%s5147_s3 + $0x4d8] sm:$0xff] }
 0x16d   :  { %1269 = vmatpush2.msra.mxu1 %v831_v24  ;;  %v1606_v24 = vld [vmem:[%s5147_s3 + $0x710] sm:$0xff] }
 0x16e   :  { %1270 = vmatprep.subr.mxu1 %v826_v25  ;;  %v1531_v25 = vld [vmem:[%s5147_s3 + $0x4b8] sm:$0xff] }
 0x16f   :  { %1271 = vmatpush2.msra.mxu1 %v825_v26  ;;  %v1605_v26 = vld [vmem:[%s5147_s3 + $0x708] sm:$0xff] }
 0x170   :  { %1272 = vmatprep.subr.mxu1 %v820_v27  ;;  %v1601_v27 = vld [vmem:[%s5147_s3 + $0x6e8] sm:$0xff] }
 0x171   :  { %1273 = vmatpush2.msra.mxu1 %v819_v28  ;;  %v1530_v28 = vld [vmem:[%s5147_s3 + $0x4b0] sm:$0xff] }
 0x172   :  { %1274 = vmatprep.subr.mxu1 %v814_v29  ;;  %v1600_v29 = vld [vmem:[%s5147_s3 + $0x6e0] sm:$0xff] }
 0x173   :  { %1275 = vmatpush2.msra.mxu1 %v813_v30  ;;  %v1526_v30 = vld [vmem:[%s5147_s3 + $0x490] sm:$0xff] }
 0x174   :  { %1276 = vmatprep.subr.mxu1 %v808_v31  ;;  %v1596_v31 = vld [vmem:[%s5147_s3 + $0x6c0] sm:$0xff] }
 0x175   :  { %1277 = vmatpush2.msra.mxu1 %v807_v32  ;;  %v1525_v32 = vld [vmem:[%s5147_s3 + $0x488] sm:$0xff] }
 0x176   :  { %1278 = vmatprep.subr.mxu1 %v802_v19  ;;  %v1595_v19 = vld [vmem:[%s5147_s3 + $0x6b8] sm:$0xff] }
 0x177   :  { %1279 = vmatpush2.msra.mxu1 %v801_v34  ;;  %v1521_v34 = vld [vmem:[%s5147_s3 + $0x468] sm:$0xff] }
 0x178   :  { %1280 = vmatprep.subr.mxu1 %v796_v35  ;;  %v1591_v35 = vld [vmem:[%s5147_s3 + $0x698] sm:$0xff] }
 0x179   :  { %1281 = vmatpush2.msra.mxu1 %v795_v36  ;;  %v1520_v36 = vld [vmem:[%s5147_s3 + $0x460] sm:$0xff] }
 0x17a   :  { %1282 = vmatprep.subr.mxu1 %v790_v37  ;;  %v1590_v37 = vld [vmem:[%s5147_s3 + $0x690] sm:$0xff] }
 0x17b   :  { %1283 = vmatpush2.msra.mxu1 %v789_v41  ;;  %v1516_v41 = vld [vmem:[%s5147_s3 + $0x440] sm:$0xff] }
 0x17c   :  { %1284 = vmatprep.subr.mxu1 %v784_v42  ;;  %v1586_v42 = vld [vmem:[%s5147_s3 + $0x670] sm:$0xff] }
 0x17d   :  { %1285 = vmatpush2.msra.mxu1 %v783_v43  ;;  %v1515_v43 = vld [vmem:[%s5147_s3 + $0x438] sm:$0xff] }
 0x17e   :  { %1286 = vmatprep.subr.mxu1 %v778_v44  ;;  %v1585_v44 = vld [vmem:[%s5147_s3 + $0x668] sm:$0xff] }
 0x17f   :  { %1287 = vmatpush2.msra.mxu1 %v777_v45  ;;  %v1511_v45 = vld [vmem:[%s5147_s3 + $0x418] sm:$0xff] }
 0x180   :  { %1289 = vmatmul.mubr.f32.vlgmr.msra.gmra.mxu1 %v3402_v38  ;;  %v1446_v38 = vld [vmem:[%s5147_s3 + $0x210] sm:$0xff]  ;;  %1721 = vmatprep.subr.mxu1 %v1616_v40 }
 0x181   :  { %1785 = vmatprep.mubr.f32.mxu1 %v2598_v3  ;;  %1654 = vmatprep.subr.mxu0 %v1446_v38  ;;  %v1576_v38 = vld [vmem:[%s5147_s3 + $0x620] sm:$0xff]  ;;  %v1550_v40 = vld [vmem:[%s5147_s3 + $0x550] sm:$0xff] }
 0x182   :  { %1655 = vmatpush1.msra.mxu0 %v1445_v50  ;;  %1722 = vmatpush1.msra.mxu1 %v1615_v20  ;;  %v1505_v50 = vld [vmem:[%s5147_s3 + $0x3e8] sm:$0xff]  ;;  %v1546_v20 = vld [vmem:[%s5147_s3 + $0x530] sm:$0xff] }
 0x183   :  { %1656 = vmatprep.subr.mxu0 %v1441_v51  ;;  %1723 = vmatprep.subr.mxu1 %v1611_v22  ;;  %v1575_v51 = vld [vmem:[%s5147_s3 + $0x618] sm:$0xff]  ;;  %v1545_v22 = vld [vmem:[%s5147_s3 + $0x528] sm:$0xff] }
 0x184   :  { %1657 = vmatpush1.msra.mxu0 %v1440_v52  ;;  %1724 = vmatpush1.msra.mxu1 %v1610_v23  ;;  %v1501_v52 = vld [vmem:[%s5147_s3 + $0x3c8] sm:$0xff]  ;;  %v1460_v23 = vld [vmem:[%s5147_s3 + $0x280] sm:$0xff] }
 0x185   :  { %1658 = vmatprep.subr.mxu0 %v1436_v53  ;;  %1725 = vmatprep.subr.mxu1 %v1606_v24  ;;  %v1571_v53 = vld [vmem:[%s5147_s3 + $0x5f8] sm:$0xff]  ;;  %v1540_v24 = vld [vmem:[%s5147_s3 + $0x500] sm:$0xff] }
 0x186   :  { %1659 = vmatpush1.msra.mxu0 %v1435_v54  ;;  %1726 = vmatpush1.msra.mxu1 %v1605_v26  ;;  %v1500_v54 = vld [vmem:[%s5147_s3 + $0x3c0] sm:$0xff]  ;;  %v1458_v26 = vld [vmem:[%s5147_s3 + $0x270] sm:$0xff] }
 0x187   :  { %1660 = vmatprep.subr.mxu0 %v1431_v55  ;;  %1727 = vmatprep.subr.mxu1 %v1601_v27  ;;  %v1570_v55 = vld [vmem:[%s5147_s3 + $0x5f0] sm:$0xff] }
 0x188   :  { %1661 = vmatpush1.msra.mxu0 %v1430_v56  ;;  %1728 = vmatpush1.msra.mxu1 %v1600_v29  ;;  %v1496_v56 = vld [vmem:[%s5147_s3 + $0x3a0] sm:$0xff] }
 0x189   :  { %1662 = vmatprep.subr.mxu0 %v1426_v58  ;;  %1729 = vmatprep.subr.mxu1 %v1596_v31  ;;  %v1566_v58 = vld [vmem:[%s5147_s3 + $0x5d0] sm:$0xff] }
 0x18a   :  { %1663 = vmatpush1.msra.mxu0 %v1425_v59  ;;  %1730 = vmatpush1.msra.mxu1 %v1595_v19  ;;  %v1495_v59 = vld [vmem:[%s5147_s3 + $0x398] sm:$0xff]  ;;  %v2382_v19 = vld [vmem:[%s5146_s5 + $0x2] ss:$8 sm:$0x30] }
 0x18b   :  { %1664 = vmatprep.subr.mxu0 %v1421_v60  ;;  %1731 = vmatprep.subr.mxu1 %v1591_v35  ;;  %v1565_v60 = vld [vmem:[%s5147_s3 + $0x5c8] sm:$0xff] }
 0x18c   :  { %1665 = vmatpush1.msra.mxu0 %v1420_v62  ;;  %1732 = vmatpush1.msra.mxu1 %v1590_v37  ;;  %v1491_v62 = vld [vmem:[%s5147_s3 + $0x378] sm:$0xff] }
 0x18d   :  { %1666 = vmatprep.subr.mxu0 %v1416_v63  ;;  %1733 = vmatprep.subr.mxu1 %v1586_v42  ;;  %v1490_v63 = vld [vmem:[%s5147_s3 + $0x370] sm:$0xff] }
 0x18e   :  { %1667 = vmatpush1.msra.mxu0 %v1415_v0  ;;  %1734 = vmatpush1.msra.mxu1 %v1585_v44  ;;  %v1486_v0 = vld [vmem:[%s5147_s3 + $0x350] sm:$0xff] }
 0x18f   :  { %1668 = vmatprep.subr.mxu0 %v1411_v39  ;;  %1735 = vmatprep.subr.mxu1 %v1581_v46  ;;  %v1485_v39 = vld [vmem:[%s5147_s3 + $0x348] sm:$0xff] }
 0x190   :  { %1669 = vmatpush1.msra.mxu0 %v1410_v1  ;;  %1736 = vmatpush1.msra.mxu1 %v1580_v48  ;;  %v1481_v1 = vld [vmem:[%s5147_s3 + $0x328] sm:$0xff] }
 0x191   :  { %1670 = vmatprep.subr.mxu0 %v1406_v2  ;;  %1737 = vmatprep.subr.mxu1 %v1576_v38  ;;  %v1480_v2 = vld [vmem:[%s5147_s3 + $0x320] sm:$0xff] }
 0x192   :  { %1671 = vmatpush1.msra.mxu0 %v1405_v4  ;;  %1738 = vmatpush1.msra.mxu1 %v1575_v51  ;;  %v1561_v4 = vld [vmem:[%s5147_s3 + $0x5a8] sm:$0xff] }
 0x193   :  { %1672 = vmatprep.subr.mxu0 %v1401_v5  ;;  %1739 = vmatprep.subr.mxu1 %v1571_v53  ;;  %v1476_v5 = vld [vmem:[%s5147_s3 + $0x300] sm:$0xff] }
 0x194   :  { %1673 = vmatpush1.msra.mxu0 %v1400_v6  ;;  %1740 = vmatpush1.msra.mxu1 %v1570_v55  ;;  %v1560_v6 = vld [vmem:[%s5147_s3 + $0x5a0] sm:$0xff] }
 0x195   :  { %1674 = vmatprep.subr.mxu0 %v1396_v7  ;;  %1741 = vmatprep.subr.mxu1 %v1566_v58  ;;  %v1475_v7 = vld [vmem:[%s5147_s3 + $0x2f8] sm:$0xff] }
 0x196   :  { %1675 = vmatpush1.msra.mxu0 %v1395_v8  ;;  %1742 = vmatpush1.msra.mxu1 %v1565_v60  ;;  %v1556_v8 = vld [vmem:[%s5147_s3 + $0x580] sm:$0xff] }
 0x197   :  { %1676 = vmatprep.subr.mxu0 %v1391_v9  ;;  %1743 = vmatprep.subr.mxu1 %v1561_v4  ;;  %v1471_v9 = vld [vmem:[%s5147_s3 + $0x2d8] sm:$0xff] }
 0x198   :  { %1677 = vmatpush1.msra.mxu0 %v1390_v10  ;;  %1744 = vmatpush1.msra.mxu1 %v1560_v6  ;;  %v1555_v10 = vld [vmem:[%s5147_s3 + $0x578] sm:$0xff] }
 0x199   :  { %1678 = vmatprep.subr.mxu0 %v1386_v33  ;;  %1745 = vmatprep.subr.mxu1 %v1556_v8  ;;  %v1470_v33 = vld [vmem:[%s5147_s3 + $0x2d0] sm:$0xff] }
 0x19a   :  { %1679 = vmatpush1.msra.mxu0 %v1385_v14  ;;  %1746 = vmatpush1.msra.mxu1 %v1555_v10  ;;  %v1551_v14 = vld [vmem:[%s5147_s3 + $0x558] sm:$0xff] }
 0x19b   :  { %1680 = vmatprep.subr.mxu0 %v1381_v15  ;;  %1747 = vmatprep.subr.mxu1 %v1551_v14  ;;  %v1466_v15 = vld [vmem:[%s5147_s3 + $0x2b0] sm:$0xff] }
 0x19c   :  { %1681 = vmatpush1.msra.mxu0 %v1380_v18  ;;  %1748 = vmatpush1.msra.mxu1 %v1550_v40  ;;  %v1465_v18 = vld [vmem:[%s5147_s3 + $0x2a8] sm:$0xff] }
 0x19d   :  { %1682 = vmatprep.subr.mxu0 %v1536_v21  ;;  %1749 = vmatprep.subr.mxu1 %v1546_v20  ;;  %v1461_v21 = vld [vmem:[%s5147_s3 + $0x288] sm:$0xff] }
 0x19e   :  { %1683 = vmatpush2.msra.mxu0 %v1535_v11  ;;  %1750 = vmatpush1.msra.mxu1 %v1545_v22  ;;  %v1541_v11 = vld [vmem:[%s5147_s3 + $0x508] sm:$0xff] }
 0x19f   :  { %1684 = vmatprep.subr.mxu0 %v1531_v25  ;;  %1751 = vmatprep.subr.mxu1 %v1541_v11  ;;  %v1618_v25 = vld [vmem:[%s5147_s3 + $0x770] sm:$0xff]  ;;  %v1453_v11 = vld [vmem:[%s5147_s3 + $0x248] sm:$0xff] }
 0x1a0   :  { %1685 = vmatpush2.msra.mxu0 %v1530_v28  ;;  %1752 = vmatpush1.msra.mxu1 %v1540_v24  ;;  %v935_v28 = vpop.f32.mrf.mxu0  ;;  %v2383_v37 = vld [vmem:[%s5146_s5 + $0x3] ss:$8 sm:$0xf] }
 0x1a1   :  { %1686 = vmatprep.subr.mxu0 %v1526_v30  ;;  %1792 = vmatprep.subr.mxu1 %v1458_v26  ;;  %v1612_v24 = vld [vmem:[%s5147_s3 + $0x740] sm:$0xff] }
 0x1a2   :  { %1687 = vmatpush2.msra.mxu0 %v1525_v32  ;;  %v937_v30 = vpop.f32.mrf.mxu0  ;;  %v2381_v32 = vld [vmem:[%s5146_s5 + $0x2] ss:$8 sm:$0xf] }
 0x1a3   :  { %1688 = vmatprep.subr.mxu0 %v1521_v34  ;;  %v1608_v26 = vld [vmem:[%s5147_s3 + $0x720] sm:$0xff] }
 0x1a4   :  { %1689 = vmatpush2.msra.mxu0 %v1520_v36  ;;  %v1298_v36 = vor.u32 %v2382_v19, %v2381_v32  ;;  %v1602_v32 = vld [vmem:[%s5147_s3 + $0x6f0] sm:$0xff] }
 0x1a5   :  { %1690 = vmatprep.subr.mxu0 %v1516_v41  ;;  %v2384_v41 = vld [vmem:[%s5146_s5 + $0x3] ss:$8 sm:$0x30]  ;;  %v1442_v19 = vld [vmem:[%s5147_s3 + $0x1f0] sm:$0xff] }
 0x1a6   :  { %1691 = vmatpush2.msra.mxu0 %v1515_v43  ;;  %v1315_v44 = vrot.slane %v1298_v36, %v3336_v57  ;;  %v1307_v46 = vrot.slane %v1298_v36, %v3257_v16  ;;  %v1303_v48 = vrot.slane %v1298_v36, %v3245_v12  ;;  %v1311_v51 = vrot.slane %v1298_v36, %v3343_v61 }
 0x1a7   :  { %1692 = vmatprep.subr.mxu0 %v1511_v45 }
 0x1a8   :  { %1693 = vmatpush2.msra.mxu0 %v1510_v47 }
 0x1a9   :  { %1694 = vmatprep.subr.mxu0 %v1506_v49  ;;  %v1339_v49 = vor.u32 %v2384_v41, %v2383_v37  ;;  %v1437_v37 = vld [vmem:[%s5147_s3 + $0x1c8] sm:$0xff] }
 0x1aa   :  { %1695 = vmatpush2.msra.mxu0 %v1505_v50  ;;  %v1593_v41 = vld [vmem:[%s5147_s3 + $0x6a8] sm:$0xff] }
 0x1ab   :  { %1696 = vmatprep.subr.mxu0 %v1501_v52  ;;  %v1319_v52 = vrot.slane %v1298_v36, %v3248_v13  ;;  %v1348_v53 = vrot.slane %v1339_v49, %v3257_v16  ;;  %v1356_v55 = vrot.slane %v1339_v49, %v3336_v57  ;;  %v1360_v60 = vrot.slane %v1339_v49, %v3248_v13 }
 0x1ac   :  { %1697 = vmatpush2.msra.mxu0 %v1500_v54 }
 0x1ad   :  { %1698 = vmatprep.subr.mxu0 %v1496_v56 }
 0x1ae   :  { %1699 = vmatpush2.msra.mxu0 %v1495_v59 }
 0x1af   :  { %1700 = vmatprep.subr.mxu0 %v1491_v62  ;;  %v1323_v62 = vrot.slane %v1298_v36, %v3260_v17  ;;  %v1597_v36 = vld [vmem:[%s5147_s3 + $0x6c8] sm:$0xff] }
 0x1b0   :  { %1701 = vmatpush2.msra.mxu0 %v1490_v63 }
 0x1b1   :  { %1702 = vmatprep.subr.mxu0 %v1486_v0  ;;  %v1344_v0 = vrot.slane %v1339_v49, %v3245_v12 }
 0x1b2   :  { %1703 = vmatpush2.msra.mxu0 %v1485_v39  ;;  %v1352_v39 = vrot.slane %v1339_v49, %v3343_v61 }
 0x1b3   :  { %1704 = vmatprep.subr.mxu0 %v1481_v1 }
 0x1b4   :  { %1705 = vmatpush2.msra.mxu0 %v1480_v2 }
 0x1b5   :  { %1706 = vmatprep.subr.mxu0 %v1476_v5 }
 0x1b6   :  { %1707 = vmatpush2.msra.mxu0 %v1475_v7  ;;  %v1364_v7 = vrot.slane %v1339_v49, %v3260_v17  ;;  %v1457_v17 = vld [vmem:[%s5147_s3 + $0x268] sm:$0xff]  ;;  %v1583_v49 = vld [vmem:[%s5147_s3 + $0x658] sm:$0xff] }
 0x1b7   :  { %1708 = vmatprep.subr.mxu0 %v1471_v9 }
 0x1b8   :  { %1709 = vmatpush2.msra.mxu0 %v1470_v33 }
 0x1b9   :  { %1710 = vmatprep.subr.mxu0 %v1466_v15 }
 0x1ba   :  { %1711 = vmatpush2.msra.mxu0 %v1465_v18 }
 0x1bb   :  { %1712 = vmatprep.subr.mxu0 %v1461_v21  ;;  %v1617_v21 = vld [vmem:[%s5147_s3 + $0x768] sm:$0xff] }
 0x1bc   :  { %1713 = vmatpush2.msra.mxu0 %v1460_v23  ;;  %v1613_v23 = vld [vmem:[%s5147_s3 + $0x748] sm:$0xff] }
 0x1bd   :  { %1863 = vmatprep.subr.mxu0 %v1618_v25  ;;  %v1006_v27 = vpop.f32.mrf.mxu1  ;;  %v1452_v25 = vld [vmem:[%s5147_s3 + $0x240] sm:$0xff] }
 0x1be   :  { %v1007_v47 = vadd.f32 %v1006_v27, %v935_v28  ;;  %v1448_v27 = vld [vmem:[%s5147_s3 + $0x220] sm:$0xff]  ;;  %v1607_v28 = vld [vmem:[%s5147_s3 + $0x718] sm:$0xff] }
 0x1bf   :  { %v1008_v29 = vpop.f32.mrf.mxu1 }
 0x1c0   :  { %v1009_v45 = vadd.f32 %v1008_v29, %v937_v30  ;;  %v1330_v63 = vmul.f32 %v1303_v48, %v1007_v47  ;;  %v1447_v29 = vld [vmem:[%s5147_s3 + $0x218] sm:$0xff] }
 0x1c1   :  { %v1603_v30 = vld [vmem:[%s5147_s3 + $0x6f8] sm:$0xff] }
 0x1c2   :  { %v1331_v58 = vmul.f32 %v1307_v46, %v1009_v45  ;;  %v1371_v14 = vadd.f32 %v1344_v0, %v1330_v63  ;;  %v1588_v45 = vld [vmem:[%s5147_s3 + $0x680] sm:$0xff]  ;;  %v1587_v47 = vld [vmem:[%s5147_s3 + $0x678] sm:$0xff] }
 0x1c3   :  { %v1428_v46 = vld [vmem:[%s5147_s3 + $0x180] sm:$0xff]  ;;  %v1427_v48 = vld [vmem:[%s5147_s3 + $0x178] sm:$0xff] }
 0x1c4   :  { %v1372_v9 = vadd.f32 %v1348_v53, %v1331_v58  ;;  %v1418_v53 = vld [vmem:[%s5147_s3 + $0x130] sm:$0xff]  ;;  %v1413_v58 = vld [vmem:[%s5147_s3 + $0x108] sm:$0xff]  ;;  %v1408_v63 = vld [vmem:[%s5147_s3 + $0xe0] sm:$0xff] }
 0x1c5   :  { %v1567_v0 = vld [vmem:[%s5147_s3 + $0x5d8] sm:$0xff] }
 0x1dd   :  { %v1077_v34 = vpop.f32.mrf.mxu0 }
 0x1df   :  { %v1079_v42 = vpop.f32.mrf.mxu0 }
 0x1fe   :  { %v1148_v31 = vpop.f32.mrf.mxu1 }
 0x1ff   :  { %v1149_v50 = vadd.f32 %v1148_v31, %v1077_v34  ;;  %v1443_v31 = vld [vmem:[%s5147_s3 + $0x1f8] sm:$0xff]  ;;  %v1598_v34 = vld [vmem:[%s5147_s3 + $0x6d0] sm:$0xff] }
 0x200   :  { %v1150_v35 = vpop.f32.mrf.mxu1 }
 0x201   :  { %v1151_v43 = vadd.f32 %v1150_v35, %v1079_v42  ;;  %v1332_v4 = vmul.f32 %v1311_v51, %v1149_v50  ;;  %v1438_v35 = vld [vmem:[%s5147_s3 + $0x1d0] sm:$0xff]  ;;  %v1433_v42 = vld [vmem:[%s5147_s3 + $0x1a8] sm:$0xff] }
 0x202   :  { %v1582_v50 = vld [vmem:[%s5147_s3 + $0x650] sm:$0xff] }
 0x203   :  { %v1333_v54 = vmul.f32 %v1315_v44, %v1151_v43  ;;  %v1373_v15 = vadd.f32 %v1352_v39, %v1332_v4  ;;  %v1592_v43 = vld [vmem:[%s5147_s3 + $0x6a0] sm:$0xff]  ;;  %v1422_v51 = vld [vmem:[%s5147_s3 + $0x150] sm:$0xff]  ;;  %v1407_v39 = vld [vmem:[%s5147_s3 + $0xd8] sm:$0xff] }
 0x204   :  { %v1432_v44 = vld [vmem:[%s5147_s3 + $0x1a0] sm:$0xff]  ;;  %v1562_v4 = vld [vmem:[%s5147_s3 + $0x5b0] sm:$0xff] }
 0x205   :  { %v1374_v8 = vadd.f32 %v1356_v55, %v1333_v54  ;;  %v1577_v54 = vld [vmem:[%s5147_s3 + $0x628] sm:$0xff] }
 0x206   :  { %v1417_v55 = vld [vmem:[%s5147_s3 + $0x128] sm:$0xff] }
 0x207   :  { %v4403_v20 = vmax.f32 %v1371_v14, %v1374_v8  ;;  %v1557_v8 = vld [vmem:[%s5147_s3 + $0x588] sm:$0xff]  ;;  %v1552_v14 = vld [vmem:[%s5147_s3 + $0x560] sm:$0xff] }
 0x21f   :  { %v1219_v38 = vpop.f32.mrf.mxu0 }
 0x221   :  { %v1221_v1 = vpop.f32.mrf.mxu0 }
 0x240   :  { %v1290_v56 = vpop.f32.mrf.mxu1 }
 0x241   :  { %v1291_v59 = vadd.f32 %v1290_v56, %v1219_v38  ;;  %v1423_v38 = vld [vmem:[%s5147_s3 + $0x158] sm:$0xff]  ;;  %v1573_v56 = vld [vmem:[%s5147_s3 + $0x608] sm:$0xff] }
 0x242   :  { %v1292_v2 = vpop.f32.mrf.mxu1 }
 0x243   :  { %v1334_v5 = vmul.f32 %v1319_v52, %v1291_v59  ;;  %v1293_v6 = vadd.f32 %v1292_v2, %v1221_v1  ;;  %v1578_v52 = vld [vmem:[%s5147_s3 + $0x630] sm:$0xff]  ;;  %v1572_v59 = vld [vmem:[%s5147_s3 + $0x600] sm:$0xff]  ;;  %v1563_v1 = vld [vmem:[%s5147_s3 + $0x5b8] sm:$0xff] }
 0x244   :  { %v1403_v2 = vld [vmem:[%s5147_s3 + $0xb8] sm:$0xff] }
 0x245   :  { %v1375_v10 = vadd.f32 %v1360_v60, %v1334_v5  ;;  %v1335_v33 = vmul.f32 %v1323_v62, %v1293_v6  ;;  %v1412_v60 = vld [vmem:[%s5147_s3 + $0x100] sm:$0xff]  ;;  %v1402_v5 = vld [vmem:[%s5147_s3 + $0xb0] sm:$0xff] }
 0x246   :  { %v1568_v62 = vld [vmem:[%s5147_s3 + $0x5e0] sm:$0xff]  ;;  %v1558_v6 = vld [vmem:[%s5147_s3 + $0x590] sm:$0xff] }
 0x247   :  { %v1376_v40 = vadd.f32 %v1364_v7, %v1335_v33  ;;  %v4401_v18 = vmax.f32 %v1372_v9, %v1375_v10  ;;  %v1398_v7 = vld [vmem:[%s5147_s3 + $0x90] sm:$0xff]  ;;  %v1397_v9 = vld [vmem:[%s5147_s3 + $0x88] sm:$0xff] }
 0x248   :  { %v1553_v10 = vld [vmem:[%s5147_s3 + $0x568] sm:$0xff] }
 0x249   :  { %v4408_v22 = vmax.f32 %v1373_v15, %v1376_v40  ;;  %1714 = vmatprep.mubr.f32.mxu0 %v4401_v18  ;;  %v1393_v33 = vld [vmem:[%s5147_s3 + $0x68] sm:$0xff]  ;;  %v1392_v15 = vld [vmem:[%s5147_s3 + $0x60] sm:$0xff] }
 0x24a   :  { %1715 = vmatmul.mubr.f32.vlgmr.msra.gmra.mxu0 %v4403_v20  ;;  %v1548_v40 = vld [vmem:[%s5147_s3 + $0x540] sm:$0xff] }
 0x24b   :  { %1864 = vmatpush1.msra.mxu0 %v1617_v21  ;;  %1786 = vmatmul.mubr.f32.vlgmr.msra.gmra.mxu1 %v4408_v22  ;;  %v1388_v21 = vld [vmem:[%s5147_s3 + $0x40] sm:$0xff] }
 0x24c   :  { %1793 = vmatpush1.msra.mxu1 %v1457_v17  ;;  %1865 = vmatprep.subr.mxu0 %v1613_v23  ;;  %v1547_v17 = vld [vmem:[%s5147_s3 + $0x538] sm:$0xff] }
 0x24d   :  { %1794 = vmatprep.subr.mxu1 %v1453_v11  ;;  %1856 = vmatprep.mubr.f32.mxu1 %v4401_v18  ;;  %v1387_v23 = vld [vmem:[%s5147_s3 + $0x38] sm:$0xff] }
 0x24e   :  { %1866 = vmatpush1.msra.mxu0 %v1612_v24  ;;  %1795 = vmatpush1.msra.mxu1 %v1452_v25  ;;  %v1543_v11 = vld [vmem:[%s5147_s3 + $0x518] sm:$0xff]  ;;  %v1542_v25 = vld [vmem:[%s5147_s3 + $0x510] sm:$0xff] }
 0x24f   :  { %1867 = vmatprep.subr.mxu0 %v1608_v26  ;;  %1796 = vmatprep.subr.mxu1 %v1448_v27  ;;  %v1383_v24 = vld [vmem:[%s5147_s3 + $0x18] sm:$0xff]  ;;  %v1382_v26 = vld [vmem:[%s5147_s3 + $0x10] sm:$0xff] }
 0x250   :  { %1868 = vmatpush1.msra.mxu0 %v1607_v28  ;;  %1797 = vmatpush1.msra.mxu1 %v1447_v29  ;;  %v1539_v27 = vld [vmem:[%s5147_s3 + $0x4f8] sm:$0xff]  ;;  %v1538_v28 = vld [vmem:[%s5147_s3 + $0x4f0] sm:$0xff] }
 0x251   :  { %1869 = vmatprep.subr.mxu0 %v1603_v30  ;;  %1798 = vmatprep.subr.mxu1 %v1443_v31  ;;  %v1459_v29 = vld [vmem:[%s5147_s3 + $0x278] sm:$0xff]  ;;  %v1537_v30 = vld [vmem:[%s5147_s3 + $0x4e8] sm:$0xff]  ;;  %v1534_v31 = vld [vmem:[%s5147_s3 + $0x4d0] sm:$0xff] }
 0x252   :  { %1870 = vmatpush1.msra.mxu0 %v1602_v32  ;;  %1799 = vmatpush1.msra.mxu1 %v1442_v19  ;;  %v1533_v32 = vld [vmem:[%s5147_s3 + $0x4c8] sm:$0xff]  ;;  %v1454_v19 = vld [vmem:[%s5147_s3 + $0x250] sm:$0xff] }
 0x253   :  { %1871 = vmatprep.subr.mxu0 %v1598_v34  ;;  %1800 = vmatprep.subr.mxu1 %v1438_v35  ;;  %v1532_v34 = vld [vmem:[%s5147_s3 + $0x4c0] sm:$0xff]  ;;  %v1529_v35 = vld [vmem:[%s5147_s3 + $0x4a8] sm:$0xff] }
 0x254   :  { %1872 = vmatpush1.msra.mxu0 %v1597_v36  ;;  %1801 = vmatpush1.msra.mxu1 %v1437_v37  ;;  %v1528_v36 = vld [vmem:[%s5147_s3 + $0x4a0] sm:$0xff]  ;;  %v1449_v37 = vld [vmem:[%s5147_s3 + $0x228] sm:$0xff] }
 0x255   :  { %1873 = vmatprep.subr.mxu0 %v1593_v41  ;;  %1802 = vmatprep.subr.mxu1 %v1433_v42  ;;  %v1524_v41 = vld [vmem:[%s5147_s3 + $0x480] sm:$0xff]  ;;  %v1523_v42 = vld [vmem:[%s5147_s3 + $0x478] sm:$0xff] }
 0x256   :  { %1874 = vmatpush1.msra.mxu0 %v1592_v43  ;;  %1803 = vmatpush1.msra.mxu1 %v1432_v44  ;;  %v1444_v43 = vld [vmem:[%s5147_s3 + $0x200] sm:$0xff]  ;;  %v1522_v44 = vld [vmem:[%s5147_s3 + $0x470] sm:$0xff] }
 0x257   :  { %1875 = vmatprep.subr.mxu0 %v1588_v45  ;;  %1804 = vmatprep.subr.mxu1 %v1428_v46  ;;  %v1519_v45 = vld [vmem:[%s5147_s3 + $0x458] sm:$0xff]  ;;  %v1518_v46 = vld [vmem:[%s5147_s3 + $0x450] sm:$0xff] }
 0x258   :  { %1876 = vmatpush1.msra.mxu0 %v1587_v47  ;;  %1805 = vmatpush1.msra.mxu1 %v1427_v48  ;;  %v1439_v47 = vld [vmem:[%s5147_s3 + $0x1d8] sm:$0xff]  ;;  %v1517_v48 = vld [vmem:[%s5147_s3 + $0x448] sm:$0xff] }
 0x259   :  { %1877 = vmatprep.subr.mxu0 %v1583_v49  ;;  %1806 = vmatprep.subr.mxu1 %v1423_v38  ;;  %v1514_v49 = vld [vmem:[%s5147_s3 + $0x430] sm:$0xff]  ;;  %v1513_v38 = vld [vmem:[%s5147_s3 + $0x428] sm:$0xff] }
 0x25a   :  { %1878 = vmatpush1.msra.mxu0 %v1582_v50  ;;  %1807 = vmatpush1.msra.mxu1 %v1422_v51  ;;  %v1434_v50 = vld [vmem:[%s5147_s3 + $0x1b0] sm:$0xff]  ;;  %v1512_v51 = vld [vmem:[%s5147_s3 + $0x420] sm:$0xff] }
 0x25b   :  { %1879 = vmatprep.subr.mxu0 %v1578_v52  ;;  %1808 = vmatprep.subr.mxu1 %v1418_v53  ;;  %v1509_v52 = vld [vmem:[%s5147_s3 + $0x408] sm:$0xff]  ;;  %v1508_v53 = vld [vmem:[%s5147_s3 + $0x400] sm:$0xff] }
 0x25c   :  { %1880 = vmatpush1.msra.mxu0 %v1577_v54  ;;  %1809 = vmatpush1.msra.mxu1 %v1417_v55  ;;  %v1429_v54 = vld [vmem:[%s5147_s3 + $0x188] sm:$0xff]  ;;  %v1507_v55 = vld [vmem:[%s5147_s3 + $0x3f8] sm:$0xff] }
 0x25d   :  { %1881 = vmatprep.subr.mxu0 %v1573_v56  ;;  %1810 = vmatprep.subr.mxu1 %v1413_v58  ;;  %v1504_v56 = vld [vmem:[%s5147_s3 + $0x3e0] sm:$0xff]  ;;  %v1503_v58 = vld [vmem:[%s5147_s3 + $0x3d8] sm:$0xff] }
 0x25e   :  { %1882 = vmatpush1.msra.mxu0 %v1572_v59  ;;  %1811 = vmatpush1.msra.mxu1 %v1412_v60  ;;  %v1424_v59 = vld [vmem:[%s5147_s3 + $0x160] sm:$0xff]  ;;  %v1502_v60 = vld [vmem:[%s5147_s3 + $0x3d0] sm:$0xff] }
 0x25f   :  { %1883 = vmatprep.subr.mxu0 %v1568_v62  ;;  %1812 = vmatprep.subr.mxu1 %v1408_v63  ;;  %v1499_v62 = vld [vmem:[%s5147_s3 + $0x3b8] sm:$0xff]  ;;  %v1498_v63 = vld [vmem:[%s5147_s3 + $0x3b0] sm:$0xff] }
 0x260   :  { %1884 = vmatpush1.msra.mxu0 %v1567_v0  ;;  %1813 = vmatpush1.msra.mxu1 %v1407_v39  ;;  %v1419_v0 = vld [vmem:[%s5147_s3 + $0x138] sm:$0xff]  ;;  %v1497_v39 = vld [vmem:[%s5147_s3 + $0x3a8] sm:$0xff] }
 0x261   :  { %1885 = vmatprep.subr.mxu0 %v1563_v1  ;;  %1814 = vmatprep.subr.mxu1 %v1403_v2  ;;  %v1494_v1 = vld [vmem:[%s5147_s3 + $0x390] sm:$0xff]  ;;  %v1493_v2 = vld [vmem:[%s5147_s3 + $0x388] sm:$0xff] }
 0x262   :  { %1886 = vmatpush1.msra.mxu0 %v1562_v4  ;;  %1815 = vmatpush1.msra.mxu1 %v1402_v5  ;;  %v1414_v4 = vld [vmem:[%s5147_s3 + $0x110] sm:$0xff]  ;;  %v1492_v5 = vld [vmem:[%s5147_s3 + $0x380] sm:$0xff] }
 0x263   :  { %1887 = vmatprep.subr.mxu0 %v1558_v6  ;;  %1816 = vmatprep.subr.mxu1 %v1398_v7  ;;  %v1489_v6 = vld [vmem:[%s5147_s3 + $0x368] sm:$0xff]  ;;  %v1488_v7 = vld [vmem:[%s5147_s3 + $0x360] sm:$0xff] }
 0x264   :  { %1888 = vmatpush1.msra.mxu0 %v1557_v8  ;;  %1817 = vmatpush1.msra.mxu1 %v1397_v9  ;;  %v1409_v8 = vld [vmem:[%s5147_s3 + $0xe8] sm:$0xff]  ;;  %v1487_v9 = vld [vmem:[%s5147_s3 + $0x358] sm:$0xff] }
 0x265   :  { %1889 = vmatprep.subr.mxu0 %v1553_v10  ;;  %1818 = vmatprep.subr.mxu1 %v1393_v33  ;;  %v1484_v10 = vld [vmem:[%s5147_s3 + $0x340] sm:$0xff]  ;;  %v1483_v33 = vld [vmem:[%s5147_s3 + $0x338] sm:$0xff] }
 0x266   :  { %1890 = vmatpush1.msra.mxu0 %v1552_v14  ;;  %1819 = vmatpush1.msra.mxu1 %v1392_v15  ;;  %v1404_v14 = vld [vmem:[%s5147_s3 + $0xc0] sm:$0xff]  ;;  %v1482_v15 = vld [vmem:[%s5147_s3 + $0x330] sm:$0xff] }
 0x267   :  { %1891 = vmatprep.subr.mxu0 %v1548_v40  ;;  %1820 = vmatprep.subr.mxu1 %v1388_v21  ;;  %v1479_v40 = vld [vmem:[%s5147_s3 + $0x318] sm:$0xff]  ;;  %v1478_v21 = vld [vmem:[%s5147_s3 + $0x310] sm:$0xff] }
 0x268   :  { %1892 = vmatpush1.msra.mxu0 %v1547_v17  ;;  %1821 = vmatpush1.msra.mxu1 %v1387_v23  ;;  %v1399_v17 = vld [vmem:[%s5147_s3 + $0x98] sm:$0xff]  ;;  %v1477_v23 = vld [vmem:[%s5147_s3 + $0x308] sm:$0xff] }
 0x269   :  { %1893 = vmatprep.subr.mxu0 %v1543_v11  ;;  %1822 = vmatprep.subr.mxu1 %v1383_v24  ;;  %v1474_v11 = vld [vmem:[%s5147_s3 + $0x2f0] sm:$0xff]  ;;  %v1473_v24 = vld [vmem:[%s5147_s3 + $0x2e8] sm:$0xff] }
 0x26a   :  { %1894 = vmatpush1.msra.mxu0 %v1542_v25  ;;  %1927 = vmatprep.mubr.f32.mxu0 %v2598_v3  ;;  %v1394_v25 = vld [vmem:[%s5147_s3 + $0x70] sm:$0xff] }
 0x26b   :  { %1823 = vmatpush1.msra.mxu1 %v1382_v26  ;;  %1928 = vmatmul.mubr.f32.vlgmr.msra.gmra.mxu0 %v4408_v22  ;;  %v1472_v26 = vld [vmem:[%s5147_s3 + $0x2e0] sm:$0xff] }
 0x26c   :  { %2387 = vmatprep.subr.mxu0 %v1539_v27  ;;  %1824 = vmatprep.subr.mxu1 %v1538_v28  ;;  %v1469_v27 = vld [vmem:[%s5147_s3 + $0x2c8] sm:$0xff]  ;;  %v1468_v28 = vld [vmem:[%s5147_s3 + $0x2c0] sm:$0xff] }
 0x26d   :  { %2388 = vmatpush3.msra.mxu0 %v1459_v29  ;;  %1998 = vmatprep.mubr.f32.mxu0 %v4401_v18  ;;  %v1527_v18 = vld [vmem:[%s5147_s3 + $0x498] sm:$0xff]  ;;  %v1389_v29 = vld [vmem:[%s5147_s3 + $0x48] sm:$0xff] }
 0x26e   :  { %1825 = vmatpush2.msra.mxu1 %v1537_v30  ;;  %2389 = vmatprep.subr.mxu0 %v1534_v31  ;;  %v1467_v30 = vld [vmem:[%s5147_s3 + $0x2b8] sm:$0xff]  ;;  %v1464_v31 = vld [vmem:[%s5147_s3 + $0x2a0] sm:$0xff] }
 0x26f   :  { %1826 = vmatprep.subr.mxu1 %v1533_v32  ;;  %2390 = vmatpush3.msra.mxu0 %v1454_v19  ;;  %v1463_v32 = vld [vmem:[%s5147_s3 + $0x298] sm:$0xff]  ;;  %v1384_v19 = vld [vmem:[%s5147_s3 + $0x20] sm:$0xff] }
 0x270   :  { %1827 = vmatpush2.msra.mxu1 %v1532_v34  ;;  %2391 = vmatprep.subr.mxu0 %v1529_v35  ;;  %v1462_v34 = vld [vmem:[%s5147_s3 + $0x290] sm:$0xff]  ;;  %v1619_v35 = vld [vmem:[%s5147_s3 + $0x778] sm:$0xff] }
 0x271   :  { %1828 = vmatprep.subr.mxu1 %v1528_v36  ;;  %2392 = vmatpush3.msra.mxu0 %v1449_v37  ;;  %v2110_v36 = vld [vmem:[%s5148_s4 + $0xf8] sm:$0xff]  ;;  %v1614_v37 = vld [vmem:[%s5147_s3 + $0x750] sm:$0xff] }
 0x272   :  { %1829 = vmatpush2.msra.mxu1 %v1527_v18  ;;  %2393 = vmatprep.subr.mxu0 %v1524_v41  ;;  %v2094_v18 = vld [vmem:[%s5148_s4 + $0x78] sm:$0xff]  ;;  %v2109_v41 = vld [vmem:[%s5148_s4 + $0xf0] sm:$0xff] }
 0x273   :  { %1830 = vmatprep.subr.mxu1 %v1523_v42  ;;  %2394 = vmatpush3.msra.mxu0 %v1444_v43  ;;  %v2093_v42 = vld [vmem:[%s5148_s4 + $0x70] sm:$0xff]  ;;  %v2108_v43 = vld [vmem:[%s5148_s4 + $0xe8] sm:$0xff] }
 0x274   :  { %1831 = vmatpush2.msra.mxu1 %v1522_v44  ;;  %2395 = vmatprep.subr.mxu0 %v1519_v45  ;;  %v1604_v44 = vld [vmem:[%s5147_s3 + $0x700] sm:$0xff]  ;;  %v2092_v45 = vld [vmem:[%s5148_s4 + $0x68] sm:$0xff] }
 0x275   :  { %1832 = vmatprep.subr.mxu1 %v1518_v46  ;;  %2396 = vmatpush3.msra.mxu0 %v1439_v47  ;;  %v2107_v46 = vld [vmem:[%s5148_s4 + $0xe0] sm:$0xff]  ;;  %v1599_v47 = vld [vmem:[%s5147_s3 + $0x6d8] sm:$0xff] }
 0x276   :  { %1833 = vmatpush2.msra.mxu1 %v1517_v48  ;;  %2397 = vmatprep.subr.mxu0 %v1514_v49  ;;  %v2091_v48 = vld [vmem:[%s5148_s4 + $0x60] sm:$0xff]  ;;  %v2106_v49 = vld [vmem:[%s5148_s4 + $0xd8] sm:$0xff] }
 0x277   :  { %1834 = vmatprep.subr.mxu1 %v1513_v38  ;;  %2398 = vmatpush3.msra.mxu0 %v1434_v50  ;;  %v1594_v38 = vld [vmem:[%s5147_s3 + $0x6b0] sm:$0xff]  ;;  %v2090_v50 = vld [vmem:[%s5148_s4 + $0x58] sm:$0xff] }
 0x278   :  { %1835 = vmatpush2.msra.mxu1 %v1512_v51  ;;  %2399 = vmatprep.subr.mxu0 %v1509_v52  ;;  %v2105_v51 = vld [vmem:[%s5148_s4 + $0xd0] sm:$0xff]  ;;  %v1589_v52 = vld [vmem:[%s5147_s3 + $0x688] sm:$0xff] }
 0x279   :  { %1836 = vmatprep.subr.mxu1 %v1508_v53  ;;  %2400 = vmatpush3.msra.mxu0 %v1429_v54  ;;  %v2089_v53 = vld [vmem:[%s5148_s4 + $0x50] sm:$0xff]  ;;  %v2104_v54 = vld [vmem:[%s5148_s4 + $0xc8] sm:$0xff] }
 0x27a   :  { %1837 = vmatpush2.msra.mxu1 %v1507_v55  ;;  %2401 = vmatprep.subr.mxu0 %v1504_v56  ;;  %v1584_v55 = vld [vmem:[%s5147_s3 + $0x660] sm:$0xff]  ;;  %v2088_v56 = vld [vmem:[%s5148_s4 + $0x48] sm:$0xff] }
 0x27b   :  { %1838 = vmatprep.subr.mxu1 %v1503_v58  ;;  %2402 = vmatpush3.msra.mxu0 %v1424_v59  ;;  %v2103_v58 = vld [vmem:[%s5148_s4 + $0xc0] sm:$0xff]  ;;  %v1579_v59 = vld [vmem:[%s5147_s3 + $0x638] sm:$0xff] }
 0x27c   :  { %1839 = vmatpush2.msra.mxu1 %v1502_v60  ;;  %2403 = vmatprep.subr.mxu0 %v1499_v62  ;;  %v2087_v60 = vld [vmem:[%s5148_s4 + $0x40] sm:$0xff]  ;;  %v2102_v62 = vld [vmem:[%s5148_s4 + $0xb8] sm:$0xff] }
 0x27d   :  { %1840 = vmatprep.subr.mxu1 %v1498_v63  ;;  %2404 = vmatpush3.msra.mxu0 %v1419_v0  ;;  %v1574_v63 = vld [vmem:[%s5147_s3 + $0x610] sm:$0xff]  ;;  %v2086_v0 = vld [vmem:[%s5148_s4 + $0x38] sm:$0xff] }
 0x27e   :  { %1841 = vmatpush2.msra.mxu1 %v1497_v39  ;;  %2405 = vmatprep.subr.mxu0 %v1494_v1  ;;  %v2101_v39 = vld [vmem:[%s5148_s4 + $0xb0] sm:$0xff]  ;;  %v1569_v1 = vld [vmem:[%s5147_s3 + $0x5e8] sm:$0xff] }
 0x27f   :  { %1842 = vmatprep.subr.mxu1 %v1493_v2  ;;  %2406 = vmatpush3.msra.mxu0 %v1414_v4  ;;  %v2085_v2 = vld [vmem:[%s5148_s4 + $0x30] sm:$0xff]  ;;  %v2100_v4 = vld [vmem:[%s5148_s4 + $0xa8] sm:$0xff] }
 0x280   :  { %1843 = vmatpush2.msra.mxu1 %v1492_v5  ;;  %2407 = vmatprep.subr.mxu0 %v1489_v6  ;;  %v1564_v5 = vld [vmem:[%s5147_s3 + $0x5c0] sm:$0xff]  ;;  %v2084_v6 = vld [vmem:[%s5148_s4 + $0x28] sm:$0xff] }
 0x281   :  { %1844 = vmatprep.subr.mxu1 %v1488_v7  ;;  %2408 = vmatpush3.msra.mxu0 %v1409_v8  ;;  %v2099_v7 = vld [vmem:[%s5148_s4 + $0xa0] sm:$0xff]  ;;  %v1559_v8 = vld [vmem:[%s5147_s3 + $0x598] sm:$0xff] }
 0x282   :  { %1845 = vmatpush2.msra.mxu1 %v1487_v9  ;;  %2409 = vmatprep.subr.mxu0 %v1484_v10  ;;  %v2083_v9 = vld [vmem:[%s5148_s4 + $0x20] sm:$0xff]  ;;  %v2098_v10 = vld [vmem:[%s5148_s4 + $0x98] sm:$0xff] }
 0x283   :  { %1846 = vmatprep.subr.mxu1 %v1483_v33  ;;  %2410 = vmatpush3.msra.mxu0 %v1404_v14  ;;  %v1554_v33 = vld [vmem:[%s5147_s3 + $0x570] sm:$0xff]  ;;  %v2082_v14 = vld [vmem:[%s5148_s4 + $0x18] sm:$0xff] }
 0x284   :  { %1847 = vmatpush2.msra.mxu1 %v1482_v15  ;;  %2411 = vmatprep.subr.mxu0 %v1479_v40  ;;  %v2097_v15 = vld [vmem:[%s5148_s4 + $0x90] sm:$0xff]  ;;  %v1549_v40 = vld [vmem:[%s5147_s3 + $0x548] sm:$0xff] }
 0x285   :  { %1848 = vmatprep.subr.mxu1 %v1478_v21  ;;  %2412 = vmatpush3.msra.mxu0 %v1399_v17  ;;  %v2081_v21 = vld [vmem:[%s5148_s4 + $0x10] sm:$0xff]  ;;  %v2096_v17 = vld [vmem:[%s5148_s4 + $0x88] sm:$0xff] }
 0x286   :  { %1849 = vmatpush2.msra.mxu1 %v1477_v23  ;;  %2413 = vmatprep.subr.mxu0 %v1474_v11  ;;  %v1544_v23 = vld [vmem:[%s5147_s3 + $0x520] sm:$0xff]  ;;  %v2080_v11 = vld [vmem:[%s5148_s4 + $0x8] sm:$0xff] }
 0x287   :  { %1850 = vmatprep.subr.mxu1 %v1473_v24  ;;  %2414 = vmatpush3.msra.mxu0 %v1394_v25  ;;  %v2095_v24 = vld [vmem:[%s5148_s4 + $0x80] sm:$0xff] }
 0x288   :  { %1851 = vmatpush2.msra.mxu1 %v1472_v26  ;;  %2415 = vmatprep.subr.mxu0 %v1469_v27  ;;  %v2079_v25 = vld [vmem:[%s5148_s4] sm:$0xff]  ;;  %v2142_v26 = vld [vmem:[%s5148_s4 + $0x1f8] sm:$0xff] }
 0x289   :  { %1852 = vmatprep.subr.mxu1 %v1468_v28  ;;  %2416 = vmatpush3.msra.mxu0 %v1389_v29  ;;  %v2126_v27 = vld [vmem:[%s5148_s4 + $0x178] sm:$0xff]  ;;  %v2141_v28 = vld [vmem:[%s5148_s4 + $0x1f0] sm:$0xff] }
 0x28a   :  { %1853 = vmatpush2.msra.mxu1 %v1467_v30  ;;  %2417 = vmatprep.subr.mxu0 %v1464_v31  ;;  %v2125_v29 = vld [vmem:[%s5148_s4 + $0x170] sm:$0xff]  ;;  %v2124_v30 = vld [vmem:[%s5148_s4 + $0x168] sm:$0xff]  ;;  %v2139_v31 = vld [vmem:[%s5148_s4 + $0x1e0] sm:$0xff] }
 0x28b   :  { %1854 = vmatprep.subr.mxu1 %v1463_v32  ;;  %2418 = vmatpush3.msra.mxu0 %v1384_v19  ;;  %v2123_v32 = vld [vmem:[%s5148_s4 + $0x160] sm:$0xff]  ;;  %v2138_v19 = vld [vmem:[%s5148_s4 + $0x1d8] sm:$0xff] }
 0x28c   :  { %1855 = vmatpush2.msra.mxu1 %v1462_v34  ;;  %1999 = vmatmul.mubr.f32.vlgmr.msra.gmra.mxu0 %v4403_v20  ;;  %v2122_v34 = vld [vmem:[%s5148_s4 + $0x158] sm:$0xff] }
 0x28d   :  { %1857 = vmatmul.mubr.f32.vlgmr.msra.gmra.mxu1 %v4403_v20  ;;  %2526 = vmatprep.subr.mxu1 %v2598_v3  ;;  %v1609_v20 = vld [vmem:[%s5147_s3 + $0x728] sm:$0xff] }
 0x28e   :  { %2527 = vmatpush3.msra.mxu1 %v1619_v35  ;;  %2558 = vmatprep.mubr.msk.f32.mxu1 %vm2599_vm1, %v2598_v3  ;;  %v2137_v35 = vld [vmem:[%s5148_s4 + $0x1d0] sm:$0xff] }
 0x28f   :  { %2528 = vmatprep.subr.mxu1 %v2598_v3  ;;  %2439 = vmatprep.subr.mxu0 %v2110_v36  ;;  %v2121_v36 = vld [vmem:[%s5148_s4 + $0x150] sm:$0xff] }
 0x290   :  { %2529 = vmatpush3.msra.mxu1 %v1614_v37  ;;  %2440 = vmatpush3.msra.mxu0 %v2094_v18  ;;  %v2136_v37 = vld [vmem:[%s5148_s4 + $0x1c8] sm:$0xff] }
 0x291   :  { %2530 = vmatprep.subr.mxu1 %v2598_v3  ;;  %2441 = vmatprep.subr.mxu0 %v2109_v41  ;;  %v2120_v18 = vld [vmem:[%s5148_s4 + $0x148] sm:$0xff]  ;;  %v2135_v41 = vld [vmem:[%s5148_s4 + $0x1c0] sm:$0xff] }
 0x292   :  { %2531 = vmatpush3.msra.mxu1 %v1609_v20  ;;  %2442 = vmatpush3.msra.mxu0 %v2093_v42  ;;  %v2119_v20 = vld [vmem:[%s5148_s4 + $0x140] sm:$0xff]  ;;  %v2134_v42 = vld [vmem:[%s5148_s4 + $0x1b8] sm:$0xff] }
 0x293   :  { %2532 = vmatprep.subr.mxu1 %v2598_v3  ;;  %2443 = vmatprep.subr.mxu0 %v2108_v43  ;;  %v2118_v43 = vld [vmem:[%s5148_s4 + $0x138] sm:$0xff] }
 0x294   :  { %2533 = vmatpush3.msra.mxu1 %v1604_v44  ;;  %2444 = vmatpush3.msra.mxu0 %v2092_v45  ;;  %v2133_v44 = vld [vmem:[%s5148_s4 + $0x1b0] sm:$0xff] }
 0x295   :  { %2534 = vmatprep.subr.mxu1 %v2598_v3  ;;  %2445 = vmatprep.subr.mxu0 %v2107_v46  ;;  %v2117_v45 = vld [vmem:[%s5148_s4 + $0x130] sm:$0xff]  ;;  %v2132_v46 = vld [vmem:[%s5148_s4 + $0x1a8] sm:$0xff] }
 0x296   :  { %2535 = vmatpush3.msra.mxu1 %v1599_v47  ;;  %2446 = vmatpush3.msra.mxu0 %v2091_v48  ;;  %v2116_v47 = vld [vmem:[%s5148_s4 + $0x128] sm:$0xff]  ;;  %v2131_v48 = vld [vmem:[%s5148_s4 + $0x1a0] sm:$0xff] }
 0x297   :  { %2536 = vmatprep.subr.mxu1 %v2598_v3  ;;  %2447 = vmatprep.subr.mxu0 %v2106_v49  ;;  %v2115_v49 = vld [vmem:[%s5148_s4 + $0x120] sm:$0xff] }
 0x298   :  { %2537 = vmatpush3.msra.mxu1 %v1594_v38  ;;  %2448 = vmatpush3.msra.mxu0 %v2090_v50  ;;  %v2130_v38 = vld [vmem:[%s5148_s4 + $0x198] sm:$0xff] }
 0x299   :  { %2538 = vmatprep.subr.mxu1 %v2598_v3  ;;  %2449 = vmatprep.subr.mxu0 %v2105_v51  ;;  %v2114_v50 = vld [vmem:[%s5148_s4 + $0x118] sm:$0xff]  ;;  %v2129_v51 = vld [vmem:[%s5148_s4 + $0x190] sm:$0xff] }
 0x29a   :  { %2539 = vmatpush3.msra.mxu1 %v1589_v52  ;;  %2450 = vmatpush3.msra.mxu0 %v2089_v53  ;;  %v2113_v52 = vld [vmem:[%s5148_s4 + $0x110] sm:$0xff]  ;;  %v2128_v53 = vld [vmem:[%s5148_s4 + $0x188] sm:$0xff] }
 0x29b   :  { %2540 = vmatprep.subr.mxu1 %v2598_v3  ;;  %2451 = vmatprep.subr.mxu0 %v2104_v54  ;;  %v2112_v54 = vld [vmem:[%s5148_s4 + $0x108] sm:$0xff] }
 0x29c   :  { %2541 = vmatpush3.msra.mxu1 %v1584_v55  ;;  %2452 = vmatpush3.msra.mxu0 %v2088_v56  ;;  %v2127_v55 = vld [vmem:[%s5148_s4 + $0x180] sm:$0xff] }
 0x29d   :  { %2542 = vmatprep.subr.mxu1 %v2598_v3  ;;  %2453 = vmatprep.subr.mxu0 %v2103_v58  ;;  %v2111_v56 = vld [vmem:[%s5148_s4 + $0x100] sm:$0xff] }
 0x29e   :  { %2543 = vmatpush3.msra.mxu1 %v1579_v59  ;;  %2454 = vmatpush3.msra.mxu0 %v2087_v60  ;;  %v2385_v58 = vld [vmem:[%s5146_s5 + $0x4] ss:$8 sm:$0xf] }
 0x29f   :  { %2544 = vmatprep.subr.mxu1 %v2598_v3  ;;  %2455 = vmatprep.subr.mxu0 %v2102_v62  ;;  %v2386_v59 = vld [vmem:[%s5146_s5 + $0x4] ss:$8 sm:$0x10] }
 0x2a0   :  { %2545 = vmatpush3.msra.mxu1 %v1574_v63  ;;  %2456 = vmatpush3.msra.mxu0 %v2086_v0  ;;  %v5060_v60 = vor.u32 %v2386_v59, %v2385_v58 }
 0x2a1   :  { %2546 = vmatprep.subr.mxu1 %v2598_v3  ;;  %2457 = vmatprep.subr.mxu0 %v2101_v39 }
 0x2a2   :  { %2547 = vmatpush3.msra.mxu1 %v1569_v1  ;;  %2458 = vmatpush3.msra.mxu0 %v2085_v2  ;;  %v1628_v62 = vrot.slane %v5060_v60, %v3245_v12  ;;  %v1632_v63 = vrot.slane %v5060_v60, %v3257_v16  ;;  %v2157_v12 = vld [vmem:[%s5148_s4 + $0x270] sm:$0xff]  ;;  %v2156_v16 = vld [vmem:[%s5148_s4 + $0x268] sm:$0xff] }
 0x2a3   :  { %2548 = vmatprep.subr.mxu1 %v2598_v3  ;;  %2459 = vmatprep.subr.mxu0 %v2100_v4 }
 0x2a4   :  { %2549 = vmatpush3.msra.mxu1 %v1564_v5  ;;  %2460 = vmatpush3.msra.mxu0 %v2084_v6 }
 0x2a5   :  { %2550 = vmatprep.subr.mxu1 %v2598_v3  ;;  %2461 = vmatprep.subr.mxu0 %v2099_v7 }
 0x2a6   :  { %2551 = vmatpush3.msra.mxu1 %v1559_v8  ;;  %2462 = vmatpush3.msra.mxu0 %v2083_v9 }
 0x2a7   :  { %2552 = vmatprep.subr.mxu1 %v2598_v3  ;;  %2463 = vmatprep.subr.mxu0 %v2098_v10  ;;  %v2158_v10 = vld [vmem:[%s5148_s4 + $0x278] sm:$0xff] }
 0x2a8   :  { %2553 = vmatpush3.msra.mxu1 %v1554_v33  ;;  %2464 = vmatpush3.msra.mxu0 %v2082_v14  ;;  %v2155_v33 = vld [vmem:[%s5148_s4 + $0x260] sm:$0xff]  ;;  %v2154_v14 = vld [vmem:[%s5148_s4 + $0x258] sm:$0xff] }
 0x2a9   :  { %2554 = vmatprep.subr.mxu1 %v2598_v3  ;;  %2465 = vmatprep.subr.mxu0 %v2097_v15  ;;  %v2153_v15 = vld [vmem:[%s5148_s4 + $0x250] sm:$0xff] }
 0x2aa   :  { %2555 = vmatpush3.msra.mxu1 %v1549_v40  ;;  %2466 = vmatpush3.msra.mxu0 %v2081_v21  ;;  %v2152_v40 = vld [vmem:[%s5148_s4 + $0x248] sm:$0xff]  ;;  %v2151_v21 = vld [vmem:[%s5148_s4 + $0x240] sm:$0xff] }
 0x2ab   :  { %2556 = vmatprep.subr.mxu1 %v2598_v3  ;;  %2467 = vmatprep.subr.mxu0 %v2096_v17  ;;  %v2150_v17 = vld [vmem:[%s5148_s4 + $0x238] sm:$0xff] }
 0x2ac   :  { %2557 = vmatpush3.msra.mxu1 %v1544_v23  ;;  %2468 = vmatpush3.msra.mxu0 %v2080_v11  ;;  %v2149_v23 = vld [vmem:[%s5148_s4 + $0x230] sm:$0xff]  ;;  %v2148_v11 = vld [vmem:[%s5148_s4 + $0x228] sm:$0xff] }
 0x2ad   :  { %2559 = vmatmul.mubr.f32.vlgmr.msra.gmra.mxu1 %v4408_v22  ;;  %2469 = vmatprep.subr.mxu0 %v2095_v24  ;;  %v2140_v22 = vld [vmem:[%s5148_s4 + $0x1e8] sm:$0xff]  ;;  %v2147_v24 = vld [vmem:[%s5148_s4 + $0x220] sm:$0xff] }
 0x2ae   :  { %2470 = vmatpush3.msra.mxu0 %v2079_v25  ;;  %2474 = vmatprep.subr.mxu1 %v2142_v26  ;;  %v2146_v25 = vld [vmem:[%s5148_s4 + $0x218] sm:$0xff]  ;;  %v2145_v26 = vld [vmem:[%s5148_s4 + $0x210] sm:$0xff] }
 0x2af   :  { %2475 = vmatpush3.msra.mxu1 %v2126_v27  ;;  %2561 = vmatprep.subr.mxu0 %v2598_v3  ;;  %v2144_v27 = vld [vmem:[%s5148_s4 + $0x208] sm:$0xff] }
 0x2b0   :  { %2476 = vmatprep.subr.mxu1 %v2141_v28  ;;  %v2143_v28 = vld [vmem:[%s5148_s4 + $0x200] sm:$0xff] }
 0x2b1   :  { %2477 = vmatpush3.msra.mxu1 %v2125_v29  ;;  %v1636_v29 = vrot.slane %v5060_v60, %v3343_v61  ;;  %v1644_v61 = vrot.slane %v5060_v60, %v3248_v13 }
 0x2b2   :  { %2478 = vmatprep.subr.mxu1 %v2140_v22  ;;  %v1640_v22 = vrot.slane %v5060_v60, %v3336_v57 }
 0x2b3   :  { %2479 = vmatpush3.msra.mxu1 %v2124_v30 }
 0x2b4   :  { %2480 = vmatprep.subr.mxu1 %v2139_v31 }
 0x2b5   :  { %2481 = vmatpush3.msra.mxu1 %v2123_v32 }
 0x2b6   :  { %2482 = vmatprep.subr.mxu1 %v2138_v19 }
 0x2b7   :  { %2483 = vmatpush3.msra.mxu1 %v2122_v34 }
 0x2b8   :  { %2484 = vmatprep.subr.mxu1 %v2137_v35 }
 0x2b9   :  { %2485 = vmatpush3.msra.mxu1 %v2121_v36 }
 0x2ba   :  { %2486 = vmatprep.subr.mxu1 %v2136_v37 }
 0x2bb   :  { %2487 = vmatpush3.msra.mxu1 %v2120_v18 }
 0x2bc   :  { %2488 = vmatprep.subr.mxu1 %v2135_v41 }
 0x2bd   :  { %2489 = vmatpush3.msra.mxu1 %v2119_v20 }
 0x2be   :  { %2490 = vmatprep.subr.mxu1 %v2134_v42 }
 0x2bf   :  { %2491 = vmatpush3.msra.mxu1 %v2118_v43 }
 0x2c0   :  { %2492 = vmatprep.subr.mxu1 %v2133_v44 }
 0x2c1   :  { %2493 = vmatpush3.msra.mxu1 %v2117_v45 }
 0x2c2   :  { %2494 = vmatprep.subr.mxu1 %v2132_v46 }
 0x2c3   :  { %2495 = vmatpush3.msra.mxu1 %v2116_v47 }
 0x2c4   :  { %2496 = vmatprep.subr.mxu1 %v2131_v48 }
 0x2c5   :  { %2497 = vmatpush3.msra.mxu1 %v2115_v49 }
 0x2c6   :  { %2498 = vmatprep.subr.mxu1 %v2130_v38 }
 0x2c7   :  { %2499 = vmatpush3.msra.mxu1 %v2114_v50 }
 0x2c8   :  { %2500 = vmatprep.subr.mxu1 %v2129_v51  ;;  %v2159_v51 = vld [vmem:[%s5146_s5 + $0x5] ss:$0 sm:$0xff] }
 0x2c9   :  { %2501 = vmatpush3.msra.mxu1 %v2113_v52 }
 0x2ca   :  { %2502 = vmatprep.subr.mxu1 %v2128_v53 }
 0x2cb   :  { %2503 = vmatpush3.msra.mxu1 %v2112_v54 }
 0x2cc   :  { %2504 = vmatprep.subr.mxu1 %v2127_v55 }
 0x2cd   :  { %2505 = vmatpush3.msra.mxu1 %v2111_v56 }
 0x30a   :  { %v1716_v0 = vpop.f32.mrf.mxu0 }
 0x30b   :  { %v1717_v39 = vadd.f32 %v1716_v0, %v1628_v62  ;;  %v1787_v1 = vpop.f32.mrf.mxu1 }
 0x30c   :  { %v1718_v2 = vpop.f32.mrf.mxu0 }
 0x30d   :  { %v1719_v4 = vadd.f32 %v1718_v2, %v1632_v63  ;;  %v1789_v5 = vpop.f32.mrf.mxu1  ;;  %v1788_v6 = vadd.f32 %v1787_v1, %v1717_v39 }
 0x30f   :  { %v1790_v7 = vadd.f32 %v1789_v5, %v1719_v4  ;;  %v2074_v9 = vmax.f32 %v1788_v6, 0.0 }
 0x311   :  { %v2075_v8 = vmax.f32 %v1790_v7, 0.0 }
 0x313   :  { %2224 = vmatprep.mubr.f32.mxu0 %v2075_v8 }
 0x314   :  { %2225 = vmatmul.mubr.f32.vlgmr.msra.gmra.mxu0 %v2074_v9 }
 0x315   :  { %2562 = vmatpush3.msra.mxu0 %v2158_v10  ;;  %2593 = vmatprep.mubr.msk.f32.mxu0 %vm2599_vm1, %v2598_v3 }
 0x316   :  { %2563 = vmatprep.subr.mxu0 %v2598_v3 }
 0x317   :  { %2564 = vmatpush3.msra.mxu0 %v2157_v12 }
 0x318   :  { %2565 = vmatprep.subr.mxu0 %v2598_v3 }
 0x319   :  { %2566 = vmatpush3.msra.mxu0 %v2156_v16 }
 0x31a   :  { %2567 = vmatprep.subr.mxu0 %v2598_v3 }
 0x31b   :  { %2568 = vmatpush3.msra.mxu0 %v2155_v33 }
 0x31c   :  { %2569 = vmatprep.subr.mxu0 %v2598_v3 }
 0x31d   :  { %2570 = vmatpush3.msra.mxu0 %v2154_v14 }
 0x31e   :  { %2571 = vmatprep.subr.mxu0 %v2598_v3 }
 0x31f   :  { %2572 = vmatpush3.msra.mxu0 %v2153_v15 }
 0x320   :  { %2573 = vmatprep.subr.mxu0 %v2598_v3 }
 0x321   :  { %2574 = vmatpush3.msra.mxu0 %v2152_v40 }
 0x322   :  { %2575 = vmatprep.subr.mxu0 %v2598_v3 }
 0x323   :  { %2576 = vmatpush3.msra.mxu0 %v2151_v21 }
 0x324   :  { %2577 = vmatprep.subr.mxu0 %v2598_v3 }
 0x325   :  { %2578 = vmatpush3.msra.mxu0 %v2150_v17 }
 0x326   :  { %2579 = vmatprep.subr.mxu0 %v2598_v3 }
 0x327   :  { %2580 = vmatpush3.msra.mxu0 %v2149_v23 }
 0x328   :  { %2581 = vmatprep.subr.mxu0 %v2598_v3 }
 0x329   :  { %2582 = vmatpush3.msra.mxu0 %v2148_v11 }
 0x32a   :  { %2583 = vmatprep.subr.mxu0 %v2598_v3 }
 0x32b   :  { %2584 = vmatpush3.msra.mxu0 %v2147_v24  ;;  %v1929_v30 = vpop.f32.mrf.mxu0 }
 0x32c   :  { %2585 = vmatprep.subr.mxu0 %v2598_v3 }
 0x32d   :  { %2586 = vmatpush3.msra.mxu0 %v2146_v25  ;;  %v1931_v35 = vpop.f32.mrf.mxu0 }
 0x32e   :  { %2587 = vmatprep.subr.mxu0 %v2598_v3 }
 0x32f   :  { %2588 = vmatpush3.msra.mxu0 %v2145_v26 }
 0x330   :  { %2589 = vmatprep.subr.mxu0 %v2598_v3 }
 0x331   :  { %2590 = vmatpush3.msra.mxu0 %v2144_v27 }
 0x332   :  { %2591 = vmatprep.subr.mxu0 %v2598_v3 }
 0x333   :  { %2592 = vmatpush3.msra.mxu0 %v2143_v28 }
 0x34c   :  { %v2419_v3 = vpop.f32.mrf.mxu0 }
 0x34d   :  { %v1858_v31 = vpop.f32.mrf.mxu1 }
 0x34e   :  { %v1859_v32 = vadd.f32 %v1858_v31, %v1636_v29  ;;  %v2420_v20 = vpop.f32.mrf.mxu0 }
 0x34f   :  { %v1860_v19 = vpop.f32.mrf.mxu1  ;;  %v2421_v42 = vadd.f32 %v2420_v20, %v2419_v3 }
 0x350   :  { %v1861_v34 = vadd.f32 %v1860_v19, %v1640_v22  ;;  %v1930_v36 = vadd.f32 %v1929_v30, %v1859_v32 }
 0x351   :  { %v2001_v43 = vadd.f32 %v2421_v42, %v1644_v61 }
 0x352   :  { %v1932_v37 = vadd.f32 %v1931_v35, %v1861_v34  ;;  %v2076_v41 = vmax.f32 %v1930_v36, 0.0 }
 0x354   :  { %v2077_v18 = vmax.f32 %v1932_v37, 0.0 }
 0x356   :  { %2294 = vmatprep.mubr.f32.mxu1 %v2077_v18 }
 0x357   :  { %2295 = vmatmul.mubr.f32.vlgmr.msra.gmra.mxu1 %v2076_v41 }
 0x36d   :  { %v2070_v57 = vpop.f32.mrf.mxu1 }
 0x36e   :  { %v2071_v44 = vadd.f32 %v2070_v57, %v2001_v43 }
 0x36f   :  { %v2560_v45 = vpop.f32.mrf.mxu1 }
 0x370   :  { %v2078_v46 = vmax.f32 %v2071_v44, 0.0 }
 0x372   :  { %2594 = vmatmul.mubr.f32.vlgmr.msra.gmra.mxu0 %v2078_v46 }
 0x3d4   :  { %v2471_v47 = vpop.f32.mrf.mxu0 }
 0x3d6   :  { %v2472_v49 = vpop.f32.mrf.mxu0 }
 0x3d7   :  { %v2473_v50 = vadd.f32 %v2472_v49, %v2471_v47 }
 0x3d9   :  { %v2227_v53 = vadd.f32 %v2473_v50, %v2159_v51 }
 0x417   :  { %v2506_v48 = vpop.f32.mrf.mxu1 }
 0x419   :  { %v2507_v38 = vpop.f32.mrf.mxu1 }
 0x41a   :  { %v2508_v52 = vadd.f32 %v2507_v38, %v2506_v48 }
 0x41c   :  { %v2297_v54 = vadd.f32 %v2508_v52, %v2227_v53 }
 0x432   :  { %v2366_v55 = vpop.f32.mrf.mxu0 }
 0x433   :  { %v2367_v13 = vadd.f32 %v2366_v55, %v2297_v54 }
 0x434   :  { %v2595_v56 = vpop.f32.mrf.mxu0 }
 0x435   :  { %2370 = vst [vmem:[%s5149_s6] sm:$0xff] %v2367_v13 }

</bundles_post_ra>
